<compile_context>
chip_gen: v7x
topology: tpu7x:2x2x1
jax: 0.10.0
libtpu: 0.0.40
codegen_flags: <defaults>
</compile_context>

<pallas_src>
import functools

import jax
import jax.numpy as jnp
import numpy as np
from jax import lax
from jax.experimental import pallas as pl
from jax.experimental.pallas import tpu as pltpu


# ----------------------------------------------------------------------------
# Pallas kernels
# ----------------------------------------------------------------------------
def _conv_bn_relu_pool_kernel(x_ref, w_ref, s_ref, b_ref, o_ref, *, H, Hout, half):
    """Fused 3x3 conv (3 banded matmuls) + BN affine + ReLU + 2x2 max-pool.

    x_ref : (1, H+2, (W+2)*Cin) bf16   padded input rows, lanes ordered (w, cin)
    w_ref : (3, (W+2)*Cin, W*Cout) bf16 banded weights, columns ordered (w%2, w//2, co)
    s_ref, b_ref : (1, W*Cout) f32     folded-BN scale / bias per output column
    o_ref : (1, Hout, half) bf16       pooled output, half = (W//2)*Cout, lanes (w, co)
    """
    acc = jnp.dot(x_ref[0, pl.ds(0, H), :], w_ref[0],
                  preferred_element_type=jnp.float32)
    acc = acc + jnp.dot(x_ref[0, pl.ds(1, H), :], w_ref[1],
                        preferred_element_type=jnp.float32)
    acc = acc + jnp.dot(x_ref[0, pl.ds(2, H), :], w_ref[2],
                        preferred_element_type=jnp.float32)
    # f32 epilogue: folded BatchNorm affine + ReLU (applied pre-pool, exact semantics).
    y = jnp.maximum(acc * s_ref[...] + b_ref[...], 0.0)            # (H, W*Cout) f32
    # Width pooling: the banded-weight column permutation puts the two pool partners
    # into the two contiguous, 128-lane-aligned halves of the matmul output.
    wmax = jnp.maximum(y[:, :half], y[:, half:])                   # (H, half)
    # Height pooling: pair rows 2i / 2i+1 via two tiny selection matmuls (MXU, exact).
    row = lax.broadcasted_iota(jnp.int32, (Hout, H), 0)
    col = lax.broadcasted_iota(jnp.int32, (Hout, H), 1)
    even = jnp.dot((col == 2 * row).astype(jnp.float32), wmax,
                   preferred_element_type=jnp.float32)
    odd = jnp.dot((col == 2 * row + 1).astype(jnp.float32), wmax,
                  preferred_element_type=jnp.float32)
    o_ref[0, :, :] = jnp.maximum(even, odd).astype(o_ref.dtype)


def _fc_fused_kernel(a_ref, w1_ref, b1_ref, w2_ref, b2_ref, o_ref):
    """logits = (a @ w1 + b1) @ w2 + b2; the (N, 500) intermediate stays in VMEM."""
    h = jnp.dot(a_ref[...], w1_ref[...], preferred_element_type=jnp.float32)
    h = h + b1_ref[...]
    o_ref[...] = (jnp.dot(h, w2_ref[...], preferred_element_type=jnp.float32)
                  + b2_ref[...]).astype(o_ref.dtype)


# ----------------------------------------------------------------------------
# Pallas wrappers
# ----------------------------------------------------------------------------
def conv_bn_relu_pool(x_nhwc, p):
    N, H, W, Cin = x_nhwc.shape
    Cout = p["scale"].shape[0]
    Hout, Wout = H // 2, W // 2
    half = Wout * Cout
    xp = jnp.pad(x_nhwc, ((0, 0), (1, 1), (1, 1), (0, 0)))
    xp = xp.reshape(N, H + 2, (W + 2) * Cin)                       # free reshape
    kern = functools.partial(_conv_bn_relu_pool_kernel, H=H, Hout=Hout, half=half)
    out = pl.pallas_call(
        kern,
        out_shape=jax.ShapeDtypeStruct((N, Hout, half), jnp.bfloat16),
        grid=(N,),
        in_specs=[
            pl.BlockSpec((1, H + 2, (W + 2) * Cin), lambda n: (n, 0, 0)),
            pl.BlockSpec((3, (W + 2) * Cin, W * Cout), lambda n: (0, 0, 0)),
            pl.BlockSpec((1, W * Cout), lambda n: (0, 0)),
            pl.BlockSpec((1, W * Cout), lambda n: (0, 0)),
        ],
        out_specs=pl.BlockSpec((1, Hout, half), lambda n: (n, 0, 0)),
        compiler_params=pltpu.CompilerParams(dimension_semantics=("parallel",)),
    )(xp, p["wband"], p["scale_row"], p["bias_row"])
    return out.reshape(N, Hout, Wout, Cout)                        # free reshape (NHWC)


def fc_fused(a, fc1, fc2):
    N, Din = a.shape
    D1 = fc1["w"].shape[1]
    D2 = fc2["w"].shape[1]
    # Batch is 2 and the call is DMA-bound on the 1 MB fc1 weight -> single grid step.
    return pl.pallas_call(
        _fc_fused_kernel,
        out_shape=jax.ShapeDtypeStruct((N, D2), jnp.float32),
        grid=(1,),
        in_specs=[
            pl.BlockSpec((N, Din), lambda i: (0, 0)),
            pl.BlockSpec((Din, D1), lambda i: (0, 0)),
            pl.BlockSpec((1, D1), lambda i: (0, 0)),
            pl.BlockSpec((D1, D2), lambda i: (0, 0)),
            pl.BlockSpec((1, D2), lambda i: (0, 0)),
        ],
        out_specs=pl.BlockSpec((N, D2), lambda i: (0, 0)),
    )(a, fc1["w"], fc1["b"], fc2["w"], fc2["b"])


# ----------------------------------------------------------------------------
# Parameter construction (init-time, zero runtime cost)
# ----------------------------------------------------------------------------
def _fold_bn(conv_bias, gamma, beta, mean, var, eps=1e-5):
    s = gamma / jnp.sqrt(var + eps)
    return s, (conv_bias - mean) * s + beta


def _make_banded_weight(w, win):
    """(3, 3, Cin, Cout) -> (3, (win+2)*Cin, win*Cout) bf16 block-banded matrices.

    Output column order is (w % 2, w // 2, co) so the 2x2 pool's width partners land
    in the two contiguous 128-aligned halves of the matmul output.
    """
    w = np.asarray(w, np.float32)
    _, _, cin, cout = w.shape
    wo = win // 2
    band = np.zeros((3, (win + 2) * cin, win * cout), np.float32)
    for dy in range(3):
        for wcol in range(win):
            q, j = wcol % 2, wcol // 2
            c0 = q * (wo * cout) + j * cout
            for dx in range(3):
                r0 = (wcol + dx) * cin
                band[dy, r0:r0 + cin, c0:c0 + cout] = w[dy, dx]
    return jnp.asarray(band, jnp.bfloat16)


def init_params(key):
    ks = jax.random.split(key, 5)

    def conv_layer(k, cin, cout, win):
        kk = jax.random.split(k, 6)
        w = jax.random.normal(kk[0], (3, 3, cin, cout), jnp.float32) / np.sqrt(9 * cin)
        b = 0.1 * jax.random.normal(kk[1], (cout,), jnp.float32)
        gamma = 1.0 + 0.1 * jax.random.normal(kk[2], (cout,), jnp.float32)
        beta = 0.1 * jax.random.normal(kk[3], (cout,), jnp.float32)
        mean = 0.1 * jax.random.normal(kk[4], (cout,), jnp.float32)
        var = 0.5 + jax.random.uniform(kk[5], (cout,), jnp.float32)
        scale, bias = _fold_bn(b, gamma, beta, mean, var)
        return {
            "w": w, "scale": scale, "bias": bias,                       # reference path
            "wband": _make_banded_weight(w, win),                       # kernel path
            "scale_row": jnp.tile(scale, win).reshape(1, win * cout),
            "bias_row": jnp.tile(bias, win).reshape(1, win * cout),
        }

    def fc_layer(k, din, dout, w_dtype):
        k1, k2 = jax.random.split(k)
        w = (jax.random.normal(k1, (din, dout), jnp.float32) / np.sqrt(din)).astype(w_dtype)
        b = 0.1 * jax.random.normal(k2, (1, dout), jnp.float32)
        return {"w": w, "b": b}

    return {
        "layer1": conv_layer(ks[0], 3, 16, 32),
        "layer2": conv_layer(ks[1], 16, 32, 16),
        "layer3": conv_layer(ks[2], 32, 64, 8),
        # fc1 weight's input dim is ordered per NHWC (h, w, c) flatten (see header).
        "fc1": fc_layer(ks[3], 64 * 4 * 4, 500, jnp.bfloat16),
        "fc2": fc_layer(ks[4], 500, 10, jnp.float32),
    }


# ----------------------------------------------------------------------------
# Forward passes
# ----------------------------------------------------------------------------
def net_forward(x_nchw, params):
    N = x_nchw.shape[0]
    x = jnp.transpose(x_nchw, (0, 2, 3, 1)).astype(jnp.bfloat16)   # NCHW -> NHWC, bf16
    x = conv_bn_relu_pool(x, params["layer1"])                     # (N, 16, 16, 16)
    x = conv_bn_relu_pool(x, params["layer2"])                     # (N,  8,  8, 32)
    x = conv_bn_relu_pool(x, params["layer3"])                     # (N,  4,  4, 64)
    a = x.reshape(N, -1)                                           # NHWC (h, w, c) flatten
    # TODO(synk): nn.Dropout(p=0.25) is identity in eval mode; training-mode masking not implemented.
    return fc_fused(a, params["fc1"], params["fc2"])


def net_forward_ref(x_nchw, params):
    """Pure-jnp reference using the same bf16-operand / f32-accumulate math (no Pallas)."""
    x = jnp.transpose(x_nchw, (0, 2, 3, 1)).astype(jnp.bfloat16)
    for name in ("layer1", "layer2", "layer3"):
        p = params[name]
        N, H, W, Cin = x.shape
        Cout = p["scale"].shape[0]
        xp = jnp.pad(x, ((0, 0), (1, 1), (1, 1), (0, 0)))
        acc = jnp.zeros((N, H, W, Cout), jnp.float32)
        for dy in range(3):
            for dx in range(3):
                patch = xp[:, dy:dy + H, dx:dx + W, :].reshape(N * H * W, Cin)
                acc = acc + jnp.dot(patch, p["w"][dy, dx].astype(jnp.bfloat16),
                                    preferred_element_type=jnp.float32
                                    ).reshape(N, H, W, Cout)
        y = jnp.maximum(acc * p["scale"] + p["bias"], 0.0)
        y = y.reshape(N, H // 2, 2, W // 2, 2, Cout).max(axis=(2, 4))
        x = y.astype(jnp.bfloat16)
    N = x.shape[0]
    a = x.reshape(N, -1)
    h = jnp.dot(a, params["fc1"]["w"], preferred_element_type=jnp.float32) + params["fc1"]["b"]
    return jnp.dot(h, params["fc2"]["w"], preferred_element_type=jnp.float32) + params["fc2"]["b"]


if __name__ == "__main__":
    key = jax.random.PRNGKey(0)
    pkey, xkey = jax.random.split(key)
    params = init_params(pkey)

    # PyTorch-convention NCHW input; 32x32 is implied by fc1 = Linear(64*4*4, 500).
    x = jax.random.normal(xkey, (2, 3, 32, 32), jnp.float32)

    out = jax.block_until_ready(jax.jit(net_forward)(x, params))
    ref = jax.block_until_ready(net_forward_ref(x, params))

    assert out.shape == (2, 10) and out.dtype == jnp.float32
    np.testing.assert_allclose(np.asarray(out), np.asarray(ref), rtol=2e-2, atol=2e-2)
    print("KERNEL_OK")
</pallas_src>

<mosaic_0001>
module attributes {stable_mosaic.version = 11 : i64} {
  func.func @_conv_bn_relu_pool_kernel(%arg0: i32, %arg1: memref<1x34x102xbf16, #tpu.memory_space<vmem>>, %arg2: memref<3x102x512xbf16, #tpu.memory_space<vmem>>, %arg3: memref<1x512xf32, #tpu.memory_space<vmem>>, %arg4: memref<1x512xf32, #tpu.memory_space<vmem>>, %arg5: memref<1x16x256xbf16, #tpu.memory_space<vmem>>) attributes {dimension_semantics = [#tpu.dimension_semantics<parallel>], iteration_bounds = array<i64: 2>, scalar_prefetch = 0 : i64, scratch_operands = 0 : i64, tpu.core_type = #tpu.core_type<tc>, window_params = [{transform_indices = @transform_0, window_bounds = array<i64: 1, 34, 102>}, {pipeline_mode = #tpu.pipeline_mode<synchronous>, transform_indices = @transform_1, window_bounds = array<i64: 3, 102, 512>}, {pipeline_mode = #tpu.pipeline_mode<synchronous>, transform_indices = @transform_2, window_bounds = array<i64: 1, 512>}, {pipeline_mode = #tpu.pipeline_mode<synchronous>, transform_indices = @transform_3, window_bounds = array<i64: 1, 512>}, {transform_indices = @transform_4, window_bounds = array<i64: 1, 16, 256>}]} {
    %c0 = arith.constant 0 : index
    %c0_0 = arith.constant 0 : index
    %c0_1 = arith.constant 0 : index
    %0 = vector.load %arg1[%c0, %c0_0, %c0_1] : memref<1x34x102xbf16, #tpu.memory_space<vmem>>, vector<1x32x102xbf16>
    %1 = vector.shape_cast %0 : vector<1x32x102xbf16> to vector<32x102xbf16>
    %c0_2 = arith.constant 0 : index
    %c0_3 = arith.constant 0 : index
    %c0_4 = arith.constant 0 : index
    %2 = vector.load %arg2[%c0_2, %c0_3, %c0_4] : memref<3x102x512xbf16, #tpu.memory_space<vmem>>, vector<1x102x512xbf16>
    %3 = vector.shape_cast %2 : vector<1x102x512xbf16> to vector<102x512xbf16>
    %cst = arith.constant dense<0.000000e+00> : vector<32x512xf32>
    %4 = tpu.matmul %1, %3, %cst {dimension_numbers = #tpu.dot_dimension_numbers<[1], [0], [0], [1], [0, 0, 1, 1], [], []>} : vector<32x102xbf16>, vector<102x512xbf16>, vector<32x512xf32> -> vector<32x512xf32>
    %c0_5 = arith.constant 0 : index
    %c1 = arith.constant 1 : index
    %c0_6 = arith.constant 0 : index
    %5 = vector.load %arg1[%c0_5, %c1, %c0_6] : memref<1x34x102xbf16, #tpu.memory_space<vmem>>, vector<1x32x102xbf16>
    %6 = vector.shape_cast %5 : vector<1x32x102xbf16> to vector<32x102xbf16>
    %c1_7 = arith.constant 1 : index
    %c0_8 = arith.constant 0 : index
    %c0_9 = arith.constant 0 : index
    %7 = vector.load %arg2[%c1_7, %c0_8, %c0_9] : memref<3x102x512xbf16, #tpu.memory_space<vmem>>, vector<1x102x512xbf16>
    %8 = vector.shape_cast %7 : vector<1x102x512xbf16> to vector<102x512xbf16>
    %cst_10 = arith.constant dense<0.000000e+00> : vector<32x512xf32>
    %9 = tpu.matmul %6, %8, %cst_10 {dimension_numbers = #tpu.dot_dimension_numbers<[1], [0], [0], [1], [0, 0, 1, 1], [], []>} : vector<32x102xbf16>, vector<102x512xbf16>, vector<32x512xf32> -> vector<32x512xf32>
    %10 = arith.addf %4, %9 : vector<32x512xf32>
    %c0_11 = arith.constant 0 : index
    %c2 = arith.constant 2 : index
    %c0_12 = arith.constant 0 : index
    %11 = vector.load %arg1[%c0_11, %c2, %c0_12] : memref<1x34x102xbf16, #tpu.memory_space<vmem>>, vector<1x32x102xbf16>
    %12 = vector.shape_cast %11 : vector<1x32x102xbf16> to vector<32x102xbf16>
    %c2_13 = arith.constant 2 : index
    %c0_14 = arith.constant 0 : index
    %c0_15 = arith.constant 0 : index
    %13 = vector.load %arg2[%c2_13, %c0_14, %c0_15] : memref<3x102x512xbf16, #tpu.memory_space<vmem>>, vector<1x102x512xbf16>
    %14 = vector.shape_cast %13 : vector<1x102x512xbf16> to vector<102x512xbf16>
    %cst_16 = arith.constant dense<0.000000e+00> : vector<32x512xf32>
    %15 = tpu.matmul %12, %14, %cst_16 {dimension_numbers = #tpu.dot_dimension_numbers<[1], [0], [0], [1], [0, 0, 1, 1], [], []>} : vector<32x102xbf16>, vector<102x512xbf16>, vector<32x512xf32> -> vector<32x512xf32>
    %16 = arith.addf %10, %15 : vector<32x512xf32>
    %c0_17 = arith.constant 0 : index
    %c0_18 = arith.constant 0 : index
    %17 = vector.load %arg3[%c0_17, %c0_18] : memref<1x512xf32, #tpu.memory_space<vmem>>, vector<1x512xf32>
    %18 = vector.broadcast %17 : vector<1x512xf32> to vector<32x512xf32>
    %19 = arith.mulf %16, %18 : vector<32x512xf32>
    %c0_19 = arith.constant 0 : index
    %c0_20 = arith.constant 0 : index
    %20 = vector.load %arg4[%c0_19, %c0_20] : memref<1x512xf32, #tpu.memory_space<vmem>>, vector<1x512xf32>
    %21 = vector.broadcast %20 : vector<1x512xf32> to vector<32x512xf32>
    %22 = arith.addf %19, %21 : vector<32x512xf32>
    %cst_21 = arith.constant 0.000000e+00 : f32
    %23 = vector.broadcast %cst_21 : f32 to vector<32x512xf32>
    %24 = arith.maximumf %22, %23 : vector<32x512xf32>
    %25 = vector.extract_strided_slice %24 {offsets = [0, 0], sizes = [32, 256], strides = [1, 1]} : vector<32x512xf32> to vector<32x256xf32>
    %26 = vector.extract_strided_slice %24 {offsets = [0, 256], sizes = [32, 256], strides = [1, 1]} : vector<32x512xf32> to vector<32x256xf32>
    %27 = arith.maximumf %25, %26 : vector<32x256xf32>
    %28 = tpu.iota {dimensions = array<i32: 0>} : vector<16x32xi32>
    %29 = tpu.iota {dimensions = array<i32: 1>} : vector<16x32xi32>
    %c2_i32 = arith.constant 2 : i32
    %30 = vector.broadcast %c2_i32 : i32 to vector<16x32xi32>
    %31 = arith.muli %30, %28 : vector<16x32xi32>
    %32 = arith.cmpi eq, %29, %31 : vector<16x32xi32>
    %33 = arith.extui %32 : vector<16x32xi1> to vector<16x32xi32>
    %34 = arith.sitofp %33 : vector<16x32xi32> to vector<16x32xf32>
    %cst_22 = arith.constant dense<0.000000e+00> : vector<16x256xf32>
    %35 = tpu.matmul %34, %27, %cst_22 {dimension_numbers = #tpu.dot_dimension_numbers<[1], [0], [0], [1], [0, 0, 1, 1], [], []>} : vector<16x32xf32>, vector<32x256xf32>, vector<16x256xf32> -> vector<16x256xf32>
    %c2_i32_23 = arith.constant 2 : i32
    %36 = vector.broadcast %c2_i32_23 : i32 to vector<16x32xi32>
    %37 = arith.muli %36, %28 : vector<16x32xi32>
    %c1_i32 = arith.constant 1 : i32
    %38 = vector.broadcast %c1_i32 : i32 to vector<16x32xi32>
    %39 = arith.addi %37, %38 : vector<16x32xi32>
    %40 = arith.cmpi eq, %29, %39 : vector<16x32xi32>
    %41 = arith.extui %40 : vector<16x32xi1> to vector<16x32xi32>
    %42 = arith.sitofp %41 : vector<16x32xi32> to vector<16x32xf32>
    %cst_24 = arith.constant dense<0.000000e+00> : vector<16x256xf32>
    %43 = tpu.matmul %42, %27, %cst_24 {dimension_numbers = #tpu.dot_dimension_numbers<[1], [0], [0], [1], [0, 0, 1, 1], [], []>} : vector<16x32xf32>, vector<32x256xf32>, vector<16x256xf32> -> vector<16x256xf32>
    %44 = arith.maximumf %35, %43 : vector<16x256xf32>
    %45 = arith.truncf %44 : vector<16x256xf32> to vector<16x256xbf16>
    %c0_25 = arith.constant 0 : index
    %c0_26 = arith.constant 0 : index
    %c0_27 = arith.constant 0 : index
    %46 = vector.load %arg5[%c0_25, %c0_26, %c0_27] : memref<1x16x256xbf16, #tpu.memory_space<vmem>>, vector<1x16x256xbf16>
    %47 = vector.shape_cast %46 : vector<1x16x256xbf16> to vector<16x256xbf16>
    %48 = vector.shape_cast %45 : vector<16x256xbf16> to vector<1x16x256xbf16>
    tpu.vector_store %arg5[%c0_25, %c0_26, %c0_27], %48 {strides = array<i32>} : memref<1x16x256xbf16, #tpu.memory_space<vmem>>, vector<1x16x256xbf16>,
    return
  }
  func.func @transform_0(%arg0: i32) -> (i32, i32, i32) {
    %c0_i32 = arith.constant 0 : i32
    %c0_i32_0 = arith.constant 0 : i32
    %c0_i32_1 = arith.constant 0 : i32
    return %arg0, %c0_i32, %c0_i32_0 : i32, i32, i32
  }
  func.func @transform_1(%arg0: i32) -> (i32, i32, i32) {
    %c0_i32 = arith.constant 0 : i32
    %c0_i32_0 = arith.constant 0 : i32
    %c0_i32_1 = arith.constant 0 : i32
    %c0_i32_2 = arith.constant 0 : i32
    return %c0_i32, %c0_i32_0, %c0_i32_1 : i32, i32, i32
  }
  func.func @transform_2(%arg0: i32) -> (i32, i32) {
    %c0_i32 = arith.constant 0 : i32
    %c0_i32_0 = arith.constant 0 : i32
    %c0_i32_1 = arith.constant 0 : i32
    return %c0_i32, %c0_i32_0 : i32, i32
  }
  func.func @transform_3(%arg0: i32) -> (i32, i32) {
    %c0_i32 = arith.constant 0 : i32
    %c0_i32_0 = arith.constant 0 : i32
    %c0_i32_1 = arith.constant 0 : i32
    return %c0_i32, %c0_i32_0 : i32, i32
  }
  func.func @transform_4(%arg0: i32) -> (i32, i32, i32) {
    %c0_i32 = arith.constant 0 : i32
    %c0_i32_0 = arith.constant 0 : i32
    %c0_i32_1 = arith.constant 0 : i32
    return %arg0, %c0_i32, %c0_i32_0 : i32, i32, i32
  }
}

module attributes {stable_mosaic.version = 11 : i64} {
  func.func @_conv_bn_relu_pool_kernel(%arg0: i32, %arg1: memref<1x18x288xbf16, #tpu.memory_space<vmem>>, %arg2: memref<3x288x512xbf16, #tpu.memory_space<vmem>>, %arg3: memref<1x512xf32, #tpu.memory_space<vmem>>, %arg4: memref<1x512xf32, #tpu.memory_space<vmem>>, %arg5: memref<1x8x256xbf16, #tpu.memory_space<vmem>>) attributes {dimension_semantics = [#tpu.dimension_semantics<parallel>], iteration_bounds = array<i64: 2>, scalar_prefetch = 0 : i64, scratch_operands = 0 : i64, tpu.core_type = #tpu.core_type<tc>, window_params = [{transform_indices = @transform_0, window_bounds = array<i64: 1, 18, 288>}, {pipeline_mode = #tpu.pipeline_mode<synchronous>, transform_indices = @transform_1, window_bounds = array<i64: 3, 288, 512>}, {pipeline_mode = #tpu.pipeline_mode<synchronous>, transform_indices = @transform_2, window_bounds = array<i64: 1, 512>}, {pipeline_mode = #tpu.pipeline_mode<synchronous>, transform_indices = @transform_3, window_bounds = array<i64: 1, 512>}, {transform_indices = @transform_4, window_bounds = array<i64: 1, 8, 256>}]} {
    %c0 = arith.constant 0 : index
    %c0_0 = arith.constant 0 : index
    %c0_1 = arith.constant 0 : index
    %0 = vector.load %arg1[%c0, %c0_0, %c0_1] : memref<1x18x288xbf16, #tpu.memory_space<vmem>>, vector<1x16x288xbf16>
    %1 = vector.shape_cast %0 : vector<1x16x288xbf16> to vector<16x288xbf16>
    %c0_2 = arith.constant 0 : index
    %c0_3 = arith.constant 0 : index
    %c0_4 = arith.constant 0 : index
    %2 = vector.load %arg2[%c0_2, %c0_3, %c0_4] : memref<3x288x512xbf16, #tpu.memory_space<vmem>>, vector<1x288x512xbf16>
    %3 = vector.shape_cast %2 : vector<1x288x512xbf16> to vector<288x512xbf16>
    %cst = arith.constant dense<0.000000e+00> : vector<16x512xf32>
    %4 = tpu.matmul %1, %3, %cst {dimension_numbers = #tpu.dot_dimension_numbers<[1], [0], [0], [1], [0, 0, 1, 1], [], []>} : vector<16x288xbf16>, vector<288x512xbf16>, vector<16x512xf32> -> vector<16x512xf32>
    %c0_5 = arith.constant 0 : index
    %c1 = arith.constant 1 : index
    %c0_6 = arith.constant 0 : index
    %5 = vector.load %arg1[%c0_5, %c1, %c0_6] : memref<1x18x288xbf16, #tpu.memory_space<vmem>>, vector<1x16x288xbf16>
    %6 = vector.shape_cast %5 : vector<1x16x288xbf16> to vector<16x288xbf16>
    %c1_7 = arith.constant 1 : index
    %c0_8 = arith.constant 0 : index
    %c0_9 = arith.constant 0 : index
    %7 = vector.load %arg2[%c1_7, %c0_8, %c0_9] : memref<3x288x512xbf16, #tpu.memory_space<vmem>>, vector<1x288x512xbf16>
    %8 = vector.shape_cast %7 : vector<1x288x512xbf16> to vector<288x512xbf16>
    %cst_10 = arith.constant dense<0.000000e+00> : vector<16x512xf32>
    %9 = tpu.matmul %6, %8, %cst_10 {dimension_numbers = #tpu.dot_dimension_numbers<[1], [0], [0], [1], [0, 0, 1, 1], [], []>} : vector<16x288xbf16>, vector<288x512xbf16>, vector<16x512xf32> -> vector<16x512xf32>
    %10 = arith.addf %4, %9 : vector<16x512xf32>
    %c0_11 = arith.constant 0 : index
    %c2 = arith.constant 2 : index
    %c0_12 = arith.constant 0 : index
    %11 = vector.load %arg1[%c0_11, %c2, %c0_12] : memref<1x18x288xbf16, #tpu.memory_space<vmem>>, vector<1x16x288xbf16>
    %12 = vector.shape_cast %11 : vector<1x16x288xbf16> to vector<16x288xbf16>
    %c2_13 = arith.constant 2 : index
    %c0_14 = arith.constant 0 : index
    %c0_15 = arith.constant 0 : index
    %13 = vector.load %arg2[%c2_13, %c0_14, %c0_15] : memref<3x288x512xbf16, #tpu.memory_space<vmem>>, vector<1x288x512xbf16>
    %14 = vector.shape_cast %13 : vector<1x288x512xbf16> to vector<288x512xbf16>
    %cst_16 = arith.constant dense<0.000000e+00> : vector<16x512xf32>
    %15 = tpu.matmul %12, %14, %cst_16 {dimension_numbers = #tpu.dot_dimension_numbers<[1], [0], [0], [1], [0, 0, 1, 1], [], []>} : vector<16x288xbf16>, vector<288x512xbf16>, vector<16x512xf32> -> vector<16x512xf32>
    %16 = arith.addf %10, %15 : vector<16x512xf32>
    %c0_17 = arith.constant 0 : index
    %c0_18 = arith.constant 0 : index
    %17 = vector.load %arg3[%c0_17, %c0_18] : memref<1x512xf32, #tpu.memory_space<vmem>>, vector<1x512xf32>
    %18 = vector.broadcast %17 : vector<1x512xf32> to vector<16x512xf32>
    %19 = arith.mulf %16, %18 : vector<16x512xf32>
    %c0_19 = arith.constant 0 : index
    %c0_20 = arith.constant 0 : index
    %20 = vector.load %arg4[%c0_19, %c0_20] : memref<1x512xf32, #tpu.memory_space<vmem>>, vector<1x512xf32>
    %21 = vector.broadcast %20 : vector<1x512xf32> to vector<16x512xf32>
    %22 = arith.addf %19, %21 : vector<16x512xf32>
    %cst_21 = arith.constant 0.000000e+00 : f32
    %23 = vector.broadcast %cst_21 : f32 to vector<16x512xf32>
    %24 = arith.maximumf %22, %23 : vector<16x512xf32>
    %25 = vector.extract_strided_slice %24 {offsets = [0, 0], sizes = [16, 256], strides = [1, 1]} : vector<16x512xf32> to vector<16x256xf32>
    %26 = vector.extract_strided_slice %24 {offsets = [0, 256], sizes = [16, 256], strides = [1, 1]} : vector<16x512xf32> to vector<16x256xf32>
    %27 = arith.maximumf %25, %26 : vector<16x256xf32>
    %28 = tpu.iota {dimensions = array<i32: 0>} : vector<8x16xi32>
    %29 = tpu.iota {dimensions = array<i32: 1>} : vector<8x16xi32>
    %c2_i32 = arith.constant 2 : i32
    %30 = vector.broadcast %c2_i32 : i32 to vector<8x16xi32>
    %31 = arith.muli %30, %28 : vector<8x16xi32>
    %32 = arith.cmpi eq, %29, %31 : vector<8x16xi32>
    %33 = arith.extui %32 : vector<8x16xi1> to vector<8x16xi32>
    %34 = arith.sitofp %33 : vector<8x16xi32> to vector<8x16xf32>
    %cst_22 = arith.constant dense<0.000000e+00> : vector<8x256xf32>
    %35 = tpu.matmul %34, %27, %cst_22 {dimension_numbers = #tpu.dot_dimension_numbers<[1], [0], [0], [1], [0, 0, 1, 1], [], []>} : vector<8x16xf32>, vector<16x256xf32>, vector<8x256xf32> -> vector<8x256xf32>
    %c2_i32_23 = arith.constant 2 : i32
    %36 = vector.broadcast %c2_i32_23 : i32 to vector<8x16xi32>
    %37 = arith.muli %36, %28 : vector<8x16xi32>
    %c1_i32 = arith.constant 1 : i32
    %38 = vector.broadcast %c1_i32 : i32 to vector<8x16xi32>
    %39 = arith.addi %37, %38 : vector<8x16xi32>
    %40 = arith.cmpi eq, %29, %39 : vector<8x16xi32>
    %41 = arith.extui %40 : vector<8x16xi1> to vector<8x16xi32>
    %42 = arith.sitofp %41 : vector<8x16xi32> to vector<8x16xf32>
    %cst_24 = arith.constant dense<0.000000e+00> : vector<8x256xf32>
    %43 = tpu.matmul %42, %27, %cst_24 {dimension_numbers = #tpu.dot_dimension_numbers<[1], [0], [0], [1], [0, 0, 1, 1], [], []>} : vector<8x16xf32>, vector<16x256xf32>, vector<8x256xf32> -> vector<8x256xf32>
    %44 = arith.maximumf %35, %43 : vector<8x256xf32>
    %45 = arith.truncf %44 : vector<8x256xf32> to vector<8x256xbf16>
    %c0_25 = arith.constant 0 : index
    %c0_26 = arith.constant 0 : index
    %c0_27 = arith.constant 0 : index
    %46 = vector.load %arg5[%c0_25, %c0_26, %c0_27] : memref<1x8x256xbf16, #tpu.memory_space<vmem>>, vector<1x8x256xbf16>
    %47 = vector.shape_cast %46 : vector<1x8x256xbf16> to vector<8x256xbf16>
    %48 = vector.shape_cast %45 : vector<8x256xbf16> to vector<1x8x256xbf16>
    tpu.vector_store %arg5[%c0_25, %c0_26, %c0_27], %48 {strides = array<i32>} : memref<1x8x256xbf16, #tpu.memory_space<vmem>>, vector<1x8x256xbf16>,
    return
  }
  func.func @transform_0(%arg0: i32) -> (i32, i32, i32) {
    %c0_i32 = arith.constant 0 : i32
    %c0_i32_0 = arith.constant 0 : i32
    %c0_i32_1 = arith.constant 0 : i32
    return %arg0, %c0_i32, %c0_i32_0 : i32, i32, i32
  }
  func.func @transform_1(%arg0: i32) -> (i32, i32, i32) {
    %c0_i32 = arith.constant 0 : i32
    %c0_i32_0 = arith.constant 0 : i32
    %c0_i32_1 = arith.constant 0 : i32
    %c0_i32_2 = arith.constant 0 : i32
    return %c0_i32, %c0_i32_0, %c0_i32_1 : i32, i32, i32
  }
  func.func @transform_2(%arg0: i32) -> (i32, i32) {
    %c0_i32 = arith.constant 0 : i32
    %c0_i32_0 = arith.constant 0 : i32
    %c0_i32_1 = arith.constant 0 : i32
    return %c0_i32, %c0_i32_0 : i32, i32
  }
  func.func @transform_3(%arg0: i32) -> (i32, i32) {
    %c0_i32 = arith.constant 0 : i32
    %c0_i32_0 = arith.constant 0 : i32
    %c0_i32_1 = arith.constant 0 : i32
    return %c0_i32, %c0_i32_0 : i32, i32
  }
  func.func @transform_4(%arg0: i32) -> (i32, i32, i32) {
    %c0_i32 = arith.constant 0 : i32
    %c0_i32_0 = arith.constant 0 : i32
    %c0_i32_1 = arith.constant 0 : i32
    return %arg0, %c0_i32, %c0_i32_0 : i32, i32, i32
  }
}

module attributes {stable_mosaic.version = 11 : i64} {
  func.func @_conv_bn_relu_pool_kernel(%arg0: i32, %arg1: memref<1x10x320xbf16, #tpu.memory_space<vmem>>, %arg2: memref<3x320x512xbf16, #tpu.memory_space<vmem>>, %arg3: memref<1x512xf32, #tpu.memory_space<vmem>>, %arg4: memref<1x512xf32, #tpu.memory_space<vmem>>, %arg5: memref<1x4x256xbf16, #tpu.memory_space<vmem>>) attributes {dimension_semantics = [#tpu.dimension_semantics<parallel>], iteration_bounds = array<i64: 2>, scalar_prefetch = 0 : i64, scratch_operands = 0 : i64, tpu.core_type = #tpu.core_type<tc>, window_params = [{transform_indices = @transform_0, window_bounds = array<i64: 1, 10, 320>}, {pipeline_mode = #tpu.pipeline_mode<synchronous>, transform_indices = @transform_1, window_bounds = array<i64: 3, 320, 512>}, {pipeline_mode = #tpu.pipeline_mode<synchronous>, transform_indices = @transform_2, window_bounds = array<i64: 1, 512>}, {pipeline_mode = #tpu.pipeline_mode<synchronous>, transform_indices = @transform_3, window_bounds = array<i64: 1, 512>}, {transform_indices = @transform_4, window_bounds = array<i64: 1, 4, 256>}]} {
    %c0 = arith.constant 0 : index
    %c0_0 = arith.constant 0 : index
    %c0_1 = arith.constant 0 : index
    %0 = vector.load %arg1[%c0, %c0_0, %c0_1] : memref<1x10x320xbf16, #tpu.memory_space<vmem>>, vector<1x8x320xbf16>
    %1 = vector.shape_cast %0 : vector<1x8x320xbf16> to vector<8x320xbf16>
    %c0_2 = arith.constant 0 : index
    %c0_3 = arith.constant 0 : index
    %c0_4 = arith.constant 0 : index
    %2 = vector.load %arg2[%c0_2, %c0_3, %c0_4] : memref<3x320x512xbf16, #tpu.memory_space<vmem>>, vector<1x320x512xbf16>
    %3 = vector.shape_cast %2 : vector<1x320x512xbf16> to vector<320x512xbf16>
    %cst = arith.constant dense<0.000000e+00> : vector<8x512xf32>
    %4 = tpu.matmul %1, %3, %cst {dimension_numbers = #tpu.dot_dimension_numbers<[1], [0], [0], [1], [0, 0, 1, 1], [], []>} : vector<8x320xbf16>, vector<320x512xbf16>, vector<8x512xf32> -> vector<8x512xf32>
    %c0_5 = arith.constant 0 : index
    %c1 = arith.constant 1 : index
    %c0_6 = arith.constant 0 : index
    %5 = vector.load %arg1[%c0_5, %c1, %c0_6] : memref<1x10x320xbf16, #tpu.memory_space<vmem>>, vector<1x8x320xbf16>
    %6 = vector.shape_cast %5 : vector<1x8x320xbf16> to vector<8x320xbf16>
    %c1_7 = arith.constant 1 : index
    %c0_8 = arith.constant 0 : index
    %c0_9 = arith.constant 0 : index
    %7 = vector.load %arg2[%c1_7, %c0_8, %c0_9] : memref<3x320x512xbf16, #tpu.memory_space<vmem>>, vector<1x320x512xbf16>
    %8 = vector.shape_cast %7 : vector<1x320x512xbf16> to vector<320x512xbf16>
    %cst_10 = arith.constant dense<0.000000e+00> : vector<8x512xf32>
    %9 = tpu.matmul %6, %8, %cst_10 {dimension_numbers = #tpu.dot_dimension_numbers<[1], [0], [0], [1], [0, 0, 1, 1], [], []>} : vector<8x320xbf16>, vector<320x512xbf16>, vector<8x512xf32> -> vector<8x512xf32>
    %10 = arith.addf %4, %9 : vector<8x512xf32>
    %c0_11 = arith.constant 0 : index
    %c2 = arith.constant 2 : index
    %c0_12 = arith.constant 0 : index
    %11 = vector.load %arg1[%c0_11, %c2, %c0_12] : memref<1x10x320xbf16, #tpu.memory_space<vmem>>, vector<1x8x320xbf16>
    %12 = vector.shape_cast %11 : vector<1x8x320xbf16> to vector<8x320xbf16>
    %c2_13 = arith.constant 2 : index
    %c0_14 = arith.constant 0 : index
    %c0_15 = arith.constant 0 : index
    %13 = vector.load %arg2[%c2_13, %c0_14, %c0_15] : memref<3x320x512xbf16, #tpu.memory_space<vmem>>, vector<1x320x512xbf16>
    %14 = vector.shape_cast %13 : vector<1x320x512xbf16> to vector<320x512xbf16>
    %cst_16 = arith.constant dense<0.000000e+00> : vector<8x512xf32>
    %15 = tpu.matmul %12, %14, %cst_16 {dimension_numbers = #tpu.dot_dimension_numbers<[1], [0], [0], [1], [0, 0, 1, 1], [], []>} : vector<8x320xbf16>, vector<320x512xbf16>, vector<8x512xf32> -> vector<8x512xf32>
    %16 = arith.addf %10, %15 : vector<8x512xf32>
    %c0_17 = arith.constant 0 : index
    %c0_18 = arith.constant 0 : index
    %17 = vector.load %arg3[%c0_17, %c0_18] : memref<1x512xf32, #tpu.memory_space<vmem>>, vector<1x512xf32>
    %18 = vector.broadcast %17 : vector<1x512xf32> to vector<8x512xf32>
    %19 = arith.mulf %16, %18 : vector<8x512xf32>
    %c0_19 = arith.constant 0 : index
    %c0_20 = arith.constant 0 : index
    %20 = vector.load %arg4[%c0_19, %c0_20] : memref<1x512xf32, #tpu.memory_space<vmem>>, vector<1x512xf32>
    %21 = vector.broadcast %20 : vector<1x512xf32> to vector<8x512xf32>
    %22 = arith.addf %19, %21 : vector<8x512xf32>
    %cst_21 = arith.constant 0.000000e+00 : f32
    %23 = vector.broadcast %cst_21 : f32 to vector<8x512xf32>
    %24 = arith.maximumf %22, %23 : vector<8x512xf32>
    %25 = vector.extract_strided_slice %24 {offsets = [0, 0], sizes = [8, 256], strides = [1, 1]} : vector<8x512xf32> to vector<8x256xf32>
    %26 = vector.extract_strided_slice %24 {offsets = [0, 256], sizes = [8, 256], strides = [1, 1]} : vector<8x512xf32> to vector<8x256xf32>
    %27 = arith.maximumf %25, %26 : vector<8x256xf32>
    %28 = tpu.iota {dimensions = array<i32: 0>} : vector<4x8xi32>
    %29 = tpu.iota {dimensions = array<i32: 1>} : vector<4x8xi32>
    %c2_i32 = arith.constant 2 : i32
    %30 = vector.broadcast %c2_i32 : i32 to vector<4x8xi32>
    %31 = arith.muli %30, %28 : vector<4x8xi32>
    %32 = arith.cmpi eq, %29, %31 : vector<4x8xi32>
    %33 = arith.extui %32 : vector<4x8xi1> to vector<4x8xi32>
    %34 = arith.sitofp %33 : vector<4x8xi32> to vector<4x8xf32>
    %cst_22 = arith.constant dense<0.000000e+00> : vector<4x256xf32>
    %35 = tpu.matmul %34, %27, %cst_22 {dimension_numbers = #tpu.dot_dimension_numbers<[1], [0], [0], [1], [0, 0, 1, 1], [], []>} : vector<4x8xf32>, vector<8x256xf32>, vector<4x256xf32> -> vector<4x256xf32>
    %c2_i32_23 = arith.constant 2 : i32
    %36 = vector.broadcast %c2_i32_23 : i32 to vector<4x8xi32>
    %37 = arith.muli %36, %28 : vector<4x8xi32>
    %c1_i32 = arith.constant 1 : i32
    %38 = vector.broadcast %c1_i32 : i32 to vector<4x8xi32>
    %39 = arith.addi %37, %38 : vector<4x8xi32>
    %40 = arith.cmpi eq, %29, %39 : vector<4x8xi32>
    %41 = arith.extui %40 : vector<4x8xi1> to vector<4x8xi32>
    %42 = arith.sitofp %41 : vector<4x8xi32> to vector<4x8xf32>
    %cst_24 = arith.constant dense<0.000000e+00> : vector<4x256xf32>
    %43 = tpu.matmul %42, %27, %cst_24 {dimension_numbers = #tpu.dot_dimension_numbers<[1], [0], [0], [1], [0, 0, 1, 1], [], []>} : vector<4x8xf32>, vector<8x256xf32>, vector<4x256xf32> -> vector<4x256xf32>
    %44 = arith.maximumf %35, %43 : vector<4x256xf32>
    %45 = arith.truncf %44 : vector<4x256xf32> to vector<4x256xbf16>
    %c0_25 = arith.constant 0 : index
    %c0_26 = arith.constant 0 : index
    %c0_27 = arith.constant 0 : index
    %46 = vector.load %arg5[%c0_25, %c0_26, %c0_27] : memref<1x4x256xbf16, #tpu.memory_space<vmem>>, vector<1x4x256xbf16>
    %47 = vector.shape_cast %46 : vector<1x4x256xbf16> to vector<4x256xbf16>
    %48 = vector.shape_cast %45 : vector<4x256xbf16> to vector<1x4x256xbf16>
    tpu.vector_store %arg5[%c0_25, %c0_26, %c0_27], %48 {strides = array<i32>} : memref<1x4x256xbf16, #tpu.memory_space<vmem>>, vector<1x4x256xbf16>,
    return
  }
  func.func @transform_0(%arg0: i32) -> (i32, i32, i32) {
    %c0_i32 = arith.constant 0 : i32
    %c0_i32_0 = arith.constant 0 : i32
    %c0_i32_1 = arith.constant 0 : i32
    return %arg0, %c0_i32, %c0_i32_0 : i32, i32, i32
  }
  func.func @transform_1(%arg0: i32) -> (i32, i32, i32) {
    %c0_i32 = arith.constant 0 : i32
    %c0_i32_0 = arith.constant 0 : i32
    %c0_i32_1 = arith.constant 0 : i32
    %c0_i32_2 = arith.constant 0 : i32
    return %c0_i32, %c0_i32_0, %c0_i32_1 : i32, i32, i32
  }
  func.func @transform_2(%arg0: i32) -> (i32, i32) {
    %c0_i32 = arith.constant 0 : i32
    %c0_i32_0 = arith.constant 0 : i32
    %c0_i32_1 = arith.constant 0 : i32
    return %c0_i32, %c0_i32_0 : i32, i32
  }
  func.func @transform_3(%arg0: i32) -> (i32, i32) {
    %c0_i32 = arith.constant 0 : i32
    %c0_i32_0 = arith.constant 0 : i32
    %c0_i32_1 = arith.constant 0 : i32
    return %c0_i32, %c0_i32_0 : i32, i32
  }
  func.func @transform_4(%arg0: i32) -> (i32, i32, i32) {
    %c0_i32 = arith.constant 0 : i32
    %c0_i32_0 = arith.constant 0 : i32
    %c0_i32_1 = arith.constant 0 : i32
    return %arg0, %c0_i32, %c0_i32_0 : i32, i32, i32
  }
}

module attributes {stable_mosaic.version = 11 : i64} {
  func.func @_fc_fused_kernel(%arg0: i32, %arg1: memref<2x1024xbf16, #tpu.memory_space<vmem>>, %arg2: memref<1024x500xbf16, #tpu.memory_space<vmem>>, %arg3: memref<1x500xf32, #tpu.memory_space<vmem>>, %arg4: memref<500x10xf32, #tpu.memory_space<vmem>>, %arg5: memref<1x10xf32, #tpu.memory_space<vmem>>, %arg6: memref<2x10xf32, #tpu.memory_space<vmem>>) attributes {dimension_semantics = [#tpu.dimension_semantics<arbitrary>], iteration_bounds = array<i64: 1>, scalar_prefetch = 0 : i64, scratch_operands = 0 : i64, tpu.core_type = #tpu.core_type<tc>, window_params = [{pipeline_mode = #tpu.pipeline_mode<synchronous>, transform_indices = @transform_0, window_bounds = array<i64: 2, 1024>}, {pipeline_mode = #tpu.pipeline_mode<synchronous>, transform_indices = @transform_1, window_bounds = array<i64: 1024, 500>}, {pipeline_mode = #tpu.pipeline_mode<synchronous>, transform_indices = @transform_2, window_bounds = array<i64: 1, 500>}, {pipeline_mode = #tpu.pipeline_mode<synchronous>, transform_indices = @transform_3, window_bounds = array<i64: 500, 10>}, {pipeline_mode = #tpu.pipeline_mode<synchronous>, transform_indices = @transform_4, window_bounds = array<i64: 1, 10>}, {pipeline_mode = #tpu.pipeline_mode<synchronous>, transform_indices = @transform_5, window_bounds = array<i64: 2, 10>}]} {
    %c0 = arith.constant 0 : index
    %c0_0 = arith.constant 0 : index
    %0 = vector.load %arg1[%c0, %c0_0] : memref<2x1024xbf16, #tpu.memory_space<vmem>>, vector<2x1024xbf16>
    %c0_1 = arith.constant 0 : index
    %c0_2 = arith.constant 0 : index
    %1 = vector.load %arg2[%c0_1, %c0_2] : memref<1024x500xbf16, #tpu.memory_space<vmem>>, vector<1024x500xbf16>
    %cst = arith.constant dense<0.000000e+00> : vector<2x500xf32>
    %2 = tpu.matmul %0, %1, %cst {dimension_numbers = #tpu.dot_dimension_numbers<[1], [0], [0], [1], [0, 0, 1, 1], [], []>} : vector<2x1024xbf16>, vector<1024x500xbf16>, vector<2x500xf32> -> vector<2x500xf32>
    %c0_3 = arith.constant 0 : index
    %c0_4 = arith.constant 0 : index
    %3 = vector.load %arg3[%c0_3, %c0_4] : memref<1x500xf32, #tpu.memory_space<vmem>>, vector<1x500xf32>
    %4 = vector.broadcast %3 : vector<1x500xf32> to vector<2x500xf32>
    %5 = arith.addf %2, %4 : vector<2x500xf32>
    %c0_5 = arith.constant 0 : index
    %c0_6 = arith.constant 0 : index
    %6 = vector.load %arg4[%c0_5, %c0_6] : memref<500x10xf32, #tpu.memory_space<vmem>>, vector<500x10xf32>
    %cst_7 = arith.constant dense<0.000000e+00> : vector<2x10xf32>
    %7 = tpu.matmul %5, %6, %cst_7 {dimension_numbers = #tpu.dot_dimension_numbers<[1], [0], [0], [1], [0, 0, 1, 1], [], []>} : vector<2x500xf32>, vector<500x10xf32>, vector<2x10xf32> -> vector<2x10xf32>
    %c0_8 = arith.constant 0 : index
    %c0_9 = arith.constant 0 : index
    %8 = vector.load %arg5[%c0_8, %c0_9] : memref<1x10xf32, #tpu.memory_space<vmem>>, vector<1x10xf32>
    %9 = vector.broadcast %8 : vector<1x10xf32> to vector<2x10xf32>
    %10 = arith.addf %7, %9 : vector<2x10xf32>
    %c0_10 = arith.constant 0 : index
    %c0_11 = arith.constant 0 : index
    %11 = vector.load %arg6[%c0_10, %c0_11] : memref<2x10xf32, #tpu.memory_space<vmem>>, vector<2x10xf32>
    tpu.vector_store %arg6[%c0_10, %c0_11], %10 {strides = array<i32>} : memref<2x10xf32, #tpu.memory_space<vmem>>, vector<2x10xf32>,
    return
  }
  func.func @transform_0(%arg0: i32) -> (i32, i32) {
    %c0_i32 = arith.constant 0 : i32
    %c0_i32_0 = arith.constant 0 : i32
    %c0_i32_1 = arith.constant 0 : i32
    return %c0_i32, %c0_i32_0 : i32, i32
  }
  func.func @transform_1(%arg0: i32) -> (i32, i32) {
    %c0_i32 = arith.constant 0 : i32
    %c0_i32_0 = arith.constant 0 : i32
    %c0_i32_1 = arith.constant 0 : i32
    return %c0_i32, %c0_i32_0 : i32, i32
  }
  func.func @transform_2(%arg0: i32) -> (i32, i32) {
    %c0_i32 = arith.constant 0 : i32
    %c0_i32_0 = arith.constant 0 : i32
    %c0_i32_1 = arith.constant 0 : i32
    return %c0_i32, %c0_i32_0 : i32, i32
  }
  func.func @transform_3(%arg0: i32) -> (i32, i32) {
    %c0_i32 = arith.constant 0 : i32
    %c0_i32_0 = arith.constant 0 : i32
    %c0_i32_1 = arith.constant 0 : i32
    return %c0_i32, %c0_i32_0 : i32, i32
  }
  func.func @transform_4(%arg0: i32) -> (i32, i32) {
    %c0_i32 = arith.constant 0 : i32
    %c0_i32_0 = arith.constant 0 : i32
    %c0_i32_1 = arith.constant 0 : i32
    return %c0_i32, %c0_i32_0 : i32, i32
  }
  func.func @transform_5(%arg0: i32) -> (i32, i32) {
    %c0_i32 = arith.constant 0 : i32
    %c0_i32_0 = arith.constant 0 : i32
    %c0_i32_1 = arith.constant 0 : i32
    return %c0_i32, %c0_i32_0 : i32, i32
  }
}

</mosaic_0001>

<bundles_post_ra>
// kernel: net_forward.4
= control target key start
LH: loop header
LB: loop body
LE: loop exit
PB: predicated region body
PF: predicated region fallthrough
CT: control target
= control target key end

     0   :  { %s1866_s15 = smov 0   ;;  %s2257_s0 = inlined_call_operand.vmem [shape: bf16[2,34,102], index: 0, kind: input, shape index: {}]   ;;  %s2258_s1 = inlined_call_operand.vmem [shape: bf16[3,102,512], index: 1, kind: input, shape index: {}]   ;;  %s2259_s2 = inlined_call_operand.vmem [shape: f32[1,512], index: 2, kind: input, shape index: {}]   ;;  %s2260_s3 = inlined_call_operand.vmem [shape: f32[1,512], index: 3, kind: input, shape index: {}]   ;;  %s2261_s4 = inlined_call_operand.vmem [shape: bf16[2,16,256], index: 4, kind: output, shape index: {}]  }
   0x1 LB: > { %s1467_s16 = sadd.s32 4294967295, %s1837_s15   ;;  %p1471_p0 = scmp.ge.s32.totalorder %s1837_s15, 1  ;;  %s1837_s15 = sphi %s1866_s15, %s14_s15  }
   0x2   : > { %p162_p1 = scmp.lt.s32.totalorder %s1837_s15, 3 }
   0x4   : > { %p163_p2 = pnand %p1471_p0, %p162_p1 }
   0x5   : > { %v1707_v0 = vld [vmem:[%s2258_s1 + $0xd4] ss:$16 sps:$4 sm:$0xff] (!%p163_p2)   ;;  %v1709_v1 = vld [vmem:[%s2258_s1 + $0xdc] ss:$16 sps:$4 sm:$0xff] (!%p163_p2)   ;;  %v1839_v2 = vmov (!%p163_p2), 0   ;;  %p188_p3 = scmp.lt.s32.totalorder (!%p163_p2), %s1467_s16, 1 }
   0x6   : > { %166 = sbr.rel (%p163_p2) target bundleno = 551 (0x227), region = 36  ;;  %473 = vmatprep.mubr.bf16.mxu0 (!%p163_p2), %v1839_v2  ;;  %526 = vmatprep.mubr.bf16.mxu1 (!%p163_p2), %v1839_v2  ;;  %v1711_v3 = vld [vmem:[%s2258_s1 + $0xd0] ss:$16 sps:$4 sm:$0xff] (!%p163_p2)   ;;  %v1712_v4 = vld [vmem:[%s2258_s1 + $0xd8] ss:$16 sps:$4 sm:$0xff] (!%p163_p2)   ;;  %vm428_vm0 = vcmask (!%p163_p2), 1042432  }
   0x7   : > { %441 = vmatprep.subr.bf16.mxu0 (!%p163_p2), %v1707_v0  ;;  %494 = vmatprep.subr.bf16.mxu1 (!%p163_p2), %v1709_v1  ;;  %v1713_v5 = vld [vmem:[%s2258_s1 + $0xf4] ss:$16 sps:$4 sm:$0xff] (!%p163_p2)   ;;  %v1715_v6 = vld [vmem:[%s2258_s1 + $0xfc] ss:$16 sps:$4 sm:$0xff] (!%p163_p2)   ;;  %v1717_v7 = vld [vmem:[%s2258_s1 + $0xf0] ss:$16 sps:$4 sm:$0xff] (!%p163_p2)  }
   0x8   : > { %442 = vmatpush1.bf16.msra.mxu0 (!%p163_p2), %v1711_v3  ;;  %495 = vmatpush1.bf16.msra.mxu1 (!%p163_p2), %v1712_v4  ;;  %v1718_v8 = vld [vmem:[%s2258_s1 + $0xf8] ss:$16 sps:$4 sm:$0xff] (!%p163_p2)   ;;  %v1719_v9 = vld [vmem:[%s2258_s1 + $0x114] ss:$16 sps:$4 sm:$0xff] (!%p163_p2)   ;;  %v1721_v10 = vld [vmem:[%s2258_s1 + $0x11c] ss:$16 sps:$4 sm:$0xff] (!%p163_p2)  }
   0x9   : > { %443 = vmatprep.subr.bf16.mxu0 (!%p163_p2), %v1713_v5  ;;  %496 = vmatprep.subr.bf16.mxu1 (!%p163_p2), %v1715_v6  ;;  %v1723_v11 = vld [vmem:[%s2258_s1 + $0x110] ss:$16 sps:$4 sm:$0xff] (!%p163_p2)   ;;  %v1724_v12 = vld [vmem:[%s2258_s1 + $0x118] ss:$16 sps:$4 sm:$0xff] (!%p163_p2)   ;;  %v1725_v13 = vld [vmem:[%s2258_s1 + $0x134] ss:$16 sps:$4 sm:$0xff] (!%p163_p2)  }
   0xa   : > { %v1727_v14 = vld [vmem:[%s2258_s1 + $0x13c] ss:$16 sps:$4 sm:$0xff] (!%p163_p2)   ;;  %v1729_v15 = vld [vmem:[%s2258_s1 + $0x130] ss:$16 sps:$4 sm:$0xff] (!%p163_p2)   ;;  %v1730_v16 = vld [vmem:[%s2258_s1 + $0x138] ss:$16 sps:$4 sm:$0xff] (!%p163_p2)  }
   0xb   : > { %v1731_v17 = vld [vmem:[%s2258_s1 + $0x154] ss:$16 sps:$4 sm:$0xff] (!%p163_p2)   ;;  %v1733_v18 = vld [vmem:[%s2258_s1 + $0x15c] ss:$16 sps:$4 sm:$0xff] (!%p163_p2)   ;;  %v1735_v19 = vld [vmem:[%s2258_s1 + $0x150] ss:$16 sps:$4 sm:$0xff] (!%p163_p2)  }
   0xc   : > { %444 = vmatpush1.bf16.msra.mxu0 (!%p163_p2), %v1717_v7  ;;  %497 = vmatpush1.bf16.msra.mxu1 (!%p163_p2), %v1718_v8  ;;  %v1736_v20 = vld [vmem:[%s2258_s1 + $0x158] ss:$16 sps:$4 sm:$0xff] (!%p163_p2)   ;;  %v1737_v21 = vld [vmem:[%s2258_s1 + $0x174] ss:$16 sps:$4 sm:$0xff] (!%p163_p2)   ;;  %v1739_v22 = vld [vmem:[%s2258_s1 + $0x17c] ss:$16 sps:$4 sm:$0xff] (!%p163_p2)  }
   0xd   : > { %s2263_s16 = smov (!%p188_p3, %s1467_s16), 1  ;;  %445 = vmatprep.subr.bf16.mxu0 %v1719_v9  ;;  %498 = vmatprep.subr.bf16.mxu1 %v1721_v10  ;;  %v1499_v23 = vld [vmem:[%s2258_s1 + $0x190] sm:$0x77]  ;;  %v1500_v24 = vld [vmem:[%s2258_s1 + $0x198] sm:$0x77]  ;;  %vm421_vm2 = vcmask 834560  }
   0xe   : > { %s1696_s27 = smul.u32 20, %s2263_s16  ;;  %v1741_v25 = vld [vmem:[%s2258_s1 + $0x170] ss:$16 sps:$4 sm:$0xff]   ;;  %v1742_v26 = vld [vmem:[%s2258_s1 + $0x178] ss:$16 sps:$4 sm:$0xff]   ;;  %v1529_v29 = vcombine.high %v1499_v23, %v1499_v23  ;;  %v1531_v30 = vcombine.high %v1500_v24, %v1500_v24  ;;  %v1528_v32 = vcombine.low %v1499_v23, %v1499_v23  ;;  %v1530_v33 = vcombine.low %v1500_v24, %v1500_v24  ;;  %s1645_s17 = sshll.u32 %s2263_s16, 4 }
   0xf   : > { %v1749_v38 = vld [vmem:[%s2258_s1 + $0x4] ss:$16 sps:$4 sm:$0xff]   ;;  %v1752_v39 = vld [vmem:[%s2258_s1 + $0xc] ss:$16 sps:$4 sm:$0xff]   ;;  %vm270_vm1 = vsmask.f32 7424  ;;  %s197_s20 = scalar_lea.vmem %s2261_s4, %s1645_s17 }
  0x10   : > { %446 = vmatpush1.bf16.msra.mxu0 %v1723_v11  ;;  %499 = vmatpush1.bf16.msra.mxu1 %v1724_v12  ;;  %s1952_s14 = scalar_lea.vmem %s2257_s0, %s1696_s27  ;;  %v430_v40 = vsel %vm428_vm0, %v1528_v32, 0  ;;  %v436_v41 = vsel %vm428_vm0, %v1530_v33, 0  ;;  %v1747_v44 = vld [vmem:[%s2258_s1] ss:$16 sps:$4 sm:$0xff]   ;;  %v1750_v45 = vld [vmem:[%s2258_s1 + $0x8] ss:$16 sps:$4 sm:$0xff]  }
  0x11   : > { %447 = vmatprep.subr.bf16.mxu0 %v1725_v13  ;;  %500 = vmatprep.subr.bf16.mxu1 %v1727_v14  ;;  %v199_v27 = vld [vmem:[%s1952_s14] sm:$0xf]  ;;  %v1968_v28 = vld [vmem:[%s1952_s14 + $0x8] sm:$0xff]   ;;  %v1971_v31 = vld [vmem:[%s1952_s14 + $0x4] sm:$0xf]  ;;  %vm830_vm3 = vcmask 1046528  }
  0x12   : > { %v1974_v34 = vcombine.low %v199_v27, %v1971_v31  ;;  %v279_v35 = vshll.u32 %v1968_v28, 16  ;;  %v1757_v47 = vld [vmem:[%s2258_s1 + $0x24] ss:$16 sps:$4 sm:$0xff]   ;;  %v1760_v49 = vld [vmem:[%s2258_s1 + $0x2c] ss:$16 sps:$4 sm:$0xff]   ;;  %v283_v54 = vshrl.u32 %v1968_v28, 16 }
  0x13   : > { %v1755_v50 = vld [vmem:[%s2258_s1 + $0x20] ss:$16 sps:$4 sm:$0xff]   ;;  %v1758_v51 = vld [vmem:[%s2258_s1 + $0x28] ss:$16 sps:$4 sm:$0xff]   ;;  %v1763_v52 = vld [vmem:[%s2258_s1 + $0x44] ss:$16 sps:$4 sm:$0xff]  }
  0x14   : > { %448 = vmatpush1.bf16.msra.mxu0 %v1729_v15  ;;  %501 = vmatpush1.bf16.msra.mxu1 %v1730_v16  ;;  %v272_v36 = vshrl.u32 %v1974_v34, 16  ;;  %v274_v37 = vshll.u32 %v1974_v34, 16  ;;  %v281_v43 = vrot.slane %v279_v35, 1  ;;  %v1766_v53 = vld [vmem:[%s2258_s1 + $0x4c] ss:$16 sps:$4 sm:$0xff]   ;;  %vm1219_vm6 = vcmask 261120  }
  0x15   : > { %449 = vmatprep.subr.bf16.mxu0 %v1731_v17  ;;  %502 = vmatprep.subr.bf16.mxu1 %v1733_v18  ;;  %v1761_v55 = vld [vmem:[%s2258_s1 + $0x40] ss:$16 sps:$4 sm:$0xff]   ;;  %v1764_v57 = vld [vmem:[%s2258_s1 + $0x48] ss:$16 sps:$4 sm:$0xff]   ;;  %v1769_v58 = vld [vmem:[%s2258_s1 + $0x64] ss:$16 sps:$4 sm:$0xff]  }
  0x16   : > { %v276_v42 = vrot.slane %v274_v37, 1  ;;  %v2023_v56 = vld [vmem:[%s1952_s14 + $0x10] ss:$0 sps:$4 sm:$0x11]   ;;  %v1772_v59 = vld [vmem:[%s2258_s1 + $0x6c] ss:$16 sps:$4 sm:$0xff]   ;;  %v285_v60 = vor.u32 %v283_v54, %v281_v43 }
  0x17   : > { %v287_v61 = vshll.u32 %v2023_v56, 16  ;;  %v1767_v62 = vld [vmem:[%s2258_s1 + $0x60] ss:$16 sps:$4 sm:$0xff]   ;;  %v1770_v0 = vld [vmem:[%s2258_s1 + $0x68] ss:$16 sps:$4 sm:$0xff]   ;;  %v832_v54 = vrot.slane %v1968_v28, 1 }
  0x18   : > { %450 = vmatpush1.bf16.msra.mxu0 %v1735_v19  ;;  %503 = vmatpush1.bf16.msra.mxu1 %v1736_v20  ;;  %v277_v46 = vor.u32 %v276_v42, %v272_v36  ;;  %v1775_v1 = vld [vmem:[%s2258_s1 + $0x84] ss:$16 sps:$4 sm:$0xff]   ;;  %v1778_v3 = vld [vmem:[%s2258_s1 + $0x8c] ss:$16 sps:$4 sm:$0xff]   ;;  %v1773_v5 = vld [vmem:[%s2258_s1 + $0x80] ss:$16 sps:$4 sm:$0xff]  }
  0x19   : > { %451 = vmatprep.subr.bf16.mxu0 %v1737_v21  ;;  %504 = vmatprep.subr.bf16.mxu1 %v1739_v22  ;;  %v289_v63 = vrot.slane %v287_v61, 1  ;;  %v1776_v6 = vld [vmem:[%s2258_s1 + $0x88] ss:$16 sps:$4 sm:$0xff]   ;;  %v1781_v7 = vld [vmem:[%s2258_s1 + $0xa4] ss:$16 sps:$4 sm:$0xff]  }
  0x1a   : > { %v282_v48 = vsel %vm270_vm1, %v277_v46, %v281_v43  ;;  %v1784_v8 = vld [vmem:[%s2258_s1 + $0xac] ss:$16 sps:$4 sm:$0xff]   ;;  %v227_v9 = vld [vmem:[%s2258_s1 + $0xc0] sm:$0x77]  ;;  %v1782_v12 = vld [vmem:[%s2258_s1 + $0xa8] ss:$16 sps:$4 sm:$0xff]  }
  0x1b   : > { %v290_v4 = vsel %vm270_vm1, %v285_v60, %v289_v63  ;;  %v228_v10 = vld [vmem:[%s2258_s1 + $0xc8] sm:$0x77]  ;;  %v1779_v11 = vld [vmem:[%s2258_s1 + $0xa0] ss:$16 sps:$4 sm:$0xff]   ;;  %v1563_v13 = vcombine.high %v227_v9, %v227_v9  ;;  %v1562_v15 = vcombine.low %v227_v9, %v227_v9  ;;  %v1792_v19 = vld [vmem:[%s2258_s1 + $0x1a4] ss:$16 sps:$4 sm:$0xff]   ;;  %v1108_v60 = vlaneseq }
  0x1c   : > { %452 = vmatpush1.bf16.msra.mxu0 %v1741_v25  ;;  %505 = vmatpush1.bf16.msra.mxu1 %v1742_v26  ;;  %v1565_v14 = vcombine.high %v228_v10, %v228_v10  ;;  %v1564_v16 = vcombine.low %v228_v10, %v228_v10  ;;  %v1795_v20 = vld [vmem:[%s2258_s1 + $0x1ac] ss:$16 sps:$4 sm:$0xff]   ;;  %v1790_v21 = vld [vmem:[%s2258_s1 + $0x1a0] ss:$16 sps:$4 sm:$0xff]   ;;  %v1793_v22 = vld [vmem:[%s2258_s1 + $0x1a8] ss:$16 sps:$4 sm:$0xff]  }
  0x1d   : > { %1532 = vmatprep.subr.msk.bf16.mxu0 %vm428_vm0, %v1529_v29  ;;  %1535 = vmatprep.subr.msk.bf16.mxu1 %vm428_vm0, %v1531_v30  ;;  %v682_v17 = vsel %vm428_vm0, %v1562_v15, 0  ;;  %v1798_v23 = vld [vmem:[%s2258_s1 + $0x1c4] ss:$16 sps:$4 sm:$0xff]   ;;  %v1801_v24 = vld [vmem:[%s2258_s1 + $0x1cc] ss:$16 sps:$4 sm:$0xff]   ;;  %v2187_v61 = vshrl.u32 %v1108_v60, 7 }
  0x1e   : > { %v688_v18 = vsel %vm428_vm0, %v1564_v16, 0  ;;  %v1796_v25 = vld [vmem:[%s2258_s1 + $0x1c0] ss:$16 sps:$4 sm:$0xff]   ;;  %v1799_v26 = vld [vmem:[%s2258_s1 + $0x1c8] ss:$16 sps:$4 sm:$0xff]  }
  0x1f   : > { %v1804_v27 = vld [vmem:[%s2258_s1 + $0x1e4] ss:$16 sps:$4 sm:$0xff]   ;;  %v1807_v29 = vld [vmem:[%s2258_s1 + $0x1ec] ss:$16 sps:$4 sm:$0xff]   ;;  %v1802_v30 = vld [vmem:[%s2258_s1 + $0x1e0] ss:$16 sps:$4 sm:$0xff]  }
  0x20   : > { %454 = vmatpush1.bf16.msra.mxu0 %v430_v40  ;;  %507 = vmatpush1.bf16.msra.mxu1 %v436_v41  ;;  %v1805_v32 = vld [vmem:[%s2258_s1 + $0x1e8] ss:$16 sps:$4 sm:$0xff]   ;;  %v1810_v33 = vld [vmem:[%s2258_s1 + $0x204] ss:$16 sps:$4 sm:$0xff]   ;;  %v1808_v35 = vld [vmem:[%s2258_s1 + $0x200] ss:$16 sps:$4 sm:$0xff]  }
  0x21   : > { %693 = vmatprep.subr.bf16.mxu0 %v1749_v38  ;;  %746 = vmatprep.subr.bf16.mxu1 %v1752_v39  ;;  %v1811_v36 = vld [vmem:[%s2258_s1 + $0x208] ss:$16 sps:$4 sm:$0xff]   ;;  %v1816_v37 = vld [vmem:[%s2258_s1 + $0x224] ss:$16 sps:$4 sm:$0xff]   ;;  %v1819_v38 = vld [vmem:[%s2258_s1 + $0x22c] ss:$16 sps:$4 sm:$0xff]  }
  0x22   : > { %v1814_v39 = vld [vmem:[%s2258_s1 + $0x220] ss:$16 sps:$4 sm:$0xff]   ;;  %v1817_v40 = vld [vmem:[%s2258_s1 + $0x228] ss:$16 sps:$4 sm:$0xff]   ;;  %v1822_v41 = vld [vmem:[%s2258_s1 + $0x244] ss:$16 sps:$4 sm:$0xff]  }
  0x23   : > { %1533 = vmatmul.mubr.msk.bf16.vlgmr.msra.gmra.mrb[0].mxu0 %vm421_vm2, %v282_v48  ;;  %1536 = vmatmul.mubr.msk.bf16.vlgmr.msra.gmra.mrb[0].mxu1 %vm421_vm2, %v282_v48  ;;  %v1825_v42 = vld [vmem:[%s2258_s1 + $0x24c] ss:$16 sps:$4 sm:$0xff]   ;;  %v1596_v43 = vld [vmem:[%s2258_s1 + $0x260] sm:$0x77]  ;;  %v1114_v63 = vsub.s32 1, %v2187_v61 }
  0x24   : > { %694 = vmatpush1.bf16.msra.mxu0 %v1747_v44  ;;  %747 = vmatpush1.bf16.msra.mxu1 %v1750_v45  ;;  %v799_v44 = vld [vmem:[%s1952_s14] sm:$0xe]  ;;  %v1597_v45 = vld [vmem:[%s2258_s1 + $0x268] sm:$0x77]  ;;  %v1624_v48 = vcombine.high %v1596_v43, %v1596_v43 }
  0x25   : > { %695 = vmatprep.subr.bf16.mxu0 %v1757_v47  ;;  %748 = vmatprep.subr.bf16.mxu1 %v1760_v49  ;;  %v1820_v46 = vld [vmem:[%s2258_s1 + $0x240] ss:$16 sps:$4 sm:$0xff]   ;;  %v1823_v47 = vld [vmem:[%s2258_s1 + $0x248] ss:$16 sps:$4 sm:$0xff]   ;;  %v1598_v49 = vcombine.low %v799_v44, %v1971_v31 }
  0x26   : > { %483 = vmatprep.mubr.bf16.mxu0 %v1839_v2  ;;  %536 = vmatprep.mubr.bf16.mxu1 %v1839_v2 }
  0x28   : > { %696 = vmatpush1.bf16.msra.mxu0 %v1755_v50  ;;  %749 = vmatpush1.bf16.msra.mxu1 %v1758_v51  ;;  %v1626_v50 = vcombine.high %v1597_v45, %v1597_v45  ;;  %v1623_v51 = vcombine.low %v1596_v43, %v1596_v43 }
  0x29   : > { %697 = vmatprep.subr.bf16.mxu0 %v1763_v52  ;;  %750 = vmatprep.subr.bf16.mxu1 %v1766_v53  ;;  %v1625_v52 = vcombine.low %v1597_v45, %v1597_v45  ;;  %v831_v53 = vrot.slane %v1598_v49, 1 }
  0x2b   : > { %1534 = vmatmul.mubr.msk.bf16.gmra.mrb[4].mxu0 %vm421_vm2, %v290_v4  ;;  %1537 = vmatmul.mubr.msk.bf16.gmra.mrb[4].mxu1 %vm421_vm2, %v290_v4  ;;  %v833_v31 = vsel %vm830_vm3, %v831_v53, %v832_v54 }
  0x2c   : > { %698 = vmatpush1.bf16.msra.mxu0 %v1761_v55  ;;  %751 = vmatpush1.bf16.msra.mxu1 %v1764_v57  ;;  %v973_v55 = vsel %vm428_vm0, %v1623_v51, 0  ;;  %v979_v57 = vsel %vm428_vm0, %v1625_v52, 0 }
  0x2d   : > { %699 = vmatprep.subr.bf16.mxu0 %v1769_v58  ;;  %752 = vmatprep.subr.bf16.mxu1 %v1772_v59  ;;  %v1840_v59 = vmov 0.0  }
  0x2e   : > { %725 = vmatprep.mubr.bf16.mxu0 %v1839_v2  ;;  %778 = vmatprep.mubr.bf16.mxu1 %v1839_v2 }
  0x30   : > { %700 = vmatpush1.bf16.msra.mxu0 %v1767_v62  ;;  %753 = vmatpush1.bf16.msra.mxu1 %v1770_v0  ;;  %v1110_v62 = vsub.s32 0, %v2187_v61  ;;  %v1122_v0 = vsub.s32 3, %v2187_v61 }
  0x31   : > { %701 = vmatprep.subr.bf16.mxu0 %v1775_v1  ;;  %754 = vmatprep.subr.bf16.mxu1 %v1778_v3  ;;  %v1144_v1 = vld [vmem:[%s2260_s3] sm:$0xf] }
  0x34   : > { %702 = vmatpush1.bf16.msra.mxu0 %v1773_v5  ;;  %755 = vmatpush1.bf16.msra.mxu1 %v1776_v6 }
  0x35   : > { %703 = vmatprep.subr.bf16.mxu0 %v1781_v7  ;;  %756 = vmatprep.subr.bf16.mxu1 %v1784_v8  ;;  %v2205_v7 = vrot.slane %v1144_v1, %v1110_v62 }
  0x38   : > { %704 = vmatpush1.bf16.msra.mxu0 %v1779_v11  ;;  %757 = vmatpush1.bf16.msra.mxu1 %v1782_v12  ;;  %v2209_v11 = vrot.slane %v1144_v1, %v1114_v63  ;;  %v2211_v12 = vrot.slane %v1144_v1, %v1122_v0 }
  0x39   : > { %1566 = vmatprep.subr.msk.bf16.mxu0 %vm428_vm0, %v1563_v13  ;;  %1569 = vmatprep.subr.msk.bf16.mxu1 %vm428_vm0, %v1565_v14 }
  0x3c   : > { %706 = vmatpush1.bf16.msra.mxu0 %v682_v17  ;;  %759 = vmatpush1.bf16.msra.mxu1 %v688_v18 }
  0x3d   : > { %984 = vmatprep.subr.bf16.mxu0 %v1792_v19  ;;  %1037 = vmatprep.subr.bf16.mxu1 %v1795_v20 }
  0x3f   : > { %1567 = vmatmul.mubr.msk.bf16.vlgmr.msra.gmra.mrb[0].mxu0 %vm421_vm2, %v1974_v34  ;;  %1570 = vmatmul.mubr.msk.bf16.vlgmr.msra.gmra.mrb[0].mxu1 %vm421_vm2, %v1974_v34  ;;  %v1813_v34 = vld [vmem:[%s2258_s1 + $0x20c] ss:$16 sps:$4 sm:$0xff]  }
  0x40   : > { %985 = vmatpush1.bf16.msra.mxu0 %v1790_v21  ;;  %1038 = vmatpush1.bf16.msra.mxu1 %v1793_v22 }
  0x41   : > { %986 = vmatprep.subr.bf16.mxu0 %v1798_v23  ;;  %1039 = vmatprep.subr.bf16.mxu1 %v1801_v24 }
  0x42   : > { %735 = vmatprep.mubr.bf16.mxu0 %v1839_v2  ;;  %788 = vmatprep.mubr.bf16.mxu1 %v1839_v2 }
  0x44   : > { %987 = vmatpush1.bf16.msra.mxu0 %v1796_v25  ;;  %1040 = vmatpush1.bf16.msra.mxu1 %v1799_v26 }
  0x45   : > { %988 = vmatprep.subr.bf16.mxu0 %v1804_v27  ;;  %1041 = vmatprep.subr.bf16.mxu1 %v1807_v29 }
  0x47   : > { %1568 = vmatmul.mubr.msk.bf16.gmra.mrb[4].mxu0 %vm421_vm2, %v1968_v28  ;;  %1571 = vmatmul.mubr.msk.bf16.gmra.mrb[4].mxu1 %vm421_vm2, %v1968_v28  ;;  %v834_v28 = vrot.slane %v2023_v56, 1  ;;  %v1106_v56 = vld [vmem:[%s2259_s2] sm:$0xf] }
  0x48   : > { %989 = vmatpush1.bf16.msra.mxu0 %v1802_v30  ;;  %1042 = vmatpush1.bf16.msra.mxu1 %v1805_v32  ;;  %v1111_v3 = vrot.slane %v1106_v56, %v1110_v62  ;;  %v2201_v5 = vrot.slane %v1106_v56, %v1114_v63  ;;  %v2203_v6 = vrot.slane %v1106_v56, %v1122_v0  ;;  %v1208_v62 = vadd.s32 8, %v2187_v61 }
  0x49   : > { %990 = vmatprep.subr.bf16.mxu0 %v1810_v33  ;;  %1043 = vmatprep.subr.bf16.mxu1 %v1813_v34  ;;  %v835_v58 = vsel %vm830_vm3, %v832_v54, %v834_v28  ;;  %v1211_v54 = vmul.u32 2, %v2187_v61 }
  0x4a   : > { %1016 = vmatprep.mubr.bf16.mxu0 %v1839_v2  ;;  %1069 = vmatprep.mubr.bf16.mxu1 %v1839_v2 }
  0x4c   : > { %991 = vmatpush1.bf16.msra.mxu0 %v1808_v35  ;;  %1044 = vmatpush1.bf16.msra.mxu1 %v1811_v36 }
  0x4d   : > { %992 = vmatprep.subr.bf16.mxu0 %v1816_v37  ;;  %1045 = vmatprep.subr.bf16.mxu1 %v1819_v38 }
  0x50   : > { %993 = vmatpush1.bf16.msra.mxu0 %v1814_v39  ;;  %1046 = vmatpush1.bf16.msra.mxu1 %v1817_v40 }
  0x51   : > { %994 = vmatprep.subr.bf16.mxu0 %v1822_v41  ;;  %1047 = vmatprep.subr.bf16.mxu1 %v1825_v42 }
  0x54   : > { %995 = vmatpush1.bf16.msra.mxu0 %v1820_v46  ;;  %1048 = vmatpush1.bf16.msra.mxu1 %v1823_v47 }
  0x55   : > { %1627 = vmatprep.subr.msk.bf16.mxu0 %vm428_vm0, %v1624_v48  ;;  %1630 = vmatprep.subr.msk.bf16.mxu1 %vm428_vm0, %v1626_v50 }
  0x58   : > { %997 = vmatpush1.bf16.msra.mxu0 %v973_v55  ;;  %1050 = vmatpush1.bf16.msra.mxu1 %v979_v57 }
  0x5b   : > { %1628 = vmatmul.mubr.msk.bf16.vlgmr.msra.gmra.mrb[0].mxu0 %vm421_vm2, %v833_v31  ;;  %1631 = vmatmul.mubr.msk.bf16.vlgmr.msra.gmra.mrb[0].mxu1 %vm421_vm2, %v833_v31 }
  0x5c   : > { %1026 = vmatprep.mubr.bf16.mxu0 %v1839_v2  ;;  %1079 = vmatprep.mubr.bf16.mxu1 %v1839_v2  ;;  %v1118_v2 = vsub.s32 2, %v2187_v61 }
  0x5e   : > { %v2199_v4 = vrot.slane %v1106_v56, %v1118_v2  ;;  %v2207_v8 = vrot.slane %v1144_v1, %v1118_v2 }
  0x63   : > { %1629 = vmatmul.mubr.msk.bf16.gmra.mrb[4].mxu0 %vm421_vm2, %v835_v58  ;;  %1632 = vmatmul.mubr.msk.bf16.gmra.mrb[4].mxu1 %vm421_vm2, %v835_v58 }
  0x64   : > { %1290 = vmatprep.mubr.f32.mxu0 %v1840_v59  ;;  %1381 = vmatprep.mubr.f32.mxu1 %v1840_v59 }
 0x12e   : > { %v1018_v9 = vpop.f32.mrb[0].mxu0  ;;  %v1071_v10 = vpop.f32.mrb[0].mxu1 }
 0x12f   : > { %v1128_v13 = vmul.f32 %v1111_v3, %v1018_v9  ;;  %v1130_v14 = vmul.f32 %v2199_v4, %v1071_v10  ;;  %v1020_v15 = vpop.f32.mrb[1].mxu0  ;;  %v1073_v16 = vpop.f32.mrb[1].mxu1 }
 0x130   : > { %v1129_v17 = vmul.f32 %v2201_v5, %v1020_v15  ;;  %v1131_v18 = vmul.f32 %v2203_v6, %v1073_v16  ;;  %v1022_v19 = vpop.f32.mrb[2].mxu0  ;;  %v1075_v20 = vpop.f32.mrb[2].mxu1 }
 0x131   : > { %v1166_v21 = vadd.f32 %v2205_v7, %v1128_v13  ;;  %v1168_v22 = vadd.f32 %v2207_v8, %v1130_v14  ;;  %v1132_v23 = vmul.f32 %v1111_v3, %v1022_v19  ;;  %v1134_v24 = vmul.f32 %v2199_v4, %v1075_v20  ;;  %v1024_v25 = vpop.f32.mrb[3].mxu0  ;;  %v1077_v26 = vpop.f32.mrb[3].mxu1 }
 0x132   : > { %v1167_v27 = vadd.f32 %v2209_v11, %v1129_v17  ;;  %v1169_v29 = vadd.f32 %v2211_v12, %v1131_v18  ;;  %v1133_v30 = vmul.f32 %v2201_v5, %v1024_v25  ;;  %v1135_v32 = vmul.f32 %v2203_v6, %v1077_v26 }
 0x133   : > { %v1182_v33 = vmax.f32 %v1166_v21, 0.0  ;;  %v1184_v34 = vmax.f32 %v1168_v22, 0.0  ;;  %v1170_v35 = vadd.f32 %v2205_v7, %v1132_v23  ;;  %v1172_v36 = vadd.f32 %v2207_v8, %v1134_v24 }
 0x134   : > { %v1183_v37 = vmax.f32 %v1167_v27, 0.0  ;;  %v1185_v38 = vmax.f32 %v1169_v29, 0.0  ;;  %v1171_v39 = vadd.f32 %v2209_v11, %v1133_v30  ;;  %v1173_v40 = vadd.f32 %v2211_v12, %v1135_v32 }
 0x135   : > { %v1198_v41 = vmax.f32 %v1182_v33, %v1184_v34  ;;  %v1186_v42 = vmax.f32 %v1170_v35, 0.0  ;;  %v1188_v43 = vmax.f32 %v1172_v36, 0.0  ;;  %v1212_v29 = vmul.u32 2, %v1208_v62 }
 0x136   : > { %v1199_v44 = vmax.f32 %v1183_v37, %v1185_v38  ;;  %v1187_v45 = vmax.f32 %v1171_v39, 0.0  ;;  %v1189_v46 = vmax.f32 %v1173_v40, 0.0  ;;  %v1028_v47 = vpop.f32.mrb[4].mxu0  ;;  %v1081_v48 = vpop.f32.mrb[4].mxu1 }
 0x137   : > { %v1200_v49 = vmax.f32 %v1186_v42, %v1188_v43  ;;  %v1136_v50 = vmul.f32 %v1111_v3, %v1028_v47  ;;  %v1138_v51 = vmul.f32 %v2199_v4, %v1081_v48  ;;  %v1030_v52 = vpop.f32.mrb[5].mxu0  ;;  %v1083_v53 = vpop.f32.mrb[5].mxu1 }
 0x138   : > { %v1201_v55 = vmax.f32 %v1187_v45, %v1189_v46  ;;  %v1137_v57 = vmul.f32 %v2201_v5, %v1030_v52  ;;  %v1139_v31 = vmul.f32 %v2203_v6, %v1083_v53  ;;  %v1032_v28 = vpop.f32.mrb[6].mxu0  ;;  %v1085_v58 = vpop.f32.mrb[6].mxu1 }
 0x139   : > { %v1650_v2 = vpack.c.bf16 %v1200_v49, %v1198_v41  ;;  %v1174_v56 = vadd.f32 %v2205_v7, %v1136_v50  ;;  %v1176_v63 = vadd.f32 %v2207_v8, %v1138_v51  ;;  %v1140_v0 = vmul.f32 %v1111_v3, %v1032_v28  ;;  %v1034_v1 = vpop.f32.mrb[7].mxu0  ;;  %v1087_v9 = vpop.f32.mrb[7].mxu1 }
 0x13a   : > { %v1175_v10 = vadd.f32 %v2209_v11, %v1137_v57  ;;  %v1177_v13 = vadd.f32 %v2211_v12, %v1139_v31  ;;  %v1142_v14 = vmul.f32 %v2199_v4, %v1085_v58  ;;  %v1141_v15 = vmul.f32 %v2201_v5, %v1034_v1 }
 0x13b   : > { %v1190_v16 = vmax.f32 %v1174_v56, 0.0  ;;  %v1192_v17 = vmax.f32 %v1176_v63, 0.0  ;;  %v1178_v61 = vadd.f32 %v2205_v7, %v1140_v0  ;;  %v1143_v18 = vmul.f32 %v2203_v6, %v1087_v9 }
 0x13c   : > { %v1191_v19 = vmax.f32 %v1175_v10, 0.0  ;;  %v1193_v20 = vmax.f32 %v1177_v13, 0.0  ;;  %v1180_v3 = vadd.f32 %v2207_v8, %v1142_v14  ;;  %v1179_v21 = vadd.f32 %v2209_v11, %v1141_v15 }
 0x13d   : > { %v1202_v22 = vmax.f32 %v1190_v16, %v1192_v17  ;;  %v1194_v23 = vmax.f32 %v1178_v61, 0.0  ;;  %v1181_v24 = vadd.f32 %v2211_v12, %v1143_v18  ;;  %v1648_v25 = vpack.c.bf16 %v1201_v55, %v1199_v44 }
 0x13e   : > { %v1203_v4 = vmax.f32 %v1191_v19, %v1193_v20  ;;  %v1196_v26 = vmax.f32 %v1180_v3, 0.0  ;;  %v1195_v5 = vmax.f32 %v1179_v21, 0.0  ;;  %v1210_v7 = vand.u32 127, %v1108_v60 }
 0x13f   : > { %v1197_v27 = vmax.f32 %v1181_v24, 0.0  ;;  %1649 = vmatprep.subr.bf16.mxu0 %v1648_v25  ;;  %1657 = vmatprep.subr.bf16.mxu1 %v1648_v25  ;;  %v1303_v6 = vadd.s32 1, %v1211_v54  ;;  %v1304_v12 = vadd.s32 1, %v1212_v29 }
 0x140   : > { %v1204_v30 = vmax.f32 %v1194_v23, %v1196_v26  ;;  %1651 = vmatpush1.bf16.msra.mxu0 %v1650_v2  ;;  %1659 = vmatpush1.bf16.msra.mxu1 %v1650_v2  ;;  %vm1213_vm4 = vcmp.eq.s32.totalorder %v1210_v7, %v1211_v54  ;;  %vm1214_vm7 = vcmp.eq.s32.totalorder %v1210_v7, %v1212_v29 }
 0x141   : > { %v1205_v8 = vmax.f32 %v1195_v5, %v1197_v27  ;;  %vm1305_vm5 = vcmp.eq.s32.totalorder %v1210_v7, %v1303_v6  ;;  %v1633_v33 = vsel %vm1213_vm4, 1.0, %v1840_v59  ;;  %vm1306_vm8 = vcmp.eq.s32.totalorder %v1210_v7, %v1304_v12 }
 0x142   : > { %v1654_v11 = vpack.c.bf16 %v1204_v30, %v1202_v22  ;;  %v1637_v60 = vsel %vm1305_vm5, 1.0, %v1840_v59  ;;  %v1634_v34 = vsel %vm1214_vm7, 1.0, %v1840_v59  ;;  %v1638_v35 = vsel %vm1306_vm8, 1.0, %v1840_v59 }
 0x143   : > { %v1652_v32 = vpack.c.bf16 %v1205_v8, %v1203_v4 }
 0x145   : > { %1653 = vmatprep.subr.bf16.mxu0 %v1652_v32  ;;  %1661 = vmatprep.subr.bf16.mxu1 %v1652_v32 }
 0x146   : > { %1655 = vmatpush1.bf16.msra.mxu0 %v1654_v11  ;;  %1663 = vmatpush1.bf16.msra.mxu1 %v1654_v11 }
 0x149   : > { %1635 = vmatmul.mubr.msk.f32.vlgmr.msra.gmra.mrb[8].mxu0 %vm1219_vm6, %v1633_v33  ;;  %1639 = vmatmul.mubr.msk.f32.vlgmr.msra.gmra.mrb[8].mxu1 %vm1219_vm6, %v1637_v60 }
 0x14a   : > { %1296 = vmatprep.mubr.f32.mxu0 %v1840_v59  ;;  %1387 = vmatprep.mubr.f32.mxu1 %v1840_v59 }
 0x14d   : > { %1636 = vmatmul.mubr.msk.f32.gmra.mrb[10].mxu0 %vm1219_vm6, %v1634_v34  ;;  %1640 = vmatmul.mubr.msk.f32.gmra.mrb[10].mxu1 %vm1219_vm6, %v1638_v35 }
 0x21c   : > { %v1292_v36 = vpop.f32.mrb[8].mxu0  ;;  %v1383_v37 = vpop.f32.mrb[8].mxu1 }
 0x21d   : > { %v1394_v38 = vmax.f32 %v1292_v36, %v1383_v37  ;;  %v1294_v39 = vpop.f32.mrb[9].mxu0  ;;  %v1385_v40 = vpop.f32.mrb[9].mxu1 }
 0x21e   : > { %v1395_v41 = vmax.f32 %v1294_v39, %v1385_v40 }
 0x220   : > { %v1646_v42 = vpack.c.bf16 %v1395_v41, %v1394_v38  ;;  %v1298_v43 = vpop.f32.mrb[10].mxu0  ;;  %v1389_v44 = vpop.f32.mrb[10].mxu1 }
 0x221   : > { %v1396_v45 = vmax.f32 %v1298_v43, %v1389_v44  ;;  %v1300_v46 = vpop.f32.mrb[11].mxu0  ;;  %v1391_v47 = vpop.f32.mrb[11].mxu1 }
 0x222   : > { %1410 = vst [vmem:[%s197_s20] sm:$0xff] %v1646_v42  ;;  %v1397_v59 = vmax.f32 %v1300_v46, %v1391_v47 }
 0x224   : > { %v1647_v48 = vpack.c.bf16 %v1397_v59, %v1396_v45 }
 0x226   : > { %1411 = vst [vmem:[%s197_s20 + $0x8] sm:$0xff] %v1647_v48 }
 0x227 PF: > { %s14_s15 = sadd.s32 1, %s1837_s15  }
 0x228   : > { %p11_p4 = scmp.ge.s32.totalorder %s14_s15, 4  }
 0x22a   :  { %13 = sbr.rel (!%p11_p4) target bundleno = 1 (0x1), region = 68 }

// kernel: net_forward.5
= control target key start
LH: loop header
LB: loop body
LE: loop exit
PB: predicated region body
PF: predicated region fallthrough
CT: control target
= control target key end

     0   :  { %s3239_s15 = smov 0   ;;  %s3998_s0 = inlined_call_operand.vmem [shape: bf16[2,18,288], index: 0, kind: input, shape index: {}]   ;;  %s3999_s1 = inlined_call_operand.vmem [shape: bf16[3,288,512], index: 1, kind: input, shape index: {}]   ;;  %s4000_s2 = inlined_call_operand.vmem [shape: f32[1,512], index: 2, kind: input, shape index: {}]   ;;  %s4001_s3 = inlined_call_operand.vmem [shape: f32[1,512], index: 3, kind: input, shape index: {}]   ;;  %s4002_s4 = inlined_call_operand.vmem [shape: bf16[2,8,256], index: 4, kind: output, shape index: {}]  }
   0x1 LB: > { %s2419_s16 = sadd.s32 4294967295, %s3210_s15   ;;  %p2423_p0 = scmp.ge.s32.totalorder %s3210_s15, 1  ;;  %s3210_s15 = sphi %s3239_s15, %s14_s15  }
   0x2   : > { %p162_p1 = scmp.lt.s32.totalorder %s3210_s15, 3 }
   0x4   : > { %p163_p2 = pnand %p2423_p0, %p162_p1 }
   0x5   : > { %v2870_v0 = vld [vmem:[%s3999_s1 + $0x244] ss:$16 sps:$4 sm:$0xff] (!%p163_p2)   ;;  %v2872_v1 = vld [vmem:[%s3999_s1 + $0x24c] ss:$16 sps:$4 sm:$0xff] (!%p163_p2)   ;;  %v2874_v2 = vld [vmem:[%s3999_s1 + $0x240] ss:$16 sps:$4 sm:$0xff] (!%p163_p2)  }
   0x6   : > { %166 = sbr.rel (%p163_p2) target bundleno = 681 (0x2a9), region = 36  ;;  %774 = vmatprep.subr.bf16.mxu0 (!%p163_p2), %v2870_v0  ;;  %v2875_v3 = vld [vmem:[%s3999_s1 + $0x248] ss:$16 sps:$4 sm:$0xff] (!%p163_p2)   ;;  %860 = vmatprep.subr.bf16.mxu1 (!%p163_p2), %v2872_v1  ;;  %v2876_v4 = vld [vmem:[%s3999_s1 + $0x264] ss:$16 sps:$4 sm:$0xff] (!%p163_p2)   ;;  %p188_p3 = scmp.lt.s32.totalorder (!%p163_p2), %s2419_s16, 1 }
   0x7   : > { %775 = vmatpush1.bf16.msra.mxu0 (!%p163_p2), %v2874_v2  ;;  %861 = vmatpush1.bf16.msra.mxu1 (!%p163_p2), %v2875_v3  ;;  %v2878_v5 = vld [vmem:[%s3999_s1 + $0x26c] ss:$16 sps:$4 sm:$0xff] (!%p163_p2)   ;;  %v2880_v6 = vld [vmem:[%s3999_s1 + $0x260] ss:$16 sps:$4 sm:$0xff] (!%p163_p2)   ;;  %v2881_v7 = vld [vmem:[%s3999_s1 + $0x268] ss:$16 sps:$4 sm:$0xff] (!%p163_p2)  }
   0x8   : > { %776 = vmatprep.subr.bf16.mxu0 (!%p163_p2), %v2876_v4  ;;  %862 = vmatprep.subr.bf16.mxu1 (!%p163_p2), %v2878_v5  ;;  %v2882_v8 = vld [vmem:[%s3999_s1 + $0x284] ss:$16 sps:$4 sm:$0xff] (!%p163_p2)   ;;  %v2884_v9 = vld [vmem:[%s3999_s1 + $0x28c] ss:$16 sps:$4 sm:$0xff] (!%p163_p2)   ;;  %v2886_v10 = vld [vmem:[%s3999_s1 + $0x280] ss:$16 sps:$4 sm:$0xff] (!%p163_p2)  }
   0x9   : > { %v2887_v11 = vld [vmem:[%s3999_s1 + $0x288] ss:$16 sps:$4 sm:$0xff] (!%p163_p2)   ;;  %v2888_v12 = vld [vmem:[%s3999_s1 + $0x2a4] ss:$16 sps:$4 sm:$0xff] (!%p163_p2)   ;;  %v2890_v13 = vld [vmem:[%s3999_s1 + $0x2ac] ss:$16 sps:$4 sm:$0xff] (!%p163_p2)  }
   0xa   : > { %v2892_v14 = vld [vmem:[%s3999_s1 + $0x2a0] ss:$16 sps:$4 sm:$0xff] (!%p163_p2)   ;;  %v2893_v15 = vld [vmem:[%s3999_s1 + $0x2a8] ss:$16 sps:$4 sm:$0xff] (!%p163_p2)   ;;  %v2894_v16 = vld [vmem:[%s3999_s1 + $0x2c4] ss:$16 sps:$4 sm:$0xff] (!%p163_p2)  }
   0xb   : > { %777 = vmatpush1.bf16.msra.mxu0 (!%p163_p2), %v2880_v6  ;;  %863 = vmatpush1.bf16.msra.mxu1 (!%p163_p2), %v2881_v7  ;;  %v2896_v17 = vld [vmem:[%s3999_s1 + $0x2cc] ss:$16 sps:$4 sm:$0xff] (!%p163_p2)   ;;  %v2898_v18 = vld [vmem:[%s3999_s1 + $0x2c0] ss:$16 sps:$4 sm:$0xff] (!%p163_p2)   ;;  %v2899_v19 = vld [vmem:[%s3999_s1 + $0x2c8] ss:$16 sps:$4 sm:$0xff] (!%p163_p2)  }
   0xc   : > { %778 = vmatprep.subr.bf16.mxu0 (!%p163_p2), %v2882_v8  ;;  %864 = vmatprep.subr.bf16.mxu1 (!%p163_p2), %v2884_v9  ;;  %v2900_v20 = vld [vmem:[%s3999_s1 + $0x2e4] ss:$16 sps:$4 sm:$0xff] (!%p163_p2)   ;;  %v2902_v21 = vld [vmem:[%s3999_s1 + $0x2ec] ss:$16 sps:$4 sm:$0xff] (!%p163_p2)   ;;  %v2904_v22 = vld [vmem:[%s3999_s1 + $0x2e0] ss:$16 sps:$4 sm:$0xff] (!%p163_p2)  }
   0xd   : > { %v2905_v23 = vld [vmem:[%s3999_s1 + $0x2e8] ss:$16 sps:$4 sm:$0xff]   ;;  %v2906_v24 = vld [vmem:[%s3999_s1 + $0x304] ss:$16 sps:$4 sm:$0xff]   ;;  %v2908_v25 = vld [vmem:[%s3999_s1 + $0x30c] ss:$16 sps:$4 sm:$0xff]  }
   0xe   : > { %v2910_v26 = vld [vmem:[%s3999_s1 + $0x300] ss:$16 sps:$4 sm:$0xff]   ;;  %v2911_v27 = vld [vmem:[%s3999_s1 + $0x308] ss:$16 sps:$4 sm:$0xff]   ;;  %v2912_v28 = vld [vmem:[%s3999_s1 + $0x324] ss:$16 sps:$4 sm:$0xff]  }
   0xf   : > { %779 = vmatpush1.bf16.msra.mxu0 %v2886_v10  ;;  %865 = vmatpush1.bf16.msra.mxu1 %v2887_v11  ;;  %v2914_v29 = vld [vmem:[%s3999_s1 + $0x32c] ss:$16 sps:$4 sm:$0xff]   ;;  %v2916_v30 = vld [vmem:[%s3999_s1 + $0x320] ss:$16 sps:$4 sm:$0xff]   ;;  %v2917_v31 = vld [vmem:[%s3999_s1 + $0x328] ss:$16 sps:$4 sm:$0xff]  }
  0x10   : > { %780 = vmatprep.subr.bf16.mxu0 %v2888_v12  ;;  %866 = vmatprep.subr.bf16.mxu1 %v2890_v13  ;;  %v2918_v32 = vld [vmem:[%s3999_s1 + $0x344] ss:$16 sps:$4 sm:$0xff]   ;;  %v2920_v33 = vld [vmem:[%s3999_s1 + $0x34c] ss:$16 sps:$4 sm:$0xff]   ;;  %v2922_v34 = vld [vmem:[%s3999_s1 + $0x340] ss:$16 sps:$4 sm:$0xff]  }
  0x11   : > { %v2923_v35 = vld [vmem:[%s3999_s1 + $0x348] ss:$16 sps:$4 sm:$0xff]   ;;  %s4004_s16 = smov (!%p188_p3, %s2419_s16), 1  ;;  %v2924_v36 = vld [vmem:[%s3999_s1 + $0x364] ss:$16 sps:$4 sm:$0xff]   ;;  %vm770_vm1 = vcmask 261120  }
  0x12   : > { %v2926_v37 = vld [vmem:[%s3999_s1 + $0x36c] ss:$16 sps:$4 sm:$0xff]   ;;  %v2928_v38 = vld [vmem:[%s3999_s1 + $0x360] ss:$16 sps:$4 sm:$0xff]   ;;  %s2859_s23 = smul.u32 36, %s4004_s16  ;;  %vm1565_vm2 = vcmask 1046528  }
  0x13   : > { %781 = vmatpush1.bf16.msra.mxu0 %v2892_v14  ;;  %867 = vmatpush1.bf16.msra.mxu1 %v2893_v15  ;;  %v2929_v39 = vld [vmem:[%s3999_s1 + $0x368] ss:$16 sps:$4 sm:$0xff]   ;;  %v2930_v40 = vld [vmem:[%s3999_s1 + $0x384] ss:$16 sps:$4 sm:$0xff]   ;;  %v2932_v41 = vld [vmem:[%s3999_s1 + $0x38c] ss:$16 sps:$4 sm:$0xff]  }
  0x14   : > { %782 = vmatprep.subr.bf16.mxu0 %v2894_v16  ;;  %868 = vmatprep.subr.bf16.mxu1 %v2896_v17  ;;  %v2934_v42 = vld [vmem:[%s3999_s1 + $0x380] ss:$16 sps:$4 sm:$0xff]   ;;  %v2935_v43 = vld [vmem:[%s3999_s1 + $0x388] ss:$16 sps:$4 sm:$0xff]   ;;  %s3389_s10 = scalar_lea.vmem %s3998_s0, %s2859_s23  ;;  %v2936_v44 = vld [vmem:[%s3999_s1 + $0x3a4] ss:$16 sps:$4 sm:$0xff]  }
  0x15   : > { %v2938_v45 = vld [vmem:[%s3999_s1 + $0x3ac] ss:$16 sps:$4 sm:$0xff]   ;;  %v199_v46 = vld [vmem:[%s3389_s10] sm:$0xff]  ;;  %v2941_v48 = vld [vmem:[%s3999_s1 + $0x3a8] ss:$16 sps:$4 sm:$0xff]   ;;  %vm2200_vm5 = vcmask 130048  }
  0x16   : > { %v2940_v47 = vld [vmem:[%s3999_s1 + $0x3a0] ss:$16 sps:$4 sm:$0xff]   ;;  %v275_v50 = vld [vmem:[%s3389_s10 + $0x18] sm:$0x11]  ;;  %v2942_v52 = vld [vmem:[%s3999_s1 + $0x3c4] ss:$16 sps:$4 sm:$0xff]  }
  0x17   : > { %783 = vmatpush1.bf16.msra.mxu0 %v2898_v18  ;;  %869 = vmatpush1.bf16.msra.mxu1 %v2899_v19  ;;  %v3405_v49 = vld [vmem:[%s3389_s10 + $0xc] sm:$0xff]  ;;  %v3417_v54 = vcombine.high %v275_v50, %v275_v50  ;;  %vm371_vm0 = vsmask.f32 7424  ;;  %v2947_v59 = vld [vmem:[%s3999_s1 + $0x3c8] ss:$16 sps:$4 sm:$0xff]   ;;  %v3447_v6 = vcombine.low %v275_v50, %v275_v50  ;;  %s2809_s13 = sshll.u32 %s4004_s16, 3 }
  0x18   : > { %784 = vmatprep.subr.bf16.mxu0 %v2900_v20  ;;  %870 = vmatprep.subr.bf16.mxu1 %v2902_v21  ;;  %v3409_v51 = vcombine.high %v199_v46, %v3405_v49  ;;  %v2944_v53 = vld [vmem:[%s3999_s1 + $0x3cc] ss:$16 sps:$4 sm:$0xff]   ;;  %v2946_v58 = vld [vmem:[%s3999_s1 + $0x3c0] ss:$16 sps:$4 sm:$0xff]   ;;  %v3429_v61 = vcombine.low %v199_v46, %v3405_v49  ;;  %v2948_v62 = vld [vmem:[%s3999_s1 + $0x3e4] ss:$16 sps:$4 sm:$0xff]  }
  0x19   : > { %v392_v57 = vshll.u32 %v3417_v54, 16  ;;  %v2950_v63 = vld [vmem:[%s3999_s1 + $0x3ec] ss:$16 sps:$4 sm:$0xff]   ;;  %v2952_v2 = vld [vmem:[%s3999_s1 + $0x3e0] ss:$16 sps:$4 sm:$0xff]   ;;  %v380_v16 = vshll.u32 %v3447_v6, 16 }
  0x1a   : > { %v385_v55 = vshrl.u32 %v3409_v51, 16  ;;  %v387_v56 = vshll.u32 %v3409_v51, 16  ;;  %v2953_v3 = vld [vmem:[%s3999_s1 + $0x3e8] ss:$16 sps:$4 sm:$0xff]   ;;  %v2954_v4 = vld [vmem:[%s3999_s1 + $0x404] ss:$16 sps:$4 sm:$0xff]  }
  0x1b   : > { %785 = vmatpush1.bf16.msra.mxu0 %v2904_v22  ;;  %871 = vmatpush1.bf16.msra.mxu1 %v2905_v23  ;;  %v394_v0 = vrot.slane %v392_v57, 1  ;;  %v375_v7 = vshll.u32 %v3429_v61, 16  ;;  %v2956_v8 = vld [vmem:[%s3999_s1 + $0x40c] ss:$16 sps:$4 sm:$0xff]   ;;  %v2958_v9 = vld [vmem:[%s3999_s1 + $0x400] ss:$16 sps:$4 sm:$0xff]  }
  0x1c   : > { %786 = vmatprep.subr.bf16.mxu0 %v2906_v24  ;;  %872 = vmatprep.subr.bf16.mxu1 %v2908_v25  ;;  %v389_v60 = vrot.slane %v387_v56, 1  ;;  %v2959_v10 = vld [vmem:[%s3999_s1 + $0x408] ss:$16 sps:$4 sm:$0xff]   ;;  %v2960_v11 = vld [vmem:[%s3999_s1 + $0x424] ss:$16 sps:$4 sm:$0xff]   ;;  %v373_v14 = vshrl.u32 %v3429_v61, 16 }
  0x1d   : > { %v2962_v12 = vld [vmem:[%s3999_s1 + $0x42c] ss:$16 sps:$4 sm:$0xff]   ;;  %v200_v13 = vld [vmem:[%s3389_s10 + $0x8] sm:$0xf]  ;;  %v377_v15 = vrot.slane %v375_v7, 1  ;;  %v382_v22 = vrot.slane %v380_v16, 1 }
  0x1e   : > { %v390_v1 = vor.u32 %v389_v60, %v385_v55  ;;  %v3469_v17 = vld [vmem:[%s3389_s10 + $0x14] sm:$0xf]  ;;  %v2964_v18 = vld [vmem:[%s3999_s1 + $0x420] ss:$16 sps:$4 sm:$0xff]   ;;  %v2965_v19 = vld [vmem:[%s3999_s1 + $0x428] ss:$16 sps:$4 sm:$0xff]  }
  0x1f   : > { %787 = vmatpush1.bf16.msra.mxu0 %v2910_v26  ;;  %873 = vmatpush1.bf16.msra.mxu1 %v2911_v27  ;;  %v3478_v20 = vcombine.low %v200_v13, %v3469_v17  ;;  %v378_v21 = vor.u32 %v377_v15, %v373_v14  ;;  %v2974_v23 = vld [vmem:[%s3999_s1 + $0x444] ss:$16 sps:$4 sm:$0xff]   ;;  %v2977_v24 = vld [vmem:[%s3999_s1 + $0x44c] ss:$16 sps:$4 sm:$0xff]   ;;  %v2972_v26 = vld [vmem:[%s3999_s1 + $0x440] ss:$16 sps:$4 sm:$0xff]  }
  0x20   : > { %788 = vmatprep.subr.bf16.mxu0 %v2912_v28  ;;  %874 = vmatprep.subr.bf16.mxu1 %v2914_v29  ;;  %v395_v5 = vsel %vm371_vm0, %v390_v1, %v394_v0  ;;  %v3487_v25 = vld [vmem:[%s3389_s10 + $0x20] ss:$0 sps:$4 sm:$0x11]   ;;  %v2975_v27 = vld [vmem:[%s3999_s1 + $0x448] ss:$16 sps:$4 sm:$0xff]  }
  0x21   : > { %806 = vmatprep.mubr.bf16.mxu0 %v395_v5  ;;  %892 = vmatprep.mubr.bf16.mxu1 %v395_v5  ;;  %v399_v28 = vshll.u32 %v3478_v20, 16  ;;  %v383_v29 = vsel %vm371_vm0, %v378_v21, %v382_v22  ;;  %v2995_v46 = vld [vmem:[%s3999_s1 + $0x2c] ss:$16 sps:$4 sm:$0xff]   ;;  %v2998_v50 = vld [vmem:[%s3999_s1 + $0x44] ss:$16 sps:$4 sm:$0xff]  }
  0x22   : > { %v2999_v55 = vld [vmem:[%s3999_s1 + $0x48] ss:$16 sps:$4 sm:$0xff]   ;;  %v3004_v56 = vld [vmem:[%s3999_s1 + $0x64] ss:$16 sps:$4 sm:$0xff]   ;;  %v3002_v57 = vld [vmem:[%s3999_s1 + $0x60] ss:$16 sps:$4 sm:$0xff]  }
  0x23   : > { %789 = vmatpush1.bf16.msra.mxu0 %v2916_v30  ;;  %875 = vmatpush1.bf16.msra.mxu1 %v2917_v31  ;;  %v2980_v30 = vld [vmem:[%s3999_s1 + $0x464] ss:$16 sps:$4 sm:$0xff]   ;;  %v2983_v31 = vld [vmem:[%s3999_s1 + $0x46c] ss:$16 sps:$4 sm:$0xff]   ;;  %v3020_v7 = vld [vmem:[%s3999_s1 + $0xc0] ss:$16 sps:$4 sm:$0xff]  }
  0x24   : > { %790 = vmatprep.subr.bf16.mxu0 %v2918_v32  ;;  %876 = vmatprep.subr.bf16.mxu1 %v2920_v33  ;;  %v397_v32 = vshrl.u32 %v3478_v20, 16  ;;  %v2978_v33 = vld [vmem:[%s3999_s1 + $0x460] ss:$16 sps:$4 sm:$0xff]   ;;  %v3013_v60 = vld [vmem:[%s3999_s1 + $0x8c] ss:$16 sps:$4 sm:$0xff]  }
  0x25   : > { %v3016_v0 = vld [vmem:[%s3999_s1 + $0xa4] ss:$16 sps:$4 sm:$0xff]   ;;  %v3019_v1 = vld [vmem:[%s3999_s1 + $0xac] ss:$16 sps:$4 sm:$0xff]   ;;  %v3032_v15 = vld [vmem:[%s3999_s1 + $0x100] ss:$16 sps:$4 sm:$0xff]  }
  0x26   : > { %v3025_v5 = vld [vmem:[%s3999_s1 + $0xcc] ss:$16 sps:$4 sm:$0xff]   ;;  %v3034_v13 = vld [vmem:[%s3999_s1 + $0x104] ss:$16 sps:$4 sm:$0xff]   ;;  %v3035_v16 = vld [vmem:[%s3999_s1 + $0x108] ss:$16 sps:$4 sm:$0xff]  }
  0x27   : > { %791 = vmatpush1.bf16.msra.mxu0 %v2922_v34  ;;  %877 = vmatpush1.bf16.msra.mxu1 %v2923_v35  ;;  %v2981_v34 = vld [vmem:[%s3999_s1 + $0x468] ss:$16 sps:$4 sm:$0xff]   ;;  %v401_v35 = vrot.slane %v399_v28, 1  ;;  %v3037_v14 = vld [vmem:[%s3999_s1 + $0x10c] ss:$16 sps:$4 sm:$0xff]  }
  0x28   : > { %792 = vmatprep.subr.bf16.mxu0 %v2924_v36  ;;  %878 = vmatprep.subr.bf16.mxu1 %v2926_v37  ;;  %v404_v36 = vshll.u32 %v3487_v25, 16  ;;  %v2986_v37 = vld [vmem:[%s3999_s1 + $0x4] ss:$16 sps:$4 sm:$0xff]   ;;  %v3038_v21 = vld [vmem:[%s3999_s1 + $0x120] ss:$16 sps:$4 sm:$0xff]  }
  0x29   : > { %v3041_v22 = vld [vmem:[%s3999_s1 + $0x128] ss:$16 sps:$4 sm:$0xff]   ;;  %v3052_v28 = vld [vmem:[%s3999_s1 + $0x164] ss:$16 sps:$4 sm:$0xff]  }
  0x2b   : > { %793 = vmatpush1.bf16.msra.mxu0 %v2928_v38  ;;  %879 = vmatpush1.bf16.msra.mxu1 %v2929_v39  ;;  %v2989_v38 = vld [vmem:[%s3999_s1 + $0xc] ss:$16 sps:$4 sm:$0xff]   ;;  %v3212_v39 = vmov 0  }
  0x2c   : > { %794 = vmatprep.subr.bf16.mxu0 %v2930_v40  ;;  %880 = vmatprep.subr.bf16.mxu1 %v2932_v41  ;;  %v402_v40 = vor.u32 %v401_v35, %v397_v32  ;;  %v406_v41 = vrot.slane %v404_v36, 1  ;;  %v3058_v32 = vld [vmem:[%s3999_s1 + $0x184] ss:$16 sps:$4 sm:$0xff]   ;;  %v3059_v35 = vld [vmem:[%s3999_s1 + $0x188] ss:$16 sps:$4 sm:$0xff]  }
  0x2d   : > { %v3064_v36 = vld [vmem:[%s3999_s1 + $0x1a4] ss:$16 sps:$4 sm:$0xff]  }
  0x2f   : > { %795 = vmatpush1.bf16.msra.mxu0 %v2934_v42  ;;  %881 = vmatpush1.bf16.msra.mxu1 %v2935_v43  ;;  %v2984_v42 = vld [vmem:[%s3999_s1] ss:$16 sps:$4 sm:$0xff]   ;;  %v2987_v43 = vld [vmem:[%s3999_s1 + $0x8] ss:$16 sps:$4 sm:$0xff]  }
  0x30   : > { %796 = vmatprep.subr.bf16.mxu0 %v2936_v44  ;;  %882 = vmatprep.subr.bf16.mxu1 %v2938_v45  ;;  %v407_v44 = vsel %vm371_vm0, %v402_v40, %v406_v41  ;;  %v2992_v45 = vld [vmem:[%s3999_s1 + $0x24] ss:$16 sps:$4 sm:$0xff]   ;;  %v3065_v40 = vld [vmem:[%s3999_s1 + $0x1a8] ss:$16 sps:$4 sm:$0xff]  }
  0x31   : > { %v3070_v41 = vld [vmem:[%s3999_s1 + $0x1c4] ss:$16 sps:$4 sm:$0xff]  }
  0x33   : > { %797 = vmatpush1.bf16.msra.mxu0 %v2940_v47  ;;  %883 = vmatpush1.bf16.msra.mxu1 %v2941_v48  ;;  %v2990_v47 = vld [vmem:[%s3999_s1 + $0x20] ss:$16 sps:$4 sm:$0xff]   ;;  %v2993_v48 = vld [vmem:[%s3999_s1 + $0x28] ss:$16 sps:$4 sm:$0xff]  }
  0x34   : > { %798 = vmatprep.subr.bf16.mxu0 %v2942_v52  ;;  %884 = vmatprep.subr.bf16.mxu1 %v2944_v53  ;;  %v3001_v52 = vld [vmem:[%s3999_s1 + $0x4c] ss:$16 sps:$4 sm:$0xff]   ;;  %v2996_v53 = vld [vmem:[%s3999_s1 + $0x40] ss:$16 sps:$4 sm:$0xff]  }
  0x37   : > { %799 = vmatpush1.bf16.msra.mxu0 %v2946_v58  ;;  %885 = vmatpush1.bf16.msra.mxu1 %v2947_v59  ;;  %v3005_v58 = vld [vmem:[%s3999_s1 + $0x68] ss:$16 sps:$4 sm:$0xff]   ;;  %v3010_v59 = vld [vmem:[%s3999_s1 + $0x84] ss:$16 sps:$4 sm:$0xff]  }
  0x38   : > { %800 = vmatprep.subr.bf16.mxu0 %v2948_v62  ;;  %886 = vmatprep.subr.bf16.mxu1 %v2950_v63  ;;  %v3008_v62 = vld [vmem:[%s3999_s1 + $0x80] ss:$16 sps:$4 sm:$0xff]   ;;  %v3011_v63 = vld [vmem:[%s3999_s1 + $0x88] ss:$16 sps:$4 sm:$0xff]  }
  0x3b   : > { %801 = vmatpush1.bf16.msra.mxu0 %v2952_v2  ;;  %887 = vmatpush1.bf16.msra.mxu1 %v2953_v3  ;;  %v3014_v2 = vld [vmem:[%s3999_s1 + $0xa0] ss:$16 sps:$4 sm:$0xff]   ;;  %v3017_v3 = vld [vmem:[%s3999_s1 + $0xa8] ss:$16 sps:$4 sm:$0xff]  }
  0x3c   : > { %802 = vmatprep.subr.bf16.mxu0 %v2954_v4  ;;  %888 = vmatprep.subr.bf16.mxu1 %v2956_v8  ;;  %v3022_v4 = vld [vmem:[%s3999_s1 + $0xc4] ss:$16 sps:$4 sm:$0xff]   ;;  %v3023_v8 = vld [vmem:[%s3999_s1 + $0xc8] ss:$16 sps:$4 sm:$0xff]  }
  0x3f   : > { %803 = vmatpush1.bf16.msra.mxu0 %v2958_v9  ;;  %889 = vmatpush1.bf16.msra.mxu1 %v2959_v10  ;;  %v3028_v9 = vld [vmem:[%s3999_s1 + $0xe4] ss:$16 sps:$4 sm:$0xff]   ;;  %v3031_v10 = vld [vmem:[%s3999_s1 + $0xec] ss:$16 sps:$4 sm:$0xff]  }
  0x40   : > { %804 = vmatprep.subr.bf16.mxu0 %v2960_v11  ;;  %890 = vmatprep.subr.bf16.mxu1 %v2962_v12  ;;  %v3026_v11 = vld [vmem:[%s3999_s1 + $0xe0] ss:$16 sps:$4 sm:$0xff]   ;;  %v3029_v12 = vld [vmem:[%s3999_s1 + $0xe8] ss:$16 sps:$4 sm:$0xff]  }
  0x43   : > { %805 = vmatpush1.bf16.msra.mxu0 %v2964_v18  ;;  %891 = vmatpush1.bf16.msra.mxu1 %v2965_v19  ;;  %v3040_v18 = vld [vmem:[%s3999_s1 + $0x124] ss:$16 sps:$4 sm:$0xff]   ;;  %v3043_v19 = vld [vmem:[%s3999_s1 + $0x12c] ss:$16 sps:$4 sm:$0xff]  }
  0x44   : > { %817 = vmatprep.subr.bf16.mxu0 %v2974_v23  ;;  %903 = vmatprep.subr.bf16.mxu1 %v2977_v24  ;;  %v3046_v23 = vld [vmem:[%s3999_s1 + $0x144] ss:$16 sps:$4 sm:$0xff]   ;;  %v3049_v24 = vld [vmem:[%s3999_s1 + $0x14c] ss:$16 sps:$4 sm:$0xff]  }
  0x46   : > { %807 = vmatmul.mubr.bf16.vlgmr.msra.gmra.mrb[0].mxu0 %v383_v29  ;;  %893 = vmatmul.mubr.bf16.vlgmr.msra.gmra.mrb[0].mxu1 %v383_v29  ;;  %v3055_v29 = vld [vmem:[%s3999_s1 + $0x16c] ss:$16 sps:$4 sm:$0xff]  }
  0x47   : > { %818 = vmatpush1.bf16.msra.mxu0 %v2972_v26  ;;  %904 = vmatpush1.bf16.msra.mxu1 %v2975_v27  ;;  %v3044_v26 = vld [vmem:[%s3999_s1 + $0x140] ss:$16 sps:$4 sm:$0xff]   ;;  %v3047_v27 = vld [vmem:[%s3999_s1 + $0x148] ss:$16 sps:$4 sm:$0xff]  }
  0x48   : > { %819 = vmatprep.subr.bf16.mxu0 %v2980_v30  ;;  %905 = vmatprep.subr.bf16.mxu1 %v2983_v31  ;;  %v3050_v30 = vld [vmem:[%s3999_s1 + $0x160] ss:$16 sps:$4 sm:$0xff]   ;;  %v3053_v31 = vld [vmem:[%s3999_s1 + $0x168] ss:$16 sps:$4 sm:$0xff]  }
  0x49   : > { %849 = vmatprep.mubr.bf16.mxu0 %v3212_v39  ;;  %935 = vmatprep.mubr.bf16.mxu1 %v3212_v39 }
  0x4b   : > { %820 = vmatpush1.bf16.msra.mxu0 %v2978_v33  ;;  %906 = vmatpush1.bf16.msra.mxu1 %v2981_v34  ;;  %v3061_v33 = vld [vmem:[%s3999_s1 + $0x18c] ss:$16 sps:$4 sm:$0xff]   ;;  %v3056_v34 = vld [vmem:[%s3999_s1 + $0x180] ss:$16 sps:$4 sm:$0xff]  }
  0x4c   : > { %1310 = vmatprep.subr.bf16.mxu0 %v2986_v37  ;;  %1396 = vmatprep.subr.bf16.mxu1 %v2989_v38  ;;  %v3067_v37 = vld [vmem:[%s3999_s1 + $0x1ac] ss:$16 sps:$4 sm:$0xff]   ;;  %v3062_v38 = vld [vmem:[%s3999_s1 + $0x1a0] ss:$16 sps:$4 sm:$0xff]  }
  0x52   : > { %2577 = vmatmul.mubr.msk.bf16.vlgmr.msra.gmra.mrb[0].mxu0 %vm770_vm1, %v407_v44  ;;  %2578 = vmatmul.mubr.msk.bf16.vlgmr.msra.gmra.mrb[0].mxu1 %vm770_vm1, %v407_v44  ;;  %v3071_v44 = vld [vmem:[%s3999_s1 + $0x1c8] ss:$16 sps:$4 sm:$0xff]  }
  0x53   : > { %1311 = vmatpush1.bf16.msra.mxu0 %v2984_v42  ;;  %1397 = vmatpush1.bf16.msra.mxu1 %v2987_v43  ;;  %v3073_v42 = vld [vmem:[%s3999_s1 + $0x1cc] ss:$16 sps:$4 sm:$0xff]   ;;  %v3068_v43 = vld [vmem:[%s3999_s1 + $0x1c0] ss:$16 sps:$4 sm:$0xff]  }
  0x54   : > { %1312 = vmatprep.subr.bf16.mxu0 %v2992_v45  ;;  %1398 = vmatprep.subr.bf16.mxu1 %v2995_v46  ;;  %v3076_v45 = vld [vmem:[%s3999_s1 + $0x1e4] ss:$16 sps:$4 sm:$0xff]   ;;  %v3079_v46 = vld [vmem:[%s3999_s1 + $0x1ec] ss:$16 sps:$4 sm:$0xff]  }
  0x55   : > { %1342 = vmatprep.mubr.bf16.mxu0 %v3409_v51  ;;  %1428 = vmatprep.mubr.bf16.mxu1 %v3409_v51  ;;  %v3007_v51 = vld [vmem:[%s3999_s1 + $0x6c] ss:$16 sps:$4 sm:$0xff]  }
  0x57   : > { %1313 = vmatpush1.bf16.msra.mxu0 %v2990_v47  ;;  %1399 = vmatpush1.bf16.msra.mxu1 %v2993_v48  ;;  %v3074_v47 = vld [vmem:[%s3999_s1 + $0x1e0] ss:$16 sps:$4 sm:$0xff]   ;;  %v3077_v48 = vld [vmem:[%s3999_s1 + $0x1e8] ss:$16 sps:$4 sm:$0xff]  }
  0x58   : > { %1314 = vmatprep.subr.bf16.mxu0 %v2998_v50  ;;  %1400 = vmatprep.subr.bf16.mxu1 %v3001_v52  ;;  %v3082_v50 = vld [vmem:[%s3999_s1 + $0x204] ss:$16 sps:$4 sm:$0xff]   ;;  %v3085_v52 = vld [vmem:[%s3999_s1 + $0x20c] ss:$16 sps:$4 sm:$0xff]  }
  0x5b   : > { %1315 = vmatpush1.bf16.msra.mxu0 %v2996_v53  ;;  %1401 = vmatpush1.bf16.msra.mxu1 %v2999_v55  ;;  %v3080_v53 = vld [vmem:[%s3999_s1 + $0x200] ss:$16 sps:$4 sm:$0xff]   ;;  %v3083_v55 = vld [vmem:[%s3999_s1 + $0x208] ss:$16 sps:$4 sm:$0xff]  }
  0x5c   : > { %1316 = vmatprep.subr.bf16.mxu0 %v3004_v56  ;;  %1402 = vmatprep.subr.bf16.mxu1 %v3007_v51  ;;  %v3088_v56 = vld [vmem:[%s3999_s1 + $0x224] ss:$16 sps:$4 sm:$0xff]   ;;  %v3091_v51 = vld [vmem:[%s3999_s1 + $0x22c] ss:$16 sps:$4 sm:$0xff]  }
  0x5f   : > { %1317 = vmatpush1.bf16.msra.mxu0 %v3002_v57  ;;  %1403 = vmatpush1.bf16.msra.mxu1 %v3005_v58  ;;  %v3086_v57 = vld [vmem:[%s3999_s1 + $0x220] ss:$16 sps:$4 sm:$0xff]   ;;  %v3089_v58 = vld [vmem:[%s3999_s1 + $0x228] ss:$16 sps:$4 sm:$0xff]  }
  0x60   : > { %1318 = vmatprep.subr.bf16.mxu0 %v3010_v59  ;;  %1404 = vmatprep.subr.bf16.mxu1 %v3013_v60  ;;  %v3737_v59 = vld [vmem:[%s3389_s10] sm:$0xee] }
  0x61   : > { %v3094_v60 = vld [vmem:[%s3999_s1 + $0x484] ss:$16 sps:$4 sm:$0xff]  }
  0x63   : > { %1319 = vmatpush1.bf16.msra.mxu0 %v3008_v62  ;;  %1405 = vmatpush1.bf16.msra.mxu1 %v3011_v63  ;;  %v3097_v62 = vld [vmem:[%s3999_s1 + $0x48c] ss:$16 sps:$4 sm:$0xff]   ;;  %v1483_v63 = vld [vmem:[%s3389_s10 + $0x8] sm:$0xe] }
  0x64   : > { %1320 = vmatprep.subr.bf16.mxu0 %v3016_v0  ;;  %1406 = vmatprep.subr.bf16.mxu1 %v3019_v1  ;;  %v2727_v0 = vcombine.low %v1483_v63, %v3469_v17  ;;  %v1573_v1 = vrot.slane %v3487_v25, 1  ;;  %v3103_v17 = vld [vmem:[%s3999_s1 + $0x4ac] ss:$16 sps:$4 sm:$0xff]   ;;  %v3173_v63 = vld [vmem:[%s3999_s1 + $0x628] ss:$16 sps:$4 sm:$0xff]  }
  0x67   : > { %1321 = vmatpush1.bf16.msra.mxu0 %v3014_v2  ;;  %1407 = vmatpush1.bf16.msra.mxu1 %v3017_v3  ;;  %v1570_v3 = vrot.slane %v3417_v54, 1 }
  0x68   : > { %1322 = vmatprep.subr.bf16.mxu0 %v3022_v4  ;;  %1408 = vmatprep.subr.bf16.mxu1 %v3025_v5  ;;  %v1572_v4 = vrot.slane %v2727_v0, 1  ;;  %v3092_v5 = vld [vmem:[%s3999_s1 + $0x480] ss:$16 sps:$4 sm:$0xff]   ;;  %v3178_v0 = vld [vmem:[%s3999_s1 + $0x644] ss:$16 sps:$4 sm:$0xff]  }
  0x6a   : > { %v3766_v54 = vsel %vm1565_vm2, %v1572_v4, %v1573_v1  ;;  %v3181_v1 = vld [vmem:[%s3999_s1 + $0x64c] ss:$16 sps:$4 sm:$0xff]  }
  0x6b   : > { %1323 = vmatpush1.bf16.msra.mxu0 %v3020_v7  ;;  %1409 = vmatpush1.bf16.msra.mxu1 %v3023_v8  ;;  %v3100_v7 = vld [vmem:[%s3999_s1 + $0x4a4] ss:$16 sps:$4 sm:$0xff]   ;;  %v3098_v8 = vld [vmem:[%s3999_s1 + $0x4a0] ss:$16 sps:$4 sm:$0xff]  }
  0x6c   : > { %1324 = vmatprep.subr.bf16.mxu0 %v3028_v9  ;;  %1410 = vmatprep.subr.bf16.mxu1 %v3031_v10  ;;  %v3101_v9 = vld [vmem:[%s3999_s1 + $0x4a8] ss:$16 sps:$4 sm:$0xff]   ;;  %v3106_v10 = vld [vmem:[%s3999_s1 + $0x4c4] ss:$16 sps:$4 sm:$0xff]   ;;  %v3203_v4 = vld [vmem:[%s3389_s10 + $0xc] sm:$0xff]  ;;  %s197_s10 = scalar_lea.vmem %s4002_s4, %s2809_s13 }
  0x6f   : > { %1325 = vmatpush1.bf16.msra.mxu0 %v3026_v11  ;;  %1411 = vmatpush1.bf16.msra.mxu1 %v3029_v12  ;;  %v3104_v11 = vld [vmem:[%s3999_s1 + $0x4c0] ss:$16 sps:$4 sm:$0xff]   ;;  %v3107_v12 = vld [vmem:[%s3999_s1 + $0x4c8] ss:$16 sps:$4 sm:$0xff]  }
  0x70   : > { %1326 = vmatprep.subr.bf16.mxu0 %v3034_v13  ;;  %1412 = vmatprep.subr.bf16.mxu1 %v3037_v14  ;;  %v3112_v13 = vld [vmem:[%s3999_s1 + $0x4e4] ss:$16 sps:$4 sm:$0xff]   ;;  %v3115_v14 = vld [vmem:[%s3999_s1 + $0x4ec] ss:$16 sps:$4 sm:$0xff]  }
  0x73   : > { %1327 = vmatpush1.bf16.msra.mxu0 %v3032_v15  ;;  %1413 = vmatpush1.bf16.msra.mxu1 %v3035_v16  ;;  %v3110_v15 = vld [vmem:[%s3999_s1 + $0x4e0] ss:$16 sps:$4 sm:$0xff]   ;;  %v3113_v16 = vld [vmem:[%s3999_s1 + $0x4e8] ss:$16 sps:$4 sm:$0xff]  }
  0x74   : > { %1328 = vmatprep.subr.bf16.mxu0 %v3040_v18  ;;  %1414 = vmatprep.subr.bf16.mxu1 %v3043_v19  ;;  %v3118_v18 = vld [vmem:[%s3999_s1 + $0x504] ss:$16 sps:$4 sm:$0xff]   ;;  %v3121_v19 = vld [vmem:[%s3999_s1 + $0x50c] ss:$16 sps:$4 sm:$0xff]  }
  0x77   : > { %1329 = vmatpush1.bf16.msra.mxu0 %v3038_v21  ;;  %1415 = vmatpush1.bf16.msra.mxu1 %v3041_v22  ;;  %v3116_v21 = vld [vmem:[%s3999_s1 + $0x500] ss:$16 sps:$4 sm:$0xff]   ;;  %v3119_v22 = vld [vmem:[%s3999_s1 + $0x508] ss:$16 sps:$4 sm:$0xff]  }
  0x78   : > { %1330 = vmatprep.subr.bf16.mxu0 %v3046_v23  ;;  %1416 = vmatprep.subr.bf16.mxu1 %v3049_v24  ;;  %v3124_v23 = vld [vmem:[%s3999_s1 + $0x524] ss:$16 sps:$4 sm:$0xff]   ;;  %v3127_v24 = vld [vmem:[%s3999_s1 + $0x52c] ss:$16 sps:$4 sm:$0xff]  }
  0x7b   : > { %1331 = vmatpush1.bf16.msra.mxu0 %v3044_v26  ;;  %1417 = vmatpush1.bf16.msra.mxu1 %v3047_v27  ;;  %v3122_v26 = vld [vmem:[%s3999_s1 + $0x520] ss:$16 sps:$4 sm:$0xff]   ;;  %v3125_v27 = vld [vmem:[%s3999_s1 + $0x528] ss:$16 sps:$4 sm:$0xff]  }
  0x7c   : > { %1332 = vmatprep.subr.bf16.mxu0 %v3052_v28  ;;  %1418 = vmatprep.subr.bf16.mxu1 %v3055_v29  ;;  %v3130_v28 = vld [vmem:[%s3999_s1 + $0x544] ss:$16 sps:$4 sm:$0xff]   ;;  %v3133_v29 = vld [vmem:[%s3999_s1 + $0x54c] ss:$16 sps:$4 sm:$0xff]  }
  0x7f   : > { %1333 = vmatpush1.bf16.msra.mxu0 %v3050_v30  ;;  %1419 = vmatpush1.bf16.msra.mxu1 %v3053_v31  ;;  %v3128_v30 = vld [vmem:[%s3999_s1 + $0x540] ss:$16 sps:$4 sm:$0xff]   ;;  %v3131_v31 = vld [vmem:[%s3999_s1 + $0x548] ss:$16 sps:$4 sm:$0xff]  }
  0x80   : > { %1334 = vmatprep.subr.bf16.mxu0 %v3058_v32  ;;  %1420 = vmatprep.subr.bf16.mxu1 %v3061_v33  ;;  %v3136_v32 = vld [vmem:[%s3999_s1 + $0x564] ss:$16 sps:$4 sm:$0xff]   ;;  %v3139_v33 = vld [vmem:[%s3999_s1 + $0x56c] ss:$16 sps:$4 sm:$0xff]  }
  0x83   : > { %1335 = vmatpush1.bf16.msra.mxu0 %v3056_v34  ;;  %1421 = vmatpush1.bf16.msra.mxu1 %v3059_v35  ;;  %v3134_v34 = vld [vmem:[%s3999_s1 + $0x560] ss:$16 sps:$4 sm:$0xff]   ;;  %v3137_v35 = vld [vmem:[%s3999_s1 + $0x568] ss:$16 sps:$4 sm:$0xff]  }
  0x84   : > { %1336 = vmatprep.subr.bf16.mxu0 %v3064_v36  ;;  %1422 = vmatprep.subr.bf16.mxu1 %v3067_v37  ;;  %v3142_v36 = vld [vmem:[%s3999_s1 + $0x584] ss:$16 sps:$4 sm:$0xff]   ;;  %v3145_v37 = vld [vmem:[%s3999_s1 + $0x58c] ss:$16 sps:$4 sm:$0xff]  }
  0x87   : > { %1337 = vmatpush1.bf16.msra.mxu0 %v3062_v38  ;;  %1423 = vmatpush1.bf16.msra.mxu1 %v3065_v40  ;;  %v3140_v38 = vld [vmem:[%s3999_s1 + $0x580] ss:$16 sps:$4 sm:$0xff]   ;;  %v3143_v40 = vld [vmem:[%s3999_s1 + $0x588] ss:$16 sps:$4 sm:$0xff]  }
  0x88   : > { %1338 = vmatprep.subr.bf16.mxu0 %v3070_v41  ;;  %1424 = vmatprep.subr.bf16.mxu1 %v3073_v42  ;;  %v3148_v41 = vld [vmem:[%s3999_s1 + $0x5a4] ss:$16 sps:$4 sm:$0xff]   ;;  %v3151_v42 = vld [vmem:[%s3999_s1 + $0x5ac] ss:$16 sps:$4 sm:$0xff]  }
  0x8b   : > { %1339 = vmatpush1.bf16.msra.mxu0 %v3068_v43  ;;  %1425 = vmatpush1.bf16.msra.mxu1 %v3071_v44  ;;  %v3146_v43 = vld [vmem:[%s3999_s1 + $0x5a0] ss:$16 sps:$4 sm:$0xff]   ;;  %v3149_v44 = vld [vmem:[%s3999_s1 + $0x5a8] ss:$16 sps:$4 sm:$0xff]  }
  0x8c   : > { %1340 = vmatprep.subr.bf16.mxu0 %v3076_v45  ;;  %1426 = vmatprep.subr.bf16.mxu1 %v3079_v46  ;;  %v3154_v45 = vld [vmem:[%s3999_s1 + $0x5c4] ss:$16 sps:$4 sm:$0xff]   ;;  %v3157_v46 = vld [vmem:[%s3999_s1 + $0x5cc] ss:$16 sps:$4 sm:$0xff]  }
  0x8f   : > { %1341 = vmatpush1.bf16.msra.mxu0 %v3074_v47  ;;  %1427 = vmatpush1.bf16.msra.mxu1 %v3077_v48  ;;  %v3152_v47 = vld [vmem:[%s3999_s1 + $0x5c0] ss:$16 sps:$4 sm:$0xff]   ;;  %v3155_v48 = vld [vmem:[%s3999_s1 + $0x5c8] ss:$16 sps:$4 sm:$0xff]  }
  0x90   : > { %1353 = vmatprep.subr.bf16.mxu0 %v3082_v50  ;;  %1439 = vmatprep.subr.bf16.mxu1 %v3085_v52  ;;  %v3160_v50 = vld [vmem:[%s3999_s1 + $0x5e4] ss:$16 sps:$4 sm:$0xff]   ;;  %v3163_v52 = vld [vmem:[%s3999_s1 + $0x5ec] ss:$16 sps:$4 sm:$0xff]  }
  0x92   : > { %1343 = vmatmul.mubr.bf16.vlgmr.msra.gmra.mrb[0].mxu0 %v3429_v61  ;;  %1429 = vmatmul.mubr.bf16.vlgmr.msra.gmra.mrb[0].mxu1 %v3429_v61  ;;  %v2726_v61 = vcombine.high %v3737_v59, %v3405_v49  ;;  %v3095_v49 = vld [vmem:[%s3999_s1 + $0x488] ss:$16 sps:$4 sm:$0xff]  }
  0x93   : > { %1354 = vmatpush1.bf16.msra.mxu0 %v3080_v53  ;;  %1440 = vmatpush1.bf16.msra.mxu1 %v3083_v55  ;;  %v3158_v53 = vld [vmem:[%s3999_s1 + $0x5e0] ss:$16 sps:$4 sm:$0xff]   ;;  %v3161_v55 = vld [vmem:[%s3999_s1 + $0x5e8] ss:$16 sps:$4 sm:$0xff]  }
  0x94   : > { %1355 = vmatprep.subr.bf16.mxu0 %v3088_v56  ;;  %1441 = vmatprep.subr.bf16.mxu1 %v3091_v51  ;;  %v1569_v2 = vrot.slane %v2726_v61, 1  ;;  %v3166_v56 = vld [vmem:[%s3999_s1 + $0x604] ss:$16 sps:$4 sm:$0xff]   ;;  %v3169_v51 = vld [vmem:[%s3999_s1 + $0x60c] ss:$16 sps:$4 sm:$0xff]  }
  0x95   : > { %1385 = vmatprep.mubr.bf16.mxu0 %v3212_v39  ;;  %1471 = vmatprep.mubr.bf16.mxu1 %v3212_v39  ;;  %v3170_v61 = vld [vmem:[%s3999_s1 + $0x620] ss:$16 sps:$4 sm:$0xff]  }
  0x96   : > { %v1571_v25 = vsel %vm1565_vm2, %v1569_v2, %v1570_v3  ;;  %v3176_v2 = vld [vmem:[%s3999_s1 + $0x640] ss:$16 sps:$4 sm:$0xff]   ;;  %v3179_v3 = vld [vmem:[%s3999_s1 + $0x648] ss:$16 sps:$4 sm:$0xff]  }
  0x97   : > { %1356 = vmatpush1.bf16.msra.mxu0 %v3086_v57  ;;  %1442 = vmatpush1.bf16.msra.mxu1 %v3089_v58  ;;  %v3164_v57 = vld [vmem:[%s3999_s1 + $0x600] ss:$16 sps:$4 sm:$0xff]   ;;  %v3167_v58 = vld [vmem:[%s3999_s1 + $0x608] ss:$16 sps:$4 sm:$0xff]  }
  0x98   : > { %1940 = vmatprep.subr.bf16.mxu0 %v3094_v60  ;;  %2026 = vmatprep.subr.bf16.mxu1 %v3097_v62  ;;  %v3172_v60 = vld [vmem:[%s3999_s1 + $0x624] ss:$16 sps:$4 sm:$0xff]   ;;  %v3175_v62 = vld [vmem:[%s3999_s1 + $0x62c] ss:$16 sps:$4 sm:$0xff]  }
  0x9e   : > { %2651 = vmatmul.mubr.msk.bf16.vlgmr.msra.gmra.mrb[0].mxu0 %vm770_vm1, %v3478_v20  ;;  %2652 = vmatmul.mubr.msk.bf16.vlgmr.msra.gmra.mrb[0].mxu1 %vm770_vm1, %v3478_v20  ;;  %v3109_v20 = vld [vmem:[%s3999_s1 + $0x4cc] ss:$16 sps:$4 sm:$0xff]  }
  0x9f   : > { %1941 = vmatpush1.bf16.msra.mxu0 %v3092_v5  ;;  %2027 = vmatpush1.bf16.msra.mxu1 %v3095_v49  ;;  %v2725_v5 = vcombine.low %v3737_v59, %v3203_v4  ;;  %v3184_v49 = vld [vmem:[%s3999_s1 + $0x664] ss:$16 sps:$4 sm:$0xff]   ;;  %v3185_v59 = vld [vmem:[%s3999_s1 + $0x668] ss:$16 sps:$4 sm:$0xff]  }
  0xa0   : > { %1942 = vmatprep.subr.bf16.mxu0 %v3100_v7  ;;  %2028 = vmatprep.subr.bf16.mxu1 %v3103_v17  ;;  %v3187_v7 = vld [vmem:[%s3999_s1 + $0x66c] ss:$16 sps:$4 sm:$0xff]   ;;  %v3182_v17 = vld [vmem:[%s3999_s1 + $0x660] ss:$16 sps:$4 sm:$0xff]  }
  0xa1   : > { %1972 = vmatprep.mubr.bf16.mxu0 %v1571_v25  ;;  %2058 = vmatprep.mubr.bf16.mxu1 %v1571_v25  ;;  %v1566_v25 = vrot.slane %v2725_v5, 1 }
  0xa3   : > { %1943 = vmatpush1.bf16.msra.mxu0 %v3098_v8  ;;  %2029 = vmatpush1.bf16.msra.mxu1 %v3101_v9  ;;  %v1567_v8 = vrot.slane %v3447_v6, 1  ;;  %v3192_v9 = vld [vmem:[%s3999_s1 + $0x684] ss:$16 sps:$4 sm:$0xff]   ;;  %v3193_v6 = vld [vmem:[%s3999_s1 + $0x688] ss:$16 sps:$4 sm:$0xff]  }
  0xa4   : > { %1944 = vmatprep.subr.bf16.mxu0 %v3106_v10  ;;  %2030 = vmatprep.subr.bf16.mxu1 %v3109_v20  ;;  %v3195_v10 = vld [vmem:[%s3999_s1 + $0x68c] ss:$16 sps:$4 sm:$0xff]  }
  0xa5   : > { %v1568_v20 = vsel %vm1565_vm2, %v1566_v25, %v1567_v8 }
  0xa7   : > { %1945 = vmatpush1.bf16.msra.mxu0 %v3104_v11  ;;  %2031 = vmatpush1.bf16.msra.mxu1 %v3107_v12  ;;  %v3190_v11 = vld [vmem:[%s3999_s1 + $0x680] ss:$16 sps:$4 sm:$0xff]   ;;  %v3198_v12 = vld [vmem:[%s3999_s1 + $0x6a4] ss:$16 sps:$4 sm:$0xff]  }
  0xa8   : > { %1946 = vmatprep.subr.bf16.mxu0 %v3112_v13  ;;  %2032 = vmatprep.subr.bf16.mxu1 %v3115_v14  ;;  %v3201_v13 = vld [vmem:[%s3999_s1 + $0x6ac] ss:$16 sps:$4 sm:$0xff]   ;;  %v3196_v14 = vld [vmem:[%s3999_s1 + $0x6a0] ss:$16 sps:$4 sm:$0xff]  }
  0xab   : > { %1947 = vmatpush1.bf16.msra.mxu0 %v3110_v15  ;;  %2033 = vmatpush1.bf16.msra.mxu1 %v3113_v16  ;;  %v3199_v15 = vld [vmem:[%s3999_s1 + $0x6a8] ss:$16 sps:$4 sm:$0xff]   ;;  %v3213_v16 = vmov 0.0  }
  0xac   : > { %1948 = vmatprep.subr.bf16.mxu0 %v3118_v18  ;;  %2034 = vmatprep.subr.bf16.mxu1 %v3121_v19  ;;  %v2122_v18 = vlaneseq }
  0xae   : > { %v2123_v19 = vshrl.u32 %v2122_v18, 7 }
  0xaf   : > { %1949 = vmatpush1.bf16.msra.mxu0 %v3116_v21  ;;  %2035 = vmatpush1.bf16.msra.mxu1 %v3119_v22 }
  0xb0   : > { %1950 = vmatprep.subr.bf16.mxu0 %v3124_v23  ;;  %2036 = vmatprep.subr.bf16.mxu1 %v3127_v24  ;;  %v2124_v21 = vsub.s32 0, %v2123_v19  ;;  %v2132_v22 = vsub.s32 2, %v2123_v19  ;;  %v2128_v23 = vsub.s32 1, %v2123_v19  ;;  %v2136_v24 = vsub.s32 3, %v2123_v19 }
  0xb3   : > { %1951 = vmatpush1.bf16.msra.mxu0 %v3122_v26  ;;  %2037 = vmatpush1.bf16.msra.mxu1 %v3125_v27  ;;  %v2150_v26 = vld [vmem:[%s4001_s3] sm:$0xf] }
  0xb4   : > { %1952 = vmatprep.subr.bf16.mxu0 %v3130_v28  ;;  %2038 = vmatprep.subr.bf16.mxu1 %v3133_v29 }
  0xb7   : > { %1953 = vmatpush1.bf16.msra.mxu0 %v3128_v30  ;;  %2039 = vmatpush1.bf16.msra.mxu1 %v3131_v31  ;;  %v2155_v30 = vrot.slane %v2150_v26, %v2124_v21  ;;  %v2163_v31 = vrot.slane %v2150_v26, %v2132_v22 }
  0xb8   : > { %1954 = vmatprep.subr.bf16.mxu0 %v3136_v32  ;;  %2040 = vmatprep.subr.bf16.mxu1 %v3139_v33 }
  0xbb   : > { %1955 = vmatpush1.bf16.msra.mxu0 %v3134_v34  ;;  %2041 = vmatpush1.bf16.msra.mxu1 %v3137_v35  ;;  %v2159_v34 = vrot.slane %v2150_v26, %v2128_v23  ;;  %v2167_v35 = vrot.slane %v2150_v26, %v2136_v24 }
  0xbc   : > { %1956 = vmatprep.subr.bf16.mxu0 %v3142_v36  ;;  %2042 = vmatprep.subr.bf16.mxu1 %v3145_v37 }
  0xbf   : > { %1957 = vmatpush1.bf16.msra.mxu0 %v3140_v38  ;;  %2043 = vmatpush1.bf16.msra.mxu1 %v3143_v40 }
  0xc0   : > { %1958 = vmatprep.subr.bf16.mxu0 %v3148_v41  ;;  %2044 = vmatprep.subr.bf16.mxu1 %v3151_v42 }
  0xc3   : > { %1959 = vmatpush1.bf16.msra.mxu0 %v3146_v43  ;;  %2045 = vmatpush1.bf16.msra.mxu1 %v3149_v44 }
  0xc4   : > { %1960 = vmatprep.subr.bf16.mxu0 %v3154_v45  ;;  %2046 = vmatprep.subr.bf16.mxu1 %v3157_v46  ;;  %v2196_v45 = vmul.u32 2, %v2123_v19 }
  0xc6   : > { %v2275_v25 = vadd.s32 1, %v2196_v45 }
  0xc7   : > { %1961 = vmatpush1.bf16.msra.mxu0 %v3152_v47  ;;  %2047 = vmatpush1.bf16.msra.mxu1 %v3155_v48 }
  0xc8   : > { %1962 = vmatprep.subr.bf16.mxu0 %v3160_v50  ;;  %2048 = vmatprep.subr.bf16.mxu1 %v3163_v52 }
  0xcb   : > { %1963 = vmatpush1.bf16.msra.mxu0 %v3158_v53  ;;  %2049 = vmatpush1.bf16.msra.mxu1 %v3161_v55 }
  0xcc   : > { %1964 = vmatprep.subr.bf16.mxu0 %v3166_v56  ;;  %2050 = vmatprep.subr.bf16.mxu1 %v3169_v51 }
  0xcf   : > { %1965 = vmatpush1.bf16.msra.mxu0 %v3164_v57  ;;  %2051 = vmatpush1.bf16.msra.mxu1 %v3167_v58 }
  0xd0   : > { %1966 = vmatprep.subr.bf16.mxu0 %v3172_v60  ;;  %2052 = vmatprep.subr.bf16.mxu1 %v3175_v62 }
  0xd3   : > { %1967 = vmatpush1.bf16.msra.mxu0 %v3170_v61  ;;  %2053 = vmatpush1.bf16.msra.mxu1 %v3173_v63 }
  0xd4   : > { %1968 = vmatprep.subr.bf16.mxu0 %v3178_v0  ;;  %2054 = vmatprep.subr.bf16.mxu1 %v3181_v1 }
  0xd7   : > { %1969 = vmatpush1.bf16.msra.mxu0 %v3176_v2  ;;  %2055 = vmatpush1.bf16.msra.mxu1 %v3179_v3 }
  0xd8   : > { %1970 = vmatprep.subr.bf16.mxu0 %v3184_v49  ;;  %2056 = vmatprep.subr.bf16.mxu1 %v3187_v7  ;;  %v2195_v49 = vand.u32 127, %v2122_v18 }
  0xda   : > { %vm2197_vm3 = vcmp.eq.s32.totalorder %v2195_v49, %v2196_v45  ;;  %vm2276_vm4 = vcmp.eq.s32.totalorder %v2195_v49, %v2275_v25 }
  0xdb   : > { %1971 = vmatpush1.bf16.msra.mxu0 %v3182_v17  ;;  %2057 = vmatpush1.bf16.msra.mxu1 %v3185_v59 }
  0xdc   : > { %1983 = vmatprep.subr.bf16.mxu0 %v3192_v9  ;;  %2069 = vmatprep.subr.bf16.mxu1 %v3195_v10 }
  0xde   : > { %1973 = vmatmul.mubr.bf16.vlgmr.msra.gmra.mrb[0].mxu0 %v1568_v20  ;;  %2059 = vmatmul.mubr.bf16.vlgmr.msra.gmra.mrb[0].mxu1 %v1568_v20 }
  0xdf   : > { %1984 = vmatpush1.bf16.msra.mxu0 %v3190_v11  ;;  %2070 = vmatpush1.bf16.msra.mxu1 %v3193_v6  ;;  %v2802_v11 = vsel %vm2197_vm3, 1.0, %v3213_v16  ;;  %v2804_v6 = vsel %vm2276_vm4, 1.0, %v3213_v16 }
  0xe0   : > { %1985 = vmatprep.subr.bf16.mxu0 %v3198_v12  ;;  %2071 = vmatprep.subr.bf16.mxu1 %v3201_v13 }
  0xe1   : > { %2015 = vmatprep.mubr.bf16.mxu0 %v3212_v39  ;;  %2101 = vmatprep.mubr.bf16.mxu1 %v3212_v39  ;;  %v2120_v39 = vld [vmem:[%s4000_s2] sm:$0xf] }
  0xe2   : > { %v2133_v27 = vrot.slane %v2120_v39, %v2132_v22  ;;  %v2129_v28 = vrot.slane %v2120_v39, %v2128_v23  ;;  %v2137_v29 = vrot.slane %v2120_v39, %v2136_v24 }
  0xe3   : > { %1986 = vmatpush1.bf16.msra.mxu0 %v3196_v14  ;;  %2072 = vmatpush1.bf16.msra.mxu1 %v3199_v15 }
  0xea   : > { %2800 = vmatmul.mubr.msk.bf16.vlgmr.msra.gmra.mrb[0].mxu0 %vm770_vm1, %v3766_v54  ;;  %2801 = vmatmul.mubr.msk.bf16.vlgmr.msra.gmra.mrb[0].mxu1 %vm770_vm1, %v3766_v54  ;;  %v2125_v54 = vrot.slane %v2120_v39, %v2124_v21 }
  0xeb   : > { %2268 = vmatprep.mubr.f32.mxu0 %v3213_v16  ;;  %2346 = vmatprep.mubr.f32.mxu1 %v3213_v16 }
 0x1bd   : > { %v2017_v32 = vpop.f32.mrb[0].mxu0  ;;  %v2103_v33 = vpop.f32.mrb[0].mxu1 }
 0x1be   : > { %v2142_v36 = vmul.f32 %v2125_v54, %v2017_v32  ;;  %v2144_v37 = vmul.f32 %v2133_v27, %v2103_v33  ;;  %v2019_v38 = vpop.f32.mrb[1].mxu0  ;;  %v2105_v40 = vpop.f32.mrb[1].mxu1 }
 0x1bf   : > { %v2143_v41 = vmul.f32 %v2129_v28, %v2019_v38  ;;  %v2145_v42 = vmul.f32 %v2137_v29, %v2105_v40  ;;  %v2021_v43 = vpop.f32.mrb[2].mxu0  ;;  %v2107_v44 = vpop.f32.mrb[2].mxu1 }
 0x1c0   : > { %v2172_v46 = vadd.f32 %v2155_v30, %v2142_v36  ;;  %v2174_v47 = vadd.f32 %v2163_v31, %v2144_v37  ;;  %v2146_v48 = vmul.f32 %v2125_v54, %v2021_v43  ;;  %v2148_v50 = vmul.f32 %v2133_v27, %v2107_v44  ;;  %v2023_v52 = vpop.f32.mrb[3].mxu0  ;;  %v2109_v53 = vpop.f32.mrb[3].mxu1 }
 0x1c1   : > { %v2173_v55 = vadd.f32 %v2159_v34, %v2143_v41  ;;  %v2175_v56 = vadd.f32 %v2167_v35, %v2145_v42  ;;  %v2147_v51 = vmul.f32 %v2129_v28, %v2023_v52  ;;  %v2149_v57 = vmul.f32 %v2137_v29, %v2109_v53 }
 0x1c2   : > { %v2180_v58 = vmax.f32 %v2172_v46, 0.0  ;;  %v2182_v60 = vmax.f32 %v2174_v47, 0.0  ;;  %v2176_v62 = vadd.f32 %v2155_v30, %v2146_v48  ;;  %v2178_v61 = vadd.f32 %v2163_v31, %v2148_v50 }
 0x1c3   : > { %v2181_v63 = vmax.f32 %v2173_v55, 0.0  ;;  %v2183_v0 = vmax.f32 %v2175_v56, 0.0  ;;  %v2177_v1 = vadd.f32 %v2159_v34, %v2147_v51  ;;  %v2179_v2 = vadd.f32 %v2167_v35, %v2149_v57 }
 0x1c4   : > { %v2188_v3 = vmax.f32 %v2180_v58, %v2182_v60  ;;  %v2184_v4 = vmax.f32 %v2176_v62, 0.0  ;;  %v2186_v5 = vmax.f32 %v2178_v61, 0.0 }
 0x1c5   : > { %v2189_v7 = vmax.f32 %v2181_v63, %v2183_v0  ;;  %v2185_v17 = vmax.f32 %v2177_v1, 0.0  ;;  %v2187_v59 = vmax.f32 %v2179_v2, 0.0 }
 0x1c6   : > { %v2190_v8 = vmax.f32 %v2184_v4, %v2186_v5 }
 0x1c7   : > { %v2191_v9 = vmax.f32 %v2185_v17, %v2187_v59 }
 0x1c8   : > { %v2813_v10 = vpack.c.bf16 %v2190_v8, %v2188_v3 }
 0x1c9   : > { %v2811_v20 = vpack.c.bf16 %v2191_v9, %v2189_v7 }
 0x1cb   : > { %2812 = vmatprep.subr.bf16.mxu0 %v2811_v20  ;;  %2816 = vmatprep.subr.bf16.mxu1 %v2811_v20 }
 0x1cc   : > { %2814 = vmatpush1.bf16.msra.mxu0 %v2813_v10  ;;  %2818 = vmatpush1.bf16.msra.mxu1 %v2813_v10 }
 0x1cf   : > { %2803 = vmatmul.mubr.msk.f32.vlgmr.msra.gmra.mrb[4].mxu0 %vm2200_vm5, %v2802_v11  ;;  %2805 = vmatmul.mubr.msk.f32.vlgmr.msra.gmra.mrb[4].mxu1 %vm2200_vm5, %v2804_v6 }
 0x2a2   : > { %v2270_v12 = vpop.f32.mrb[4].mxu0  ;;  %v2348_v13 = vpop.f32.mrb[4].mxu1 }
 0x2a3   : > { %v2353_v14 = vmax.f32 %v2270_v12, %v2348_v13  ;;  %v2272_v15 = vpop.f32.mrb[5].mxu0  ;;  %v2350_v18 = vpop.f32.mrb[5].mxu1 }
 0x2a4   : > { %v2354_v19 = vmax.f32 %v2272_v15, %v2350_v18 }
 0x2a6   : > { %v2810_v21 = vpack.c.bf16 %v2354_v19, %v2353_v14 }
 0x2a8   : > { %2363 = vst [vmem:[%s197_s10] sm:$0xff] %v2810_v21 }
 0x2a9 PF: > { %s14_s15 = sadd.s32 1, %s3210_s15  }
 0x2aa   : > { %p11_p4 = scmp.ge.s32.totalorder %s14_s15, 4  }
 0x2ac   :  { %13 = sbr.rel (!%p11_p4) target bundleno = 1 (0x1), region = 68 }

// kernel: net_forward.6
= control target key start
LH: loop header
LB: loop body
LE: loop exit
PB: predicated region body
PF: predicated region fallthrough
CT: control target
= control target key end

     0   :  { %s3386_s15 = smov 0   ;;  %s4181_s0 = inlined_call_operand.vmem [shape: bf16[2,10,320], index: 0, kind: input, shape index: {}]   ;;  %s4182_s1 = inlined_call_operand.vmem [shape: bf16[3,320,512], index: 1, kind: input, shape index: {}]   ;;  %s4183_s2 = inlined_call_operand.vmem [shape: f32[1,512], index: 2, kind: input, shape index: {}]   ;;  %s4184_s3 = inlined_call_operand.vmem [shape: f32[1,512], index: 3, kind: input, shape index: {}]   ;;  %s4185_s4 = inlined_call_operand.vmem [shape: bf16[2,4,256], index: 4, kind: output, shape index: {}]  }
   0x1 LB: > { %s2497_s16 = sadd.s32 4294967295, %s3357_s15   ;;  %p2501_p0 = scmp.ge.s32.totalorder %s3357_s15, 1  ;;  %s3357_s15 = sphi %s3386_s15, %s14_s15  }
   0x2   : > { %p162_p1 = scmp.lt.s32.totalorder %s3357_s15, 3 }
   0x4   : > { %p163_p2 = pnand %p2501_p0, %p162_p1 }
   0x5   : > { %v2980_v0 = vld [vmem:[%s4182_s1 + $0x284] ss:$16 sps:$4 sm:$0xff] (!%p163_p2)   ;;  %v2982_v1 = vld [vmem:[%s4182_s1 + $0x28c] ss:$16 sps:$4 sm:$0xff] (!%p163_p2)   ;;  %v2984_v2 = vld [vmem:[%s4182_s1 + $0x280] ss:$16 sps:$4 sm:$0xff] (!%p163_p2)  }
   0x6   : > { %166 = sbr.rel (%p163_p2) target bundleno = 687 (0x2af), region = 36  ;;  %804 = vmatprep.subr.bf16.mxu0 (!%p163_p2), %v2980_v0  ;;  %v2985_v3 = vld [vmem:[%s4182_s1 + $0x288] ss:$16 sps:$4 sm:$0xff] (!%p163_p2)   ;;  %886 = vmatprep.subr.bf16.mxu1 (!%p163_p2), %v2982_v1  ;;  %v2986_v4 = vld [vmem:[%s4182_s1 + $0x2a4] ss:$16 sps:$4 sm:$0xff] (!%p163_p2)   ;;  %p188_p3 = scmp.lt.s32.totalorder (!%p163_p2), %s2497_s16, 1 }
   0x7   : > { %805 = vmatpush1.bf16.msra.mxu0 (!%p163_p2), %v2984_v2  ;;  %887 = vmatpush1.bf16.msra.mxu1 (!%p163_p2), %v2985_v3  ;;  %v2988_v5 = vld [vmem:[%s4182_s1 + $0x2ac] ss:$16 sps:$4 sm:$0xff] (!%p163_p2)   ;;  %v2990_v6 = vld [vmem:[%s4182_s1 + $0x2a0] ss:$16 sps:$4 sm:$0xff] (!%p163_p2)   ;;  %v2991_v7 = vld [vmem:[%s4182_s1 + $0x2a8] ss:$16 sps:$4 sm:$0xff] (!%p163_p2)  }
   0x8   : > { %806 = vmatprep.subr.bf16.mxu0 (!%p163_p2), %v2986_v4  ;;  %888 = vmatprep.subr.bf16.mxu1 (!%p163_p2), %v2988_v5  ;;  %v2992_v8 = vld [vmem:[%s4182_s1 + $0x2c4] ss:$16 sps:$4 sm:$0xff] (!%p163_p2)   ;;  %v2994_v9 = vld [vmem:[%s4182_s1 + $0x2cc] ss:$16 sps:$4 sm:$0xff] (!%p163_p2)   ;;  %v2996_v10 = vld [vmem:[%s4182_s1 + $0x2c0] ss:$16 sps:$4 sm:$0xff] (!%p163_p2)  }
   0x9   : > { %v2997_v11 = vld [vmem:[%s4182_s1 + $0x2c8] ss:$16 sps:$4 sm:$0xff] (!%p163_p2)   ;;  %v2998_v12 = vld [vmem:[%s4182_s1 + $0x2e4] ss:$16 sps:$4 sm:$0xff] (!%p163_p2)   ;;  %v3000_v13 = vld [vmem:[%s4182_s1 + $0x2ec] ss:$16 sps:$4 sm:$0xff] (!%p163_p2)  }
   0xa   : > { %v3002_v14 = vld [vmem:[%s4182_s1 + $0x2e0] ss:$16 sps:$4 sm:$0xff] (!%p163_p2)   ;;  %v3003_v15 = vld [vmem:[%s4182_s1 + $0x2e8] ss:$16 sps:$4 sm:$0xff] (!%p163_p2)   ;;  %v3004_v16 = vld [vmem:[%s4182_s1 + $0x304] ss:$16 sps:$4 sm:$0xff] (!%p163_p2)  }
   0xb   : > { %807 = vmatpush1.bf16.msra.mxu0 (!%p163_p2), %v2990_v6  ;;  %889 = vmatpush1.bf16.msra.mxu1 (!%p163_p2), %v2991_v7  ;;  %v3006_v17 = vld [vmem:[%s4182_s1 + $0x30c] ss:$16 sps:$4 sm:$0xff] (!%p163_p2)   ;;  %v3008_v18 = vld [vmem:[%s4182_s1 + $0x300] ss:$16 sps:$4 sm:$0xff] (!%p163_p2)   ;;  %v3009_v19 = vld [vmem:[%s4182_s1 + $0x308] ss:$16 sps:$4 sm:$0xff] (!%p163_p2)  }
   0xc   : > { %808 = vmatprep.subr.bf16.mxu0 (!%p163_p2), %v2992_v8  ;;  %890 = vmatprep.subr.bf16.mxu1 (!%p163_p2), %v2994_v9  ;;  %v3010_v20 = vld [vmem:[%s4182_s1 + $0x324] ss:$16 sps:$4 sm:$0xff] (!%p163_p2)   ;;  %v3012_v21 = vld [vmem:[%s4182_s1 + $0x32c] ss:$16 sps:$4 sm:$0xff] (!%p163_p2)   ;;  %v3014_v22 = vld [vmem:[%s4182_s1 + $0x320] ss:$16 sps:$4 sm:$0xff] (!%p163_p2)  }
   0xd   : > { %v3015_v23 = vld [vmem:[%s4182_s1 + $0x328] ss:$16 sps:$4 sm:$0xff]   ;;  %v3016_v24 = vld [vmem:[%s4182_s1 + $0x344] ss:$16 sps:$4 sm:$0xff]   ;;  %v3018_v25 = vld [vmem:[%s4182_s1 + $0x34c] ss:$16 sps:$4 sm:$0xff]  }
   0xe   : > { %v3020_v26 = vld [vmem:[%s4182_s1 + $0x340] ss:$16 sps:$4 sm:$0xff]   ;;  %v3021_v27 = vld [vmem:[%s4182_s1 + $0x348] ss:$16 sps:$4 sm:$0xff]   ;;  %v3022_v28 = vld [vmem:[%s4182_s1 + $0x364] ss:$16 sps:$4 sm:$0xff]  }
   0xf   : > { %809 = vmatpush1.bf16.msra.mxu0 %v2996_v10  ;;  %891 = vmatpush1.bf16.msra.mxu1 %v2997_v11  ;;  %v3024_v29 = vld [vmem:[%s4182_s1 + $0x36c] ss:$16 sps:$4 sm:$0xff]   ;;  %v3026_v30 = vld [vmem:[%s4182_s1 + $0x360] ss:$16 sps:$4 sm:$0xff]   ;;  %v3027_v31 = vld [vmem:[%s4182_s1 + $0x368] ss:$16 sps:$4 sm:$0xff]  }
  0x10   : > { %810 = vmatprep.subr.bf16.mxu0 %v2998_v12  ;;  %892 = vmatprep.subr.bf16.mxu1 %v3000_v13  ;;  %v3028_v32 = vld [vmem:[%s4182_s1 + $0x384] ss:$16 sps:$4 sm:$0xff]   ;;  %v3030_v33 = vld [vmem:[%s4182_s1 + $0x38c] ss:$16 sps:$4 sm:$0xff]   ;;  %v3032_v34 = vld [vmem:[%s4182_s1 + $0x380] ss:$16 sps:$4 sm:$0xff]  }
  0x11   : > { %v3033_v35 = vld [vmem:[%s4182_s1 + $0x388] ss:$16 sps:$4 sm:$0xff]   ;;  %s4187_s16 = smov (!%p188_p3, %s2497_s16), 1  ;;  %v3034_v36 = vld [vmem:[%s4182_s1 + $0x3a4] ss:$16 sps:$4 sm:$0xff]   ;;  %vm800_vm0 = vcmask 523264  }
  0x12   : > { %v3036_v37 = vld [vmem:[%s4182_s1 + $0x3ac] ss:$16 sps:$4 sm:$0xff]   ;;  %v3038_v38 = vld [vmem:[%s4182_s1 + $0x3a0] ss:$16 sps:$4 sm:$0xff]   ;;  %s2969_s23 = smul.u32 24, %s4187_s16  ;;  %vm2273_vm3 = vcmask 64512  }
  0x13   : > { %811 = vmatpush1.bf16.msra.mxu0 %v3002_v14  ;;  %893 = vmatpush1.bf16.msra.mxu1 %v3003_v15  ;;  %v3039_v39 = vld [vmem:[%s4182_s1 + $0x3a8] ss:$16 sps:$4 sm:$0xff]   ;;  %v3040_v40 = vld [vmem:[%s4182_s1 + $0x3c4] ss:$16 sps:$4 sm:$0xff]   ;;  %v3042_v41 = vld [vmem:[%s4182_s1 + $0x3cc] ss:$16 sps:$4 sm:$0xff]  }
  0x14   : > { %812 = vmatprep.subr.bf16.mxu0 %v3004_v16  ;;  %894 = vmatprep.subr.bf16.mxu1 %v3006_v17  ;;  %v3044_v42 = vld [vmem:[%s4182_s1 + $0x3c0] ss:$16 sps:$4 sm:$0xff]   ;;  %v3045_v43 = vld [vmem:[%s4182_s1 + $0x3c8] ss:$16 sps:$4 sm:$0xff]   ;;  %s3536_s10 = scalar_lea.vmem %s4181_s0, %s2969_s23  ;;  %v3046_v44 = vld [vmem:[%s4182_s1 + $0x3e4] ss:$16 sps:$4 sm:$0xff]  }
  0x15   : > { %v3048_v45 = vld [vmem:[%s4182_s1 + $0x3ec] ss:$16 sps:$4 sm:$0xff]   ;;  %v3545_v46 = vld [vmem:[%s3536_s10] sm:$0xff]  ;;  %v3051_v49 = vld [vmem:[%s4182_s1 + $0x3e8] ss:$16 sps:$4 sm:$0xff]   ;;  %s2928_s17 = sshll.u32 %s4187_s16, 2 }
  0x16   : > { %v3548_v47 = vld [vmem:[%s3536_s10 + $0xc] sm:$0x11]  ;;  %v3052_v51 = vld [vmem:[%s4182_s1 + $0x404] ss:$16 sps:$4 sm:$0xff]   ;;  %v3057_v56 = vld [vmem:[%s4182_s1 + $0x408] ss:$16 sps:$4 sm:$0xff]   ;;  %s197_s20 = scalar_lea.vmem %s4185_s4, %s2928_s17 }
  0x17   : > { %813 = vmatpush1.bf16.msra.mxu0 %v3008_v18  ;;  %895 = vmatpush1.bf16.msra.mxu1 %v3009_v19  ;;  %v3050_v48 = vld [vmem:[%s4182_s1 + $0x3e0] ss:$16 sps:$4 sm:$0xff]   ;;  %v2586_v50 = vcombine.high %v3545_v46, %v3548_v47  ;;  %v3054_v52 = vld [vmem:[%s4182_s1 + $0x40c] ss:$16 sps:$4 sm:$0xff]   ;;  %v3058_v58 = vld [vmem:[%s4182_s1 + $0x424] ss:$16 sps:$4 sm:$0xff]   ;;  %v2585_v62 = vcombine.low %v3545_v46, %v3548_v47 }
  0x18   : > { %814 = vmatprep.subr.bf16.mxu0 %v3010_v20  ;;  %896 = vmatprep.subr.bf16.mxu1 %v3012_v21  ;;  %v3056_v55 = vld [vmem:[%s4182_s1 + $0x400] ss:$16 sps:$4 sm:$0xff]   ;;  %v3060_v59 = vld [vmem:[%s4182_s1 + $0x42c] ss:$16 sps:$4 sm:$0xff]   ;;  %v3063_v63 = vld [vmem:[%s4182_s1 + $0x428] ss:$16 sps:$4 sm:$0xff]  }
  0x19   : > { %v385_v53 = vshrl.u32 %v2586_v50, 16  ;;  %v387_v54 = vshll.u32 %v2586_v50, 16  ;;  %v3062_v61 = vld [vmem:[%s4182_s1 + $0x420] ss:$16 sps:$4 sm:$0xff]   ;;  %v3064_v0 = vld [vmem:[%s4182_s1 + $0x444] ss:$16 sps:$4 sm:$0xff]  }
  0x1a   : > { %v3066_v1 = vld [vmem:[%s4182_s1 + $0x44c] ss:$16 sps:$4 sm:$0xff]   ;;  %v380_v2 = vshll.u32 %v2585_v62, 16  ;;  %v3068_v3 = vld [vmem:[%s4182_s1 + $0x440] ss:$16 sps:$4 sm:$0xff]   ;;  %v378_v8 = vshrl.u32 %v2585_v62, 16 }
  0x1b   : > { %815 = vmatpush1.bf16.msra.mxu0 %v3014_v22  ;;  %897 = vmatpush1.bf16.msra.mxu1 %v3015_v23  ;;  %v389_v57 = vrot.slane %v387_v54, 1  ;;  %v3069_v4 = vld [vmem:[%s4182_s1 + $0x448] ss:$16 sps:$4 sm:$0xff]   ;;  %v3070_v5 = vld [vmem:[%s4182_s1 + $0x464] ss:$16 sps:$4 sm:$0xff]  }
  0x1c   : > { %816 = vmatprep.subr.bf16.mxu0 %v3016_v24  ;;  %898 = vmatprep.subr.bf16.mxu1 %v3018_v25  ;;  %v3072_v6 = vld [vmem:[%s4182_s1 + $0x46c] ss:$16 sps:$4 sm:$0xff]   ;;  %v3074_v7 = vld [vmem:[%s4182_s1 + $0x460] ss:$16 sps:$4 sm:$0xff]   ;;  %v382_v9 = vrot.slane %v380_v2, 1  ;;  %v3359_v25 = vmov 0  }
  0x1d   : > { %v390_v60 = vor.u32 %v389_v57, %v385_v53  ;;  %v3075_v10 = vld [vmem:[%s4182_s1 + $0x468] ss:$16 sps:$4 sm:$0xff]   ;;  %v3079_v11 = vld [vmem:[%s4182_s1 + $0x484] ss:$16 sps:$4 sm:$0xff]   ;;  %v3082_v12 = vld [vmem:[%s4182_s1 + $0x48c] ss:$16 sps:$4 sm:$0xff]  }
  0x1e   : > { %v3077_v13 = vld [vmem:[%s4182_s1 + $0x480] ss:$16 sps:$4 sm:$0xff]   ;;  %v3080_v14 = vld [vmem:[%s4182_s1 + $0x488] ss:$16 sps:$4 sm:$0xff]   ;;  %v383_v15 = vor.u32 %v382_v9, %v378_v8  ;;  %v282_v17 = vld [vmem:[%s3536_s10 + $0x14] sm:$0x1] }
  0x1f   : > { %817 = vmatpush1.bf16.msra.mxu0 %v3020_v26  ;;  %899 = vmatpush1.bf16.msra.mxu1 %v3021_v27  ;;  %v3621_v16 = vld [vmem:[%s3536_s10 + $0x8] sm:$0xf]  ;;  %v3086_v18 = vld [vmem:[%s4182_s1 + $0x4a4] ss:$16 sps:$4 sm:$0xff]   ;;  %v3089_v19 = vld [vmem:[%s4182_s1 + $0x4ac] ss:$16 sps:$4 sm:$0xff]  }
  0x20   : > { %818 = vmatprep.subr.bf16.mxu0 %v3022_v28  ;;  %900 = vmatprep.subr.bf16.mxu1 %v3024_v29  ;;  %v3084_v20 = vld [vmem:[%s4182_s1 + $0x4a0] ss:$16 sps:$4 sm:$0xff]   ;;  %v2587_v21 = vcombine.low %v3621_v16, %v282_v17  ;;  %v3087_v22 = vld [vmem:[%s4182_s1 + $0x4a8] ss:$16 sps:$4 sm:$0xff]   ;;  %v3092_v23 = vld [vmem:[%s4182_s1 + $0x4c4] ss:$16 sps:$4 sm:$0xff]  }
  0x21   : > { %836 = vmatprep.mubr.bf16.mxu0 %v390_v60  ;;  %918 = vmatprep.mubr.bf16.mxu1 %v390_v60  ;;  %v3095_v24 = vld [vmem:[%s4182_s1 + $0x4cc] ss:$16 sps:$4 sm:$0xff]   ;;  %v3090_v26 = vld [vmem:[%s4182_s1 + $0x4c0] ss:$16 sps:$4 sm:$0xff]   ;;  %v3093_v28 = vld [vmem:[%s4182_s1 + $0x4c8] ss:$16 sps:$4 sm:$0xff]  }
  0x22   : > { %v394_v27 = vshll.u32 %v2587_v21, 16  ;;  %v3098_v29 = vld [vmem:[%s4182_s1 + $0x4e4] ss:$16 sps:$4 sm:$0xff]   ;;  %v3118_v50 = vld [vmem:[%s4182_s1 + $0x48] ss:$16 sps:$4 sm:$0xff]  }
  0x23   : > { %819 = vmatpush1.bf16.msra.mxu0 %v3026_v30  ;;  %901 = vmatpush1.bf16.msra.mxu1 %v3027_v31  ;;  %v3101_v30 = vld [vmem:[%s4182_s1 + $0x4ec] ss:$16 sps:$4 sm:$0xff]   ;;  %v3096_v31 = vld [vmem:[%s4182_s1 + $0x4e0] ss:$16 sps:$4 sm:$0xff]   ;;  %v3124_v54 = vld [vmem:[%s4182_s1 + $0x68] ss:$16 sps:$4 sm:$0xff]  }
  0x24   : > { %820 = vmatprep.subr.bf16.mxu0 %v3028_v32  ;;  %902 = vmatprep.subr.bf16.mxu1 %v3030_v33  ;;  %v392_v32 = vshrl.u32 %v2587_v21, 16  ;;  %v396_v33 = vrot.slane %v394_v27, 1  ;;  %v3121_v53 = vld [vmem:[%s4182_s1 + $0x60] ss:$16 sps:$4 sm:$0xff]   ;;  %v3138_v60 = vld [vmem:[%s4182_s1 + $0xac] ss:$16 sps:$4 sm:$0xff]  }
  0x25   : > { %v3127_v57 = vld [vmem:[%s4182_s1 + $0x80] ss:$16 sps:$4 sm:$0xff]   ;;  %v3136_v62 = vld [vmem:[%s4182_s1 + $0xa8] ss:$16 sps:$4 sm:$0xff]   ;;  %v3156_v8 = vld [vmem:[%s4182_s1 + $0x10c] ss:$16 sps:$4 sm:$0xff]  }
  0x26   : > { %v3142_v2 = vld [vmem:[%s4182_s1 + $0xc8] ss:$16 sps:$4 sm:$0xff]   ;;  %v3151_v9 = vld [vmem:[%s4182_s1 + $0x100] ss:$16 sps:$4 sm:$0xff]   ;;  %v3168_v17 = vld [vmem:[%s4182_s1 + $0x14c] ss:$16 sps:$4 sm:$0xff]  }
  0x27   : > { %821 = vmatpush1.bf16.msra.mxu0 %v3032_v34  ;;  %903 = vmatpush1.bf16.msra.mxu1 %v3033_v35  ;;  %v3099_v34 = vld [vmem:[%s4182_s1 + $0x4e8] ss:$16 sps:$4 sm:$0xff]   ;;  %v3104_v35 = vld [vmem:[%s4182_s1 + $0x4] ss:$16 sps:$4 sm:$0xff]   ;;  %v3174_v21 = vld [vmem:[%s4182_s1 + $0x16c] ss:$16 sps:$4 sm:$0xff]  }
  0x28   : > { %822 = vmatprep.subr.bf16.mxu0 %v3034_v36  ;;  %904 = vmatprep.subr.bf16.mxu1 %v3036_v37  ;;  %v3107_v36 = vld [vmem:[%s4182_s1 + $0xc] ss:$16 sps:$4 sm:$0xff]   ;;  %v3102_v37 = vld [vmem:[%s4182_s1] ss:$16 sps:$4 sm:$0xff]  }
  0x29   : > { %v3175_v27 = vld [vmem:[%s4182_s1 + $0x180] ss:$16 sps:$4 sm:$0xff]  }
  0x2b   : > { %823 = vmatpush1.bf16.msra.mxu0 %v3038_v38  ;;  %905 = vmatpush1.bf16.msra.mxu1 %v3039_v39  ;;  %v397_v38 = vor.u32 %v396_v33, %v392_v32  ;;  %v3105_v39 = vld [vmem:[%s4182_s1 + $0x8] ss:$16 sps:$4 sm:$0xff]   ;;  %v3189_v33 = vld [vmem:[%s4182_s1 + $0x1c4] ss:$16 sps:$4 sm:$0xff]  }
  0x2c   : > { %824 = vmatprep.subr.bf16.mxu0 %v3040_v40  ;;  %906 = vmatprep.subr.bf16.mxu1 %v3042_v41  ;;  %v3111_v40 = vld [vmem:[%s4182_s1 + $0x24] ss:$16 sps:$4 sm:$0xff]   ;;  %v3114_v41 = vld [vmem:[%s4182_s1 + $0x2c] ss:$16 sps:$4 sm:$0xff]   ;;  %v3184_v32 = vld [vmem:[%s4182_s1 + $0x1a8] ss:$16 sps:$4 sm:$0xff]  }
  0x2f   : > { %825 = vmatpush1.bf16.msra.mxu0 %v3044_v42  ;;  %907 = vmatpush1.bf16.msra.mxu1 %v3045_v43  ;;  %v2671_v42 = vcombine.high %v3545_v46, %v3545_v46  ;;  %v3109_v43 = vld [vmem:[%s4182_s1 + $0x20] ss:$16 sps:$4 sm:$0xff]  }
  0x30   : > { %826 = vmatprep.subr.bf16.mxu0 %v3046_v44  ;;  %908 = vmatprep.subr.bf16.mxu1 %v3048_v45  ;;  %v3112_v44 = vld [vmem:[%s4182_s1 + $0x28] ss:$16 sps:$4 sm:$0xff]   ;;  %v3117_v45 = vld [vmem:[%s4182_s1 + $0x44] ss:$16 sps:$4 sm:$0xff]  }
  0x33   : > { %827 = vmatpush1.bf16.msra.mxu0 %v3050_v48  ;;  %909 = vmatpush1.bf16.msra.mxu1 %v3051_v49  ;;  %v3120_v48 = vld [vmem:[%s4182_s1 + $0x4c] ss:$16 sps:$4 sm:$0xff]   ;;  %v3115_v49 = vld [vmem:[%s4182_s1 + $0x40] ss:$16 sps:$4 sm:$0xff]  }
  0x34   : > { %828 = vmatprep.subr.bf16.mxu0 %v3052_v51  ;;  %910 = vmatprep.subr.bf16.mxu1 %v3054_v52  ;;  %v3123_v51 = vld [vmem:[%s4182_s1 + $0x64] ss:$16 sps:$4 sm:$0xff]   ;;  %v3126_v52 = vld [vmem:[%s4182_s1 + $0x6c] ss:$16 sps:$4 sm:$0xff]  }
  0x37   : > { %829 = vmatpush1.bf16.msra.mxu0 %v3056_v55  ;;  %911 = vmatpush1.bf16.msra.mxu1 %v3057_v56  ;;  %v3129_v55 = vld [vmem:[%s4182_s1 + $0x84] ss:$16 sps:$4 sm:$0xff]   ;;  %v3132_v56 = vld [vmem:[%s4182_s1 + $0x8c] ss:$16 sps:$4 sm:$0xff]  }
  0x38   : > { %830 = vmatprep.subr.bf16.mxu0 %v3058_v58  ;;  %912 = vmatprep.subr.bf16.mxu1 %v3060_v59  ;;  %v3130_v58 = vld [vmem:[%s4182_s1 + $0x88] ss:$16 sps:$4 sm:$0xff]   ;;  %v3135_v59 = vld [vmem:[%s4182_s1 + $0xa4] ss:$16 sps:$4 sm:$0xff]  }
  0x3b   : > { %831 = vmatpush1.bf16.msra.mxu0 %v3062_v61  ;;  %913 = vmatpush1.bf16.msra.mxu1 %v3063_v63  ;;  %v3133_v61 = vld [vmem:[%s4182_s1 + $0xa0] ss:$16 sps:$4 sm:$0xff]   ;;  %v3141_v63 = vld [vmem:[%s4182_s1 + $0xc4] ss:$16 sps:$4 sm:$0xff]  }
  0x3c   : > { %832 = vmatprep.subr.bf16.mxu0 %v3064_v0  ;;  %914 = vmatprep.subr.bf16.mxu1 %v3066_v1  ;;  %v3144_v0 = vld [vmem:[%s4182_s1 + $0xcc] ss:$16 sps:$4 sm:$0xff]   ;;  %v3139_v1 = vld [vmem:[%s4182_s1 + $0xc0] ss:$16 sps:$4 sm:$0xff]  }
  0x3f   : > { %833 = vmatpush1.bf16.msra.mxu0 %v3068_v3  ;;  %915 = vmatpush1.bf16.msra.mxu1 %v3069_v4  ;;  %v3147_v3 = vld [vmem:[%s4182_s1 + $0xe4] ss:$16 sps:$4 sm:$0xff]   ;;  %v3150_v4 = vld [vmem:[%s4182_s1 + $0xec] ss:$16 sps:$4 sm:$0xff]  }
  0x40   : > { %834 = vmatprep.subr.bf16.mxu0 %v3070_v5  ;;  %916 = vmatprep.subr.bf16.mxu1 %v3072_v6  ;;  %v3145_v5 = vld [vmem:[%s4182_s1 + $0xe0] ss:$16 sps:$4 sm:$0xff]   ;;  %v3148_v6 = vld [vmem:[%s4182_s1 + $0xe8] ss:$16 sps:$4 sm:$0xff]  }
  0x43   : > { %835 = vmatpush1.bf16.msra.mxu0 %v3074_v7  ;;  %917 = vmatpush1.bf16.msra.mxu1 %v3075_v10  ;;  %v3153_v7 = vld [vmem:[%s4182_s1 + $0x104] ss:$16 sps:$4 sm:$0xff]   ;;  %v3154_v10 = vld [vmem:[%s4182_s1 + $0x108] ss:$16 sps:$4 sm:$0xff]  }
  0x44   : > { %845 = vmatprep.subr.bf16.mxu0 %v3079_v11  ;;  %927 = vmatprep.subr.bf16.mxu1 %v3082_v12  ;;  %v3159_v11 = vld [vmem:[%s4182_s1 + $0x124] ss:$16 sps:$4 sm:$0xff]   ;;  %v3162_v12 = vld [vmem:[%s4182_s1 + $0x12c] ss:$16 sps:$4 sm:$0xff]  }
  0x46   : > { %837 = vmatmul.mubr.bf16.vlgmr.msra.gmra.mrb[0].mxu0 %v383_v15  ;;  %919 = vmatmul.mubr.bf16.vlgmr.msra.gmra.mrb[0].mxu1 %v383_v15  ;;  %v3165_v15 = vld [vmem:[%s4182_s1 + $0x144] ss:$16 sps:$4 sm:$0xff]  }
  0x47   : > { %846 = vmatpush1.bf16.msra.mxu0 %v3077_v13  ;;  %928 = vmatpush1.bf16.msra.mxu1 %v3080_v14  ;;  %v3157_v13 = vld [vmem:[%s4182_s1 + $0x120] ss:$16 sps:$4 sm:$0xff]   ;;  %v3160_v14 = vld [vmem:[%s4182_s1 + $0x128] ss:$16 sps:$4 sm:$0xff]  }
  0x48   : > { %847 = vmatprep.subr.bf16.mxu0 %v3086_v18  ;;  %929 = vmatprep.subr.bf16.mxu1 %v3089_v19  ;;  %v3163_v18 = vld [vmem:[%s4182_s1 + $0x140] ss:$16 sps:$4 sm:$0xff]   ;;  %v3166_v19 = vld [vmem:[%s4182_s1 + $0x148] ss:$16 sps:$4 sm:$0xff]  }
  0x49   : > { %877 = vmatprep.mubr.bf16.mxu0 %v3359_v25  ;;  %959 = vmatprep.mubr.bf16.mxu1 %v3359_v25 }
  0x4b   : > { %848 = vmatpush1.bf16.msra.mxu0 %v3084_v20  ;;  %930 = vmatpush1.bf16.msra.mxu1 %v3087_v22  ;;  %v3171_v20 = vld [vmem:[%s4182_s1 + $0x164] ss:$16 sps:$4 sm:$0xff]   ;;  %v3169_v22 = vld [vmem:[%s4182_s1 + $0x160] ss:$16 sps:$4 sm:$0xff]  }
  0x4c   : > { %849 = vmatprep.subr.bf16.mxu0 %v3092_v23  ;;  %931 = vmatprep.subr.bf16.mxu1 %v3095_v24  ;;  %v3172_v23 = vld [vmem:[%s4182_s1 + $0x168] ss:$16 sps:$4 sm:$0xff]   ;;  %v3177_v24 = vld [vmem:[%s4182_s1 + $0x184] ss:$16 sps:$4 sm:$0xff]  }
  0x4f   : > { %850 = vmatpush1.bf16.msra.mxu0 %v3090_v26  ;;  %932 = vmatpush1.bf16.msra.mxu1 %v3093_v28  ;;  %v3180_v26 = vld [vmem:[%s4182_s1 + $0x18c] ss:$16 sps:$4 sm:$0xff]   ;;  %v3178_v28 = vld [vmem:[%s4182_s1 + $0x188] ss:$16 sps:$4 sm:$0xff]  }
  0x50   : > { %851 = vmatprep.subr.bf16.mxu0 %v3098_v29  ;;  %933 = vmatprep.subr.bf16.mxu1 %v3101_v30  ;;  %v3183_v29 = vld [vmem:[%s4182_s1 + $0x1a4] ss:$16 sps:$4 sm:$0xff]   ;;  %v3186_v30 = vld [vmem:[%s4182_s1 + $0x1ac] ss:$16 sps:$4 sm:$0xff]  }
  0x53   : > { %852 = vmatpush1.bf16.msra.mxu0 %v3096_v31  ;;  %934 = vmatpush1.bf16.msra.mxu1 %v3099_v34  ;;  %v3181_v31 = vld [vmem:[%s4182_s1 + $0x1a0] ss:$16 sps:$4 sm:$0xff]   ;;  %v3192_v34 = vld [vmem:[%s4182_s1 + $0x1cc] ss:$16 sps:$4 sm:$0xff]  }
  0x54   : > { %1376 = vmatprep.subr.bf16.mxu0 %v3104_v35  ;;  %1458 = vmatprep.subr.bf16.mxu1 %v3107_v36  ;;  %v3187_v35 = vld [vmem:[%s4182_s1 + $0x1c0] ss:$16 sps:$4 sm:$0xff]   ;;  %v3190_v36 = vld [vmem:[%s4182_s1 + $0x1c8] ss:$16 sps:$4 sm:$0xff]  }
  0x56   : > { %2668 = vmatmul.mubr.msk.bf16.vlgmr.msra.gmra.mrb[0].mxu0 %vm800_vm0, %v397_v38  ;;  %2669 = vmatmul.mubr.msk.bf16.vlgmr.msra.gmra.mrb[0].mxu1 %vm800_vm0, %v397_v38  ;;  %v3198_v38 = vld [vmem:[%s4182_s1 + $0x1ec] ss:$16 sps:$4 sm:$0xff]  }
  0x57   : > { %1377 = vmatpush1.bf16.msra.mxu0 %v3102_v37  ;;  %1459 = vmatpush1.bf16.msra.mxu1 %v3105_v39  ;;  %v3195_v37 = vld [vmem:[%s4182_s1 + $0x1e4] ss:$16 sps:$4 sm:$0xff]   ;;  %v3193_v39 = vld [vmem:[%s4182_s1 + $0x1e0] ss:$16 sps:$4 sm:$0xff]  }
  0x58   : > { %1378 = vmatprep.subr.bf16.mxu0 %v3111_v40  ;;  %1460 = vmatprep.subr.bf16.mxu1 %v3114_v41  ;;  %v3196_v40 = vld [vmem:[%s4182_s1 + $0x1e8] ss:$16 sps:$4 sm:$0xff]   ;;  %v3202_v41 = vld [vmem:[%s4182_s1 + $0x204] ss:$16 sps:$4 sm:$0xff]  }
  0x59   : > { %1408 = vmatprep.mubr.bf16.mxu0 %v2671_v42  ;;  %1490 = vmatprep.mubr.bf16.mxu1 %v2671_v42  ;;  %v3205_v42 = vld [vmem:[%s4182_s1 + $0x20c] ss:$16 sps:$4 sm:$0xff]  }
  0x5b   : > { %1379 = vmatpush1.bf16.msra.mxu0 %v3109_v43  ;;  %1461 = vmatpush1.bf16.msra.mxu1 %v3112_v44  ;;  %v3200_v43 = vld [vmem:[%s4182_s1 + $0x200] ss:$16 sps:$4 sm:$0xff]   ;;  %v2670_v44 = vcombine.low %v3545_v46, %v3545_v46 }
  0x5c   : > { %1380 = vmatprep.subr.bf16.mxu0 %v3117_v45  ;;  %1462 = vmatprep.subr.bf16.mxu1 %v3120_v48  ;;  %v3203_v45 = vld [vmem:[%s4182_s1 + $0x208] ss:$16 sps:$4 sm:$0xff]   ;;  %v3209_v48 = vld [vmem:[%s4182_s1 + $0x224] ss:$16 sps:$4 sm:$0xff]   ;;  %v3207_v46 = vld [vmem:[%s4182_s1 + $0x220] ss:$16 sps:$4 sm:$0xff]  }
  0x5f   : > { %1381 = vmatpush1.bf16.msra.mxu0 %v3115_v49  ;;  %1463 = vmatpush1.bf16.msra.mxu1 %v3118_v50  ;;  %v3212_v49 = vld [vmem:[%s4182_s1 + $0x22c] ss:$16 sps:$4 sm:$0xff]   ;;  %v3210_v50 = vld [vmem:[%s4182_s1 + $0x228] ss:$16 sps:$4 sm:$0xff]  }
  0x60   : > { %1382 = vmatprep.subr.bf16.mxu0 %v3123_v51  ;;  %1464 = vmatprep.subr.bf16.mxu1 %v3126_v52  ;;  %v3215_v51 = vld [vmem:[%s4182_s1 + $0x244] ss:$16 sps:$4 sm:$0xff]   ;;  %v3218_v52 = vld [vmem:[%s4182_s1 + $0x24c] ss:$16 sps:$4 sm:$0xff]  }
  0x63   : > { %1383 = vmatpush1.bf16.msra.mxu0 %v3121_v53  ;;  %1465 = vmatpush1.bf16.msra.mxu1 %v3124_v54  ;;  %v3213_v53 = vld [vmem:[%s4182_s1 + $0x240] ss:$16 sps:$4 sm:$0xff]   ;;  %v3216_v54 = vld [vmem:[%s4182_s1 + $0x248] ss:$16 sps:$4 sm:$0xff]  }
  0x64   : > { %1384 = vmatprep.subr.bf16.mxu0 %v3129_v55  ;;  %1466 = vmatprep.subr.bf16.mxu1 %v3132_v56  ;;  %v3221_v55 = vld [vmem:[%s4182_s1 + $0x264] ss:$16 sps:$4 sm:$0xff]   ;;  %v3224_v56 = vld [vmem:[%s4182_s1 + $0x26c] ss:$16 sps:$4 sm:$0xff]  }
  0x67   : > { %1385 = vmatpush1.bf16.msra.mxu0 %v3127_v57  ;;  %1467 = vmatpush1.bf16.msra.mxu1 %v3130_v58  ;;  %v3906_v57 = vld [vmem:[%s3536_s10] sm:$0xee] }
  0x68   : > { %1386 = vmatprep.subr.bf16.mxu0 %v3135_v59  ;;  %1468 = vmatprep.subr.bf16.mxu1 %v3138_v60  ;;  %v3219_v58 = vld [vmem:[%s4182_s1 + $0x260] ss:$16 sps:$4 sm:$0xff]   ;;  %v3222_v59 = vld [vmem:[%s4182_s1 + $0x268] ss:$16 sps:$4 sm:$0xff]   ;;  %v3227_v60 = vld [vmem:[%s4182_s1 + $0x504] ss:$16 sps:$4 sm:$0xff]  }
  0x6b   : > { %1387 = vmatpush1.bf16.msra.mxu0 %v3133_v61  ;;  %1469 = vmatpush1.bf16.msra.mxu1 %v3136_v62  ;;  %v3230_v61 = vld [vmem:[%s4182_s1 + $0x50c] ss:$16 sps:$4 sm:$0xff]   ;;  %v2836_v62 = vcombine.high %v3906_v57, %v3548_v47 }
  0x6c   : > { %1388 = vmatprep.subr.bf16.mxu0 %v3141_v63  ;;  %1470 = vmatprep.subr.bf16.mxu1 %v3144_v0  ;;  %v2672_v63 = vcombine.low %v3621_v16, %v3621_v16  ;;  %v3225_v0 = vld [vmem:[%s4182_s1 + $0x500] ss:$16 sps:$4 sm:$0xff]   ;;  %v3237_v47 = vld [vmem:[%s4182_s1 + $0x52c] ss:$16 sps:$4 sm:$0xff]  }
  0x6d   : > { %v1632_v16 = vrot.slane %v2836_v62, 1  ;;  %v3321_v62 = vld [vmem:[%s4182_s1 + $0x6ec] ss:$16 sps:$4 sm:$0xff]  }
  0x6f   : > { %1389 = vmatpush1.bf16.msra.mxu0 %v3139_v1  ;;  %1471 = vmatpush1.bf16.msra.mxu1 %v3142_v2  ;;  %v3228_v1 = vld [vmem:[%s4182_s1 + $0x508] ss:$16 sps:$4 sm:$0xff]   ;;  %v3234_v2 = vld [vmem:[%s4182_s1 + $0x524] ss:$16 sps:$4 sm:$0xff]  }
  0x70   : > { %1390 = vmatprep.subr.bf16.mxu0 %v3147_v3  ;;  %1472 = vmatprep.subr.bf16.mxu1 %v3150_v4  ;;  %v3232_v3 = vld [vmem:[%s4182_s1 + $0x520] ss:$16 sps:$4 sm:$0xff]   ;;  %v3235_v4 = vld [vmem:[%s4182_s1 + $0x528] ss:$16 sps:$4 sm:$0xff]  }
  0x73   : > { %1391 = vmatpush1.bf16.msra.mxu0 %v3145_v5  ;;  %1473 = vmatpush1.bf16.msra.mxu1 %v3148_v6  ;;  %v3240_v5 = vld [vmem:[%s4182_s1 + $0x544] ss:$16 sps:$4 sm:$0xff]   ;;  %v3243_v6 = vld [vmem:[%s4182_s1 + $0x54c] ss:$16 sps:$4 sm:$0xff]  }
  0x74   : > { %1392 = vmatprep.subr.bf16.mxu0 %v3153_v7  ;;  %1474 = vmatprep.subr.bf16.mxu1 %v3156_v8  ;;  %v3238_v7 = vld [vmem:[%s4182_s1 + $0x540] ss:$16 sps:$4 sm:$0xff]   ;;  %v3241_v8 = vld [vmem:[%s4182_s1 + $0x548] ss:$16 sps:$4 sm:$0xff]  }
  0x77   : > { %1393 = vmatpush1.bf16.msra.mxu0 %v3151_v9  ;;  %1475 = vmatpush1.bf16.msra.mxu1 %v3154_v10  ;;  %v3246_v9 = vld [vmem:[%s4182_s1 + $0x564] ss:$16 sps:$4 sm:$0xff]   ;;  %v3249_v10 = vld [vmem:[%s4182_s1 + $0x56c] ss:$16 sps:$4 sm:$0xff]  }
  0x78   : > { %1394 = vmatprep.subr.bf16.mxu0 %v3159_v11  ;;  %1476 = vmatprep.subr.bf16.mxu1 %v3162_v12  ;;  %v3244_v11 = vld [vmem:[%s4182_s1 + $0x560] ss:$16 sps:$4 sm:$0xff]   ;;  %v3247_v12 = vld [vmem:[%s4182_s1 + $0x568] ss:$16 sps:$4 sm:$0xff]  }
  0x7b   : > { %1395 = vmatpush1.bf16.msra.mxu0 %v3157_v13  ;;  %1477 = vmatpush1.bf16.msra.mxu1 %v3160_v14  ;;  %v3252_v13 = vld [vmem:[%s4182_s1 + $0x584] ss:$16 sps:$4 sm:$0xff]   ;;  %v3255_v14 = vld [vmem:[%s4182_s1 + $0x58c] ss:$16 sps:$4 sm:$0xff]  }
  0x7c   : > { %1396 = vmatprep.subr.bf16.mxu0 %v3165_v15  ;;  %1478 = vmatprep.subr.bf16.mxu1 %v3168_v17  ;;  %v3250_v15 = vld [vmem:[%s4182_s1 + $0x580] ss:$16 sps:$4 sm:$0xff]   ;;  %v3253_v17 = vld [vmem:[%s4182_s1 + $0x588] ss:$16 sps:$4 sm:$0xff]  }
  0x7f   : > { %1397 = vmatpush1.bf16.msra.mxu0 %v3163_v18  ;;  %1479 = vmatpush1.bf16.msra.mxu1 %v3166_v19  ;;  %v3258_v18 = vld [vmem:[%s4182_s1 + $0x5a4] ss:$16 sps:$4 sm:$0xff]   ;;  %v3261_v19 = vld [vmem:[%s4182_s1 + $0x5ac] ss:$16 sps:$4 sm:$0xff]  }
  0x80   : > { %1398 = vmatprep.subr.bf16.mxu0 %v3171_v20  ;;  %1480 = vmatprep.subr.bf16.mxu1 %v3174_v21  ;;  %v3256_v20 = vld [vmem:[%s4182_s1 + $0x5a0] ss:$16 sps:$4 sm:$0xff]   ;;  %v3259_v21 = vld [vmem:[%s4182_s1 + $0x5a8] ss:$16 sps:$4 sm:$0xff]  }
  0x83   : > { %1399 = vmatpush1.bf16.msra.mxu0 %v3169_v22  ;;  %1481 = vmatpush1.bf16.msra.mxu1 %v3172_v23  ;;  %v3264_v22 = vld [vmem:[%s4182_s1 + $0x5c4] ss:$16 sps:$4 sm:$0xff]   ;;  %v3267_v23 = vld [vmem:[%s4182_s1 + $0x5cc] ss:$16 sps:$4 sm:$0xff]  }
  0x84   : > { %1400 = vmatprep.subr.bf16.mxu0 %v3177_v24  ;;  %1482 = vmatprep.subr.bf16.mxu1 %v3180_v26  ;;  %v3262_v24 = vld [vmem:[%s4182_s1 + $0x5c0] ss:$16 sps:$4 sm:$0xff]   ;;  %v3265_v26 = vld [vmem:[%s4182_s1 + $0x5c8] ss:$16 sps:$4 sm:$0xff]  }
  0x87   : > { %1401 = vmatpush1.bf16.msra.mxu0 %v3175_v27  ;;  %1483 = vmatpush1.bf16.msra.mxu1 %v3178_v28  ;;  %v3270_v27 = vld [vmem:[%s4182_s1 + $0x5e4] ss:$16 sps:$4 sm:$0xff]   ;;  %v3273_v28 = vld [vmem:[%s4182_s1 + $0x5ec] ss:$16 sps:$4 sm:$0xff]  }
  0x88   : > { %1402 = vmatprep.subr.bf16.mxu0 %v3183_v29  ;;  %1484 = vmatprep.subr.bf16.mxu1 %v3186_v30  ;;  %v3268_v29 = vld [vmem:[%s4182_s1 + $0x5e0] ss:$16 sps:$4 sm:$0xff]   ;;  %v3271_v30 = vld [vmem:[%s4182_s1 + $0x5e8] ss:$16 sps:$4 sm:$0xff]  }
  0x8b   : > { %1403 = vmatpush1.bf16.msra.mxu0 %v3181_v31  ;;  %1485 = vmatpush1.bf16.msra.mxu1 %v3184_v32  ;;  %v3276_v31 = vld [vmem:[%s4182_s1 + $0x604] ss:$16 sps:$4 sm:$0xff]   ;;  %v3279_v32 = vld [vmem:[%s4182_s1 + $0x60c] ss:$16 sps:$4 sm:$0xff]  }
  0x8c   : > { %1404 = vmatprep.subr.bf16.mxu0 %v3189_v33  ;;  %1486 = vmatprep.subr.bf16.mxu1 %v3192_v34  ;;  %v3274_v33 = vld [vmem:[%s4182_s1 + $0x600] ss:$16 sps:$4 sm:$0xff]   ;;  %v3277_v34 = vld [vmem:[%s4182_s1 + $0x608] ss:$16 sps:$4 sm:$0xff]  }
  0x8f   : > { %1405 = vmatpush1.bf16.msra.mxu0 %v3187_v35  ;;  %1487 = vmatpush1.bf16.msra.mxu1 %v3190_v36  ;;  %v3282_v35 = vld [vmem:[%s4182_s1 + $0x624] ss:$16 sps:$4 sm:$0xff]   ;;  %v3285_v36 = vld [vmem:[%s4182_s1 + $0x62c] ss:$16 sps:$4 sm:$0xff]  }
  0x90   : > { %1406 = vmatprep.subr.bf16.mxu0 %v3195_v37  ;;  %1488 = vmatprep.subr.bf16.mxu1 %v3198_v38  ;;  %v3280_v37 = vld [vmem:[%s4182_s1 + $0x620] ss:$16 sps:$4 sm:$0xff]   ;;  %v3283_v38 = vld [vmem:[%s4182_s1 + $0x628] ss:$16 sps:$4 sm:$0xff]  }
  0x93   : > { %1407 = vmatpush1.bf16.msra.mxu0 %v3193_v39  ;;  %1489 = vmatpush1.bf16.msra.mxu1 %v3196_v40  ;;  %v3288_v39 = vld [vmem:[%s4182_s1 + $0x644] ss:$16 sps:$4 sm:$0xff]   ;;  %v3291_v40 = vld [vmem:[%s4182_s1 + $0x64c] ss:$16 sps:$4 sm:$0xff]  }
  0x94   : > { %1417 = vmatprep.subr.bf16.mxu0 %v3202_v41  ;;  %1499 = vmatprep.subr.bf16.mxu1 %v3205_v42  ;;  %v3286_v41 = vld [vmem:[%s4182_s1 + $0x640] ss:$16 sps:$4 sm:$0xff]   ;;  %v3289_v42 = vld [vmem:[%s4182_s1 + $0x648] ss:$16 sps:$4 sm:$0xff]  }
  0x96   : > { %1409 = vmatmul.mubr.bf16.vlgmr.msra.gmra.mrb[0].mxu0 %v2670_v44  ;;  %1491 = vmatmul.mubr.bf16.vlgmr.msra.gmra.mrb[0].mxu1 %v2670_v44  ;;  %v3297_v44 = vld [vmem:[%s4182_s1 + $0x66c] ss:$16 sps:$4 sm:$0xff]  }
  0x97   : > { %1418 = vmatpush1.bf16.msra.mxu0 %v3200_v43  ;;  %1500 = vmatpush1.bf16.msra.mxu1 %v3203_v45  ;;  %v3294_v43 = vld [vmem:[%s4182_s1 + $0x664] ss:$16 sps:$4 sm:$0xff]   ;;  %v3292_v45 = vld [vmem:[%s4182_s1 + $0x660] ss:$16 sps:$4 sm:$0xff]  }
  0x98   : > { %1419 = vmatprep.subr.bf16.mxu0 %v3209_v48  ;;  %1501 = vmatprep.subr.bf16.mxu1 %v3212_v49  ;;  %v3295_v48 = vld [vmem:[%s4182_s1 + $0x668] ss:$16 sps:$4 sm:$0xff]   ;;  %v3300_v49 = vld [vmem:[%s4182_s1 + $0x684] ss:$16 sps:$4 sm:$0xff]  }
  0x99   : > { %1449 = vmatprep.mubr.bf16.mxu0 %v3359_v25  ;;  %1531 = vmatprep.mubr.bf16.mxu1 %v3359_v25 }
  0x9b   : > { %1420 = vmatpush1.bf16.msra.mxu0 %v3207_v46  ;;  %1502 = vmatpush1.bf16.msra.mxu1 %v3210_v50  ;;  %v3303_v46 = vld [vmem:[%s4182_s1 + $0x68c] ss:$16 sps:$4 sm:$0xff]   ;;  %v3298_v50 = vld [vmem:[%s4182_s1 + $0x680] ss:$16 sps:$4 sm:$0xff]  }
  0x9c   : > { %1421 = vmatprep.subr.bf16.mxu0 %v3215_v51  ;;  %1503 = vmatprep.subr.bf16.mxu1 %v3218_v52  ;;  %v3301_v51 = vld [vmem:[%s4182_s1 + $0x688] ss:$16 sps:$4 sm:$0xff]   ;;  %v3306_v52 = vld [vmem:[%s4182_s1 + $0x6a4] ss:$16 sps:$4 sm:$0xff]  }
  0x9f   : > { %1422 = vmatpush1.bf16.msra.mxu0 %v3213_v53  ;;  %1504 = vmatpush1.bf16.msra.mxu1 %v3216_v54  ;;  %v3309_v53 = vld [vmem:[%s4182_s1 + $0x6ac] ss:$16 sps:$4 sm:$0xff]   ;;  %v3304_v54 = vld [vmem:[%s4182_s1 + $0x6a0] ss:$16 sps:$4 sm:$0xff]  }
  0xa0   : > { %1423 = vmatprep.subr.bf16.mxu0 %v3221_v55  ;;  %1505 = vmatprep.subr.bf16.mxu1 %v3224_v56  ;;  %v3307_v55 = vld [vmem:[%s4182_s1 + $0x6a8] ss:$16 sps:$4 sm:$0xff]   ;;  %v3312_v56 = vld [vmem:[%s4182_s1 + $0x6c4] ss:$16 sps:$4 sm:$0xff]  }
  0xa3   : > { %1424 = vmatpush1.bf16.msra.mxu0 %v3219_v58  ;;  %1506 = vmatpush1.bf16.msra.mxu1 %v3222_v59  ;;  %v3315_v58 = vld [vmem:[%s4182_s1 + $0x6cc] ss:$16 sps:$4 sm:$0xff]   ;;  %v3310_v59 = vld [vmem:[%s4182_s1 + $0x6c0] ss:$16 sps:$4 sm:$0xff]  }
  0xa4   : > { %2039 = vmatprep.subr.bf16.mxu0 %v3227_v60  ;;  %2121 = vmatprep.subr.bf16.mxu1 %v3230_v61  ;;  %v3313_v60 = vld [vmem:[%s4182_s1 + $0x6c8] ss:$16 sps:$4 sm:$0xff]   ;;  %v3318_v61 = vld [vmem:[%s4182_s1 + $0x6e4] ss:$16 sps:$4 sm:$0xff]  }
  0xa6   : > { %2753 = vmatmul.mubr.msk.bf16.vlgmr.msra.gmra.mrb[0].mxu0 %vm800_vm0, %v2672_v63  ;;  %2754 = vmatmul.mubr.msk.bf16.vlgmr.msra.gmra.mrb[0].mxu1 %vm800_vm0, %v2672_v63  ;;  %v3349_v63 = vld [vmem:[%s3536_s10 + $0xc] sm:$0x11] }
  0xa7   : > { %2040 = vmatpush1.bf16.msra.mxu0 %v3225_v0  ;;  %2122 = vmatpush1.bf16.msra.mxu1 %v3228_v1  ;;  %v2835_v0 = vcombine.low %v3906_v57, %v3349_v63  ;;  %v3316_v1 = vld [vmem:[%s4182_s1 + $0x6e0] ss:$16 sps:$4 sm:$0xff]   ;;  %v3329_v57 = vld [vmem:[%s4182_s1 + $0x70c] ss:$16 sps:$4 sm:$0xff]  }
  0xa8   : > { %2041 = vmatprep.subr.bf16.mxu0 %v3234_v2  ;;  %2123 = vmatprep.subr.bf16.mxu1 %v3237_v47  ;;  %v3319_v2 = vld [vmem:[%s4182_s1 + $0x6e8] ss:$16 sps:$4 sm:$0xff]   ;;  %v3326_v47 = vld [vmem:[%s4182_s1 + $0x704] ss:$16 sps:$4 sm:$0xff]  }
  0xa9   : > { %2071 = vmatprep.mubr.bf16.mxu0 %v1632_v16  ;;  %2153 = vmatprep.mubr.bf16.mxu1 %v1632_v16  ;;  %v1631_v16 = vrot.slane %v2835_v0, 1 }
  0xab   : > { %2042 = vmatpush1.bf16.msra.mxu0 %v3232_v3  ;;  %2124 = vmatpush1.bf16.msra.mxu1 %v3235_v4  ;;  %v3324_v3 = vld [vmem:[%s4182_s1 + $0x700] ss:$16 sps:$4 sm:$0xff]   ;;  %v3327_v4 = vld [vmem:[%s4182_s1 + $0x708] ss:$16 sps:$4 sm:$0xff]  }
  0xac   : > { %2043 = vmatprep.subr.bf16.mxu0 %v3240_v5  ;;  %2125 = vmatprep.subr.bf16.mxu1 %v3243_v6  ;;  %v3332_v5 = vld [vmem:[%s4182_s1 + $0x724] ss:$16 sps:$4 sm:$0xff]   ;;  %v3335_v6 = vld [vmem:[%s4182_s1 + $0x72c] ss:$16 sps:$4 sm:$0xff]  }
  0xaf   : > { %2044 = vmatpush1.bf16.msra.mxu0 %v3238_v7  ;;  %2126 = vmatpush1.bf16.msra.mxu1 %v3241_v8  ;;  %v3330_v7 = vld [vmem:[%s4182_s1 + $0x720] ss:$16 sps:$4 sm:$0xff]   ;;  %v3333_v8 = vld [vmem:[%s4182_s1 + $0x728] ss:$16 sps:$4 sm:$0xff]  }
  0xb0   : > { %2045 = vmatprep.subr.bf16.mxu0 %v3246_v9  ;;  %2127 = vmatprep.subr.bf16.mxu1 %v3249_v10  ;;  %v3338_v9 = vld [vmem:[%s4182_s1 + $0x744] ss:$16 sps:$4 sm:$0xff]   ;;  %v3341_v10 = vld [vmem:[%s4182_s1 + $0x74c] ss:$16 sps:$4 sm:$0xff]  }
  0xb3   : > { %2046 = vmatpush1.bf16.msra.mxu0 %v3244_v11  ;;  %2128 = vmatpush1.bf16.msra.mxu1 %v3247_v12  ;;  %v3336_v11 = vld [vmem:[%s4182_s1 + $0x740] ss:$16 sps:$4 sm:$0xff]   ;;  %v3339_v12 = vld [vmem:[%s4182_s1 + $0x748] ss:$16 sps:$4 sm:$0xff]  }
  0xb4   : > { %2047 = vmatprep.subr.bf16.mxu0 %v3252_v13  ;;  %2129 = vmatprep.subr.bf16.mxu1 %v3255_v14  ;;  %v1541_v13 = vld [vmem:[%s3536_s10 + $0x8] sm:$0xe]  ;;  %v3344_v14 = vld [vmem:[%s4182_s1 + $0x764] ss:$16 sps:$4 sm:$0xff]  }
  0xb7   : > { %2048 = vmatpush1.bf16.msra.mxu0 %v3250_v15  ;;  %2130 = vmatpush1.bf16.msra.mxu1 %v3253_v17  ;;  %v3350_v15 = vld [vmem:[%s3536_s10 + $0x14] sm:$0x1] }
  0xb8   : > { %2049 = vmatprep.subr.bf16.mxu0 %v3258_v18  ;;  %2131 = vmatprep.subr.bf16.mxu1 %v3261_v19  ;;  %v2837_v17 = vcombine.low %v1541_v13, %v3350_v15  ;;  %v3342_v18 = vld [vmem:[%s4182_s1 + $0x760] ss:$16 sps:$4 sm:$0xff]   ;;  %v3345_v19 = vld [vmem:[%s4182_s1 + $0x768] ss:$16 sps:$4 sm:$0xff]  }
  0xbb   : > { %2050 = vmatpush1.bf16.msra.mxu0 %v3256_v20  ;;  %2132 = vmatpush1.bf16.msra.mxu1 %v3259_v21  ;;  %v1633_v20 = vrot.slane %v2837_v17, 1  ;;  %v3360_v21 = vmov 0.0  }
  0xbc   : > { %2051 = vmatprep.subr.bf16.mxu0 %v3264_v22  ;;  %2133 = vmatprep.subr.bf16.mxu1 %v3267_v23  ;;  %v2209_v22 = vlaneseq }
  0xbe   : > { %v2210_v23 = vshrl.u32 %v2209_v22, 7 }
  0xbf   : > { %2052 = vmatpush1.bf16.msra.mxu0 %v3262_v24  ;;  %2134 = vmatpush1.bf16.msra.mxu1 %v3265_v26 }
  0xc0   : > { %2053 = vmatprep.subr.bf16.mxu0 %v3270_v27  ;;  %2135 = vmatprep.subr.bf16.mxu1 %v3273_v28  ;;  %v2211_v24 = vsub.s32 0, %v2210_v23  ;;  %v2219_v26 = vsub.s32 2, %v2210_v23  ;;  %v2207_v27 = vld [vmem:[%s4183_s2] sm:$0xf]  ;;  %v2215_v28 = vsub.s32 1, %v2210_v23 }
  0xc3   : > { %2054 = vmatpush1.bf16.msra.mxu0 %v3268_v29  ;;  %2136 = vmatpush1.bf16.msra.mxu1 %v3271_v30  ;;  %v2223_v29 = vsub.s32 3, %v2210_v23  ;;  %v2233_v30 = vld [vmem:[%s4184_s3] sm:$0xf] }
  0xc4   : > { %2055 = vmatprep.subr.bf16.mxu0 %v3276_v31  ;;  %2137 = vmatprep.subr.bf16.mxu1 %v3279_v32  ;;  %v2212_v31 = vrot.slane %v2207_v27, %v2211_v24  ;;  %v2220_v32 = vrot.slane %v2207_v27, %v2219_v26 }
  0xc7   : > { %2056 = vmatpush1.bf16.msra.mxu0 %v3274_v33  ;;  %2138 = vmatpush1.bf16.msra.mxu1 %v3277_v34  ;;  %v2216_v33 = vrot.slane %v2207_v27, %v2215_v28  ;;  %v2224_v34 = vrot.slane %v2207_v27, %v2223_v29 }
  0xc8   : > { %2057 = vmatprep.subr.bf16.mxu0 %v3282_v35  ;;  %2139 = vmatprep.subr.bf16.mxu1 %v3285_v36  ;;  %v2269_v35 = vmul.u32 2, %v2210_v23  ;;  %v2238_v36 = vrot.slane %v2233_v30, %v2211_v24 }
  0xcb   : > { %2058 = vmatpush1.bf16.msra.mxu0 %v3280_v37  ;;  %2140 = vmatpush1.bf16.msra.mxu1 %v3283_v38  ;;  %v2246_v37 = vrot.slane %v2233_v30, %v2219_v26 }
  0xcc   : > { %2059 = vmatprep.subr.bf16.mxu0 %v3288_v39  ;;  %2141 = vmatprep.subr.bf16.mxu1 %v3291_v40  ;;  %v2242_v40 = vrot.slane %v2233_v30, %v2215_v28 }
  0xcf   : > { %2060 = vmatpush1.bf16.msra.mxu0 %v3286_v41  ;;  %2142 = vmatpush1.bf16.msra.mxu1 %v3289_v42  ;;  %v2250_v41 = vrot.slane %v2233_v30, %v2223_v29 }
  0xd0   : > { %2061 = vmatprep.subr.bf16.mxu0 %v3294_v43  ;;  %2143 = vmatprep.subr.bf16.mxu1 %v3297_v44 }
  0xd3   : > { %2062 = vmatpush1.bf16.msra.mxu0 %v3292_v45  ;;  %2144 = vmatpush1.bf16.msra.mxu1 %v3295_v48 }
  0xd4   : > { %2063 = vmatprep.subr.bf16.mxu0 %v3300_v49  ;;  %2145 = vmatprep.subr.bf16.mxu1 %v3303_v46 }
  0xd7   : > { %2064 = vmatpush1.bf16.msra.mxu0 %v3298_v50  ;;  %2146 = vmatpush1.bf16.msra.mxu1 %v3301_v51  ;;  %v2268_v51 = vand.u32 127, %v2209_v22 }
  0xd8   : > { %2065 = vmatprep.subr.bf16.mxu0 %v3306_v52  ;;  %2147 = vmatprep.subr.bf16.mxu1 %v3309_v53  ;;  %v2348_v52 = vadd.s32 1, %v2269_v35 }
  0xd9   : > { %vm2270_vm1 = vcmp.eq.s32.totalorder %v2268_v51, %v2269_v35 }
  0xda   : > { %vm2349_vm2 = vcmp.eq.s32.totalorder %v2268_v51, %v2348_v52 }
  0xdb   : > { %2066 = vmatpush1.bf16.msra.mxu0 %v3304_v54  ;;  %2148 = vmatpush1.bf16.msra.mxu1 %v3307_v55 }
  0xdc   : > { %2067 = vmatprep.subr.bf16.mxu0 %v3312_v56  ;;  %2149 = vmatprep.subr.bf16.mxu1 %v3315_v58 }
  0xdf   : > { %2068 = vmatpush1.bf16.msra.mxu0 %v3310_v59  ;;  %2150 = vmatpush1.bf16.msra.mxu1 %v3313_v60 }
  0xe0   : > { %2069 = vmatprep.subr.bf16.mxu0 %v3318_v61  ;;  %2151 = vmatprep.subr.bf16.mxu1 %v3321_v62 }
  0xe3   : > { %2070 = vmatpush1.bf16.msra.mxu0 %v3316_v1  ;;  %2152 = vmatpush1.bf16.msra.mxu1 %v3319_v2  ;;  %v2920_v2 = vsel %vm2270_vm1, 1.0, %v3360_v21 }
  0xe4   : > { %2080 = vmatprep.subr.bf16.mxu0 %v3326_v47  ;;  %2162 = vmatprep.subr.bf16.mxu1 %v3329_v57  ;;  %v2922_v47 = vsel %vm2349_vm2, 1.0, %v3360_v21 }
  0xe6   : > { %2072 = vmatmul.mubr.bf16.vlgmr.msra.gmra.mrb[0].mxu0 %v1631_v16  ;;  %2154 = vmatmul.mubr.bf16.vlgmr.msra.gmra.mrb[0].mxu1 %v1631_v16 }
  0xe7   : > { %2081 = vmatpush1.bf16.msra.mxu0 %v3324_v3  ;;  %2163 = vmatpush1.bf16.msra.mxu1 %v3327_v4 }
  0xe8   : > { %2082 = vmatprep.subr.bf16.mxu0 %v3332_v5  ;;  %2164 = vmatprep.subr.bf16.mxu1 %v3335_v6 }
  0xe9   : > { %2112 = vmatprep.mubr.bf16.mxu0 %v3359_v25  ;;  %2194 = vmatprep.mubr.bf16.mxu1 %v3359_v25  ;;  %v3347_v25 = vld [vmem:[%s4182_s1 + $0x76c] ss:$16 sps:$4 sm:$0xff]  }
  0xeb   : > { %2083 = vmatpush1.bf16.msra.mxu0 %v3330_v7  ;;  %2165 = vmatpush1.bf16.msra.mxu1 %v3333_v8 }
  0xec   : > { %2084 = vmatprep.subr.bf16.mxu0 %v3338_v9  ;;  %2166 = vmatprep.subr.bf16.mxu1 %v3341_v10 }
  0xef   : > { %2085 = vmatpush1.bf16.msra.mxu0 %v3336_v11  ;;  %2167 = vmatpush1.bf16.msra.mxu1 %v3339_v12 }
  0xf0   : > { %2086 = vmatprep.subr.bf16.mxu0 %v3344_v14  ;;  %2168 = vmatprep.subr.bf16.mxu1 %v3347_v25 }
  0xf3   : > { %2087 = vmatpush1.bf16.msra.mxu0 %v3342_v18  ;;  %2169 = vmatpush1.bf16.msra.mxu1 %v3345_v19 }
  0xf6   : > { %2918 = vmatmul.mubr.msk.bf16.vlgmr.msra.gmra.mrb[0].mxu0 %vm800_vm0, %v1633_v20  ;;  %2919 = vmatmul.mubr.msk.bf16.vlgmr.msra.gmra.mrb[0].mxu1 %vm800_vm0, %v1633_v20 }
  0xf7   : > { %2341 = vmatprep.mubr.f32.mxu0 %v3360_v21  ;;  %2419 = vmatprep.mubr.f32.mxu1 %v3360_v21 }
 0x1c9   : > { %v2114_v38 = vpop.f32.mrb[0].mxu0  ;;  %v2196_v39 = vpop.f32.mrb[0].mxu1 }
 0x1ca   : > { %v2229_v42 = vmul.f32 %v2212_v31, %v2114_v38  ;;  %v2231_v43 = vmul.f32 %v2220_v32, %v2196_v39  ;;  %v2116_v44 = vpop.f32.mrb[1].mxu0  ;;  %v2198_v45 = vpop.f32.mrb[1].mxu1 }
 0x1cb   : > { %v2230_v48 = vmul.f32 %v2216_v33, %v2116_v44  ;;  %v2232_v49 = vmul.f32 %v2224_v34, %v2198_v45  ;;  %v2118_v46 = vpop.f32.mrb[2].mxu0  ;;  %v2200_v50 = vpop.f32.mrb[2].mxu1 }
 0x1cc   : > { %v2255_v53 = vadd.f32 %v2238_v36, %v2229_v42  ;;  %v2257_v54 = vadd.f32 %v2246_v37, %v2231_v43  ;;  %v2119_v55 = vpop.f32.mrb[3].mxu0  ;;  %v2201_v56 = vpop.f32.mrb[3].mxu1 }
 0x1cd   : > { %v2256_v58 = vadd.f32 %v2242_v40, %v2230_v48  ;;  %v2258_v59 = vadd.f32 %v2250_v41, %v2232_v49 }
 0x1ce   : > { %v2259_v60 = vmax.f32 %v2255_v53, 0.0  ;;  %v2261_v61 = vmax.f32 %v2257_v54, 0.0 }
 0x1cf   : > { %v2260_v62 = vmax.f32 %v2256_v58, 0.0  ;;  %v2262_v63 = vmax.f32 %v2258_v59, 0.0 }
 0x1d0   : > { %v2263_v0 = vmax.f32 %v2259_v60, %v2261_v61 }
 0x1d1   : > { %v2264_v1 = vmax.f32 %v2260_v62, %v2262_v63 }
 0x1d3   : > { %2277 = vmatprep.subr.mxu0 %v2264_v1  ;;  %2355 = vmatprep.subr.mxu1 %v2264_v1 }
 0x1d4   : > { %2278 = vmatpush1.msra.mxu0 %v2263_v0  ;;  %2356 = vmatpush1.msra.mxu1 %v2263_v0 }
 0x1d5   : > { %2921 = vmatmul.mubr.msk.f32.vlgmr.msra.gmra.mrb[4].mxu0 %vm2273_vm3, %v2920_v2  ;;  %2923 = vmatmul.mubr.msk.f32.vlgmr.msra.gmra.mrb[4].mxu1 %vm2273_vm3, %v2922_v47 }
 0x2a8   : > { %v2343_v57 = vpop.f32.mrb[4].mxu0  ;;  %v2421_v16 = vpop.f32.mrb[4].mxu1 }
 0x2a9   : > { %v2426_v3 = vmax.f32 %v2343_v57, %v2421_v16  ;;  %v2345_v4 = vpop.f32.mrb[5].mxu0  ;;  %v2423_v5 = vpop.f32.mrb[5].mxu1 }
 0x2aa   : > { %v2427_v6 = vmax.f32 %v2345_v4, %v2423_v5 }
 0x2ac   : > { %v2924_v7 = vpack.c.bf16 %v2427_v6, %v2426_v3 }
 0x2ae   : > { %2925 = vst.sshfl [vmem:[%s197_s20] sm:$0x33 pattern:$0x76325410] %v2924_v7 }
 0x2af PF: > { %s14_s15 = sadd.s32 1, %s3357_s15  }
 0x2b0   : > { %p11_p4 = scmp.ge.s32.totalorder %s14_s15, 4  }
 0x2b2   :  { %13 = sbr.rel (!%p11_p4) target bundleno = 1 (0x1), region = 68 }

// kernel: net_forward.7
= control target key start
LH: loop header
LB: loop body
LE: loop exit
PB: predicated region body
PF: predicated region fallthrough
CT: control target
= control target key end

     0   :  { %v280_v36 = vlaneseq  ;;  %v3012_v37 = vmov 1966171168   ;;  %s4072_s0 = inlined_call_operand.vmem [shape: bf16[2,1024], index: 0, kind: input, shape index: {}]   ;;  %s4073_s1 = inlined_call_operand.vmem [shape: bf16[1024,500], index: 1, kind: input, shape index: {}]   ;;  %s4074_s2 = inlined_call_operand.vmem [shape: f32[1,500], index: 2, kind: input, shape index: {}]   ;;  %s4075_s3 = inlined_call_operand.vmem [shape: f32[500,10], index: 3, kind: input, shape index: {}]   ;;  %s4076_s4 = inlined_call_operand.vmem [shape: f32[1,10], index: 4, kind: input, shape index: {}]   ;;  %s4077_s5 = inlined_call_operand.hbm [shape: f32[2,10], index: 5, kind: output, shape index: {}]  }
   0x1   :  { %v2603_v0 = vld [vmem:[%s4073_s1 + $0x4] ss:$16 sps:$4 sm:$0xff]   ;;  %v2605_v1 = vld [vmem:[%s4073_s1 + $0xc] ss:$16 sps:$4 sm:$0xff]   ;;  %v2607_v2 = vld [vmem:[%s4073_s1] ss:$16 sps:$4 sm:$0xff]   ;;  %v303_v38 = vunpack.c.l.s4 %v3012_v37 }
   0x2   :  { %1638 = vmatprep.subr.bf16.mxu0 %v2603_v0  ;;  %v2608_v3 = vld [vmem:[%s4073_s1 + $0x8] ss:$16 sps:$4 sm:$0xff]   ;;  %1802 = vmatprep.subr.bf16.mxu1 %v2605_v1  ;;  %v2609_v4 = vld [vmem:[%s4073_s1 + $0x24] ss:$16 sps:$4 sm:$0xff]   ;;  %v2611_v5 = vld [vmem:[%s4073_s1 + $0x2c] ss:$16 sps:$4 sm:$0xff]  }
   0x3   :  { %1639 = vmatpush1.bf16.msra.mxu0 %v2607_v2  ;;  %1803 = vmatpush1.bf16.msra.mxu1 %v2608_v3  ;;  %v2613_v6 = vld [vmem:[%s4073_s1 + $0x20] ss:$16 sps:$4 sm:$0xff]   ;;  %v2614_v7 = vld [vmem:[%s4073_s1 + $0x28] ss:$16 sps:$4 sm:$0xff]   ;;  %v2615_v8 = vld [vmem:[%s4073_s1 + $0x44] ss:$16 sps:$4 sm:$0xff]   ;;  %v304_v43 = vunpack.c.0.s8 %v303_v38 }
   0x4   :  { %1640 = vmatprep.subr.bf16.mxu0 %v2609_v4  ;;  %1804 = vmatprep.subr.bf16.mxu1 %v2611_v5  ;;  %v2617_v9 = vld [vmem:[%s4073_s1 + $0x4c] ss:$16 sps:$4 sm:$0xff]   ;;  %v2619_v10 = vld [vmem:[%s4073_s1 + $0x40] ss:$16 sps:$4 sm:$0xff]   ;;  %v2620_v11 = vld [vmem:[%s4073_s1 + $0x48] ss:$16 sps:$4 sm:$0xff]  }
   0x5   :  { %v2621_v12 = vld [vmem:[%s4073_s1 + $0x64] ss:$16 sps:$4 sm:$0xff]   ;;  %v2623_v13 = vld [vmem:[%s4073_s1 + $0x6c] ss:$16 sps:$4 sm:$0xff]   ;;  %v2625_v14 = vld [vmem:[%s4073_s1 + $0x60] ss:$16 sps:$4 sm:$0xff]  }
   0x6   :  { %v2626_v15 = vld [vmem:[%s4073_s1 + $0x68] ss:$16 sps:$4 sm:$0xff]   ;;  %v2627_v16 = vld [vmem:[%s4073_s1 + $0x84] ss:$16 sps:$4 sm:$0xff]   ;;  %v2629_v17 = vld [vmem:[%s4073_s1 + $0x8c] ss:$16 sps:$4 sm:$0xff]  }
   0x7   :  { %1641 = vmatpush1.bf16.msra.mxu0 %v2613_v6  ;;  %1805 = vmatpush1.bf16.msra.mxu1 %v2614_v7  ;;  %v2631_v18 = vld [vmem:[%s4073_s1 + $0x80] ss:$16 sps:$4 sm:$0xff]   ;;  %v2632_v19 = vld [vmem:[%s4073_s1 + $0x88] ss:$16 sps:$4 sm:$0xff]   ;;  %v2633_v20 = vld [vmem:[%s4073_s1 + $0xa4] ss:$16 sps:$4 sm:$0xff]  }
   0x8   :  { %1642 = vmatprep.subr.bf16.mxu0 %v2615_v8  ;;  %1806 = vmatprep.subr.bf16.mxu1 %v2617_v9  ;;  %v2635_v21 = vld [vmem:[%s4073_s1 + $0xac] ss:$16 sps:$4 sm:$0xff]   ;;  %v2637_v22 = vld [vmem:[%s4073_s1 + $0xa0] ss:$16 sps:$4 sm:$0xff]   ;;  %v2638_v23 = vld [vmem:[%s4073_s1 + $0xa8] ss:$16 sps:$4 sm:$0xff]  }
   0x9   :  { %v2639_v24 = vld [vmem:[%s4073_s1 + $0xc4] ss:$16 sps:$4 sm:$0xff]   ;;  %v2641_v25 = vld [vmem:[%s4073_s1 + $0xcc] ss:$16 sps:$4 sm:$0xff]   ;;  %v2643_v26 = vld [vmem:[%s4073_s1 + $0xc0] ss:$16 sps:$4 sm:$0xff]  }
   0xa   :  { %v2644_v27 = vld [vmem:[%s4073_s1 + $0xc8] ss:$16 sps:$4 sm:$0xff]   ;;  %v2645_v28 = vld [vmem:[%s4073_s1 + $0xe4] ss:$16 sps:$4 sm:$0xff]   ;;  %v2647_v29 = vld [vmem:[%s4073_s1 + $0xec] ss:$16 sps:$4 sm:$0xff]  }
   0xb   :  { %1643 = vmatpush1.bf16.msra.mxu0 %v2619_v10  ;;  %1807 = vmatpush1.bf16.msra.mxu1 %v2620_v11  ;;  %v2649_v30 = vld [vmem:[%s4073_s1 + $0xe0] ss:$16 sps:$4 sm:$0xff]   ;;  %v2650_v31 = vld [vmem:[%s4073_s1 + $0xe8] ss:$16 sps:$4 sm:$0xff]   ;;  %v2651_v32 = vld [vmem:[%s4073_s1 + $0x104] ss:$16 sps:$4 sm:$0xff]  }
   0xc   :  { %1644 = vmatprep.subr.bf16.mxu0 %v2621_v12  ;;  %1808 = vmatprep.subr.bf16.mxu1 %v2623_v13  ;;  %v2653_v33 = vld [vmem:[%s4073_s1 + $0x10c] ss:$16 sps:$4 sm:$0xff]   ;;  %v2655_v34 = vld [vmem:[%s4073_s1 + $0x100] ss:$16 sps:$4 sm:$0xff]   ;;  %v2656_v35 = vld [vmem:[%s4073_s1 + $0x108] ss:$16 sps:$4 sm:$0xff]  }
   0xd   :  { %v2657_v39 = vld [vmem:[%s4073_s1 + $0x124] ss:$16 sps:$4 sm:$0xff]   ;;  %v2659_v40 = vld [vmem:[%s4073_s1 + $0x12c] ss:$16 sps:$4 sm:$0xff]   ;;  %v2661_v41 = vld [vmem:[%s4073_s1 + $0x120] ss:$16 sps:$4 sm:$0xff]  }
   0xe   :  { %v3163_v42 = vshrl.u32 %v280_v36, 7  ;;  %v2662_v44 = vld [vmem:[%s4073_s1 + $0x128] ss:$16 sps:$4 sm:$0xff]   ;;  %v2663_v45 = vld [vmem:[%s4073_s1 + $0x144] ss:$16 sps:$4 sm:$0xff]  }
   0xf   :  { %1645 = vmatpush1.bf16.msra.mxu0 %v2625_v14  ;;  %1809 = vmatpush1.bf16.msra.mxu1 %v2626_v15  ;;  %v2665_v46 = vld [vmem:[%s4073_s1 + $0x14c] ss:$16 sps:$4 sm:$0xff]   ;;  %v2667_v47 = vld [vmem:[%s4073_s1 + $0x140] ss:$16 sps:$4 sm:$0xff]   ;;  %v2668_v48 = vld [vmem:[%s4073_s1 + $0x148] ss:$16 sps:$4 sm:$0xff]  }
  0x10   :  { %1646 = vmatprep.subr.bf16.mxu0 %v2627_v16  ;;  %1810 = vmatprep.subr.bf16.mxu1 %v2629_v17  ;;  %v3181_v49 = vsub.s32 %v304_v43, %v3163_v42  ;;  %v2669_v50 = vld [vmem:[%s4073_s1 + $0x164] ss:$16 sps:$4 sm:$0xff]   ;;  %v2671_v51 = vld [vmem:[%s4073_s1 + $0x16c] ss:$16 sps:$4 sm:$0xff]   ;;  %v2673_v53 = vld [vmem:[%s4073_s1 + $0x160] ss:$16 sps:$4 sm:$0xff]  }
  0x11   :  { %v21_v52 = vld [vmem:[%s4072_s0] sm:$0xff]  ;;  %v2674_v55 = vld [vmem:[%s4073_s1 + $0x168] ss:$16 sps:$4 sm:$0xff]   ;;  %v2677_v57 = vld [vmem:[%s4073_s1 + $0x18c] ss:$16 sps:$4 sm:$0xff]  }
  0x12   :  { %v308_v54 = vrot.slane %v21_v52, %v3181_v49  ;;  %v2675_v56 = vld [vmem:[%s4073_s1 + $0x184] ss:$16 sps:$4 sm:$0xff]   ;;  %v2679_v59 = vld [vmem:[%s4073_s1 + $0x180] ss:$16 sps:$4 sm:$0xff]   ;;  %v2680_v61 = vld [vmem:[%s4073_s1 + $0x188] ss:$16 sps:$4 sm:$0xff]   ;;  %v301_v9 = vcombine.high %v21_v52, %v21_v52 }
  0x13   :  { %1647 = vmatpush1.bf16.msra.mxu0 %v2631_v18  ;;  %1811 = vmatpush1.bf16.msra.mxu1 %v2632_v19  ;;  %v2681_v62 = vld [vmem:[%s4073_s1 + $0x1a4] ss:$16 sps:$4 sm:$0xff]   ;;  %v2683_v63 = vld [vmem:[%s4073_s1 + $0x1ac] ss:$16 sps:$4 sm:$0xff]   ;;  %v2685_v0 = vld [vmem:[%s4073_s1 + $0x1a0] ss:$16 sps:$4 sm:$0xff]  }
  0x14   :  { %1648 = vmatprep.subr.bf16.mxu0 %v2633_v20  ;;  %1812 = vmatprep.subr.bf16.mxu1 %v2635_v21  ;;  %v316_v58 = vcombine.high %v308_v54, %v308_v54  ;;  %v2686_v1 = vld [vmem:[%s4073_s1 + $0x1a8] ss:$16 sps:$4 sm:$0xff]   ;;  %v2687_v2 = vld [vmem:[%s4073_s1 + $0x1c4] ss:$16 sps:$4 sm:$0xff]   ;;  %v2689_v3 = vld [vmem:[%s4073_s1 + $0x1cc] ss:$16 sps:$4 sm:$0xff]   ;;  %v315_v13 = vrot.slane %v301_v9, %v3181_v49  ;;  %v3259_v15 = vrot.slane %v308_v54, %v3181_v49 }
  0x15   :  { %v2691_v4 = vld [vmem:[%s4073_s1 + $0x1c0] ss:$16 sps:$4 sm:$0xff]   ;;  %v2692_v5 = vld [vmem:[%s4073_s1 + $0x1c8] ss:$16 sps:$4 sm:$0xff]   ;;  %v2693_v6 = vld [vmem:[%s4073_s1 + $0x1e4] ss:$16 sps:$4 sm:$0xff]  }
  0x16   :  { %v338_v60 = vrot.slane %v316_v58, %v3181_v49  ;;  %v2695_v7 = vld [vmem:[%s4073_s1 + $0x1ec] ss:$16 sps:$4 sm:$0xff]   ;;  %v2697_v8 = vld [vmem:[%s4073_s1 + $0x1e0] ss:$16 sps:$4 sm:$0xff]   ;;  %v2698_v10 = vld [vmem:[%s4073_s1 + $0x1e8] ss:$16 sps:$4 sm:$0xff]   ;;  %v317_v16 = vcombine.high %v315_v13, %v315_v13  ;;  %v3274_v21 = vrot.slane %v315_v13, %v3181_v49 }
  0x17   :  { %1649 = vmatpush1.bf16.msra.mxu0 %v2637_v22  ;;  %1813 = vmatpush1.bf16.msra.mxu1 %v2638_v23  ;;  %v2701_v11 = vld [vmem:[%s4073_s1 + $0x204] ss:$16 sps:$4 sm:$0xff]   ;;  %v2704_v12 = vld [vmem:[%s4073_s1 + $0x20c] ss:$16 sps:$4 sm:$0xff]   ;;  %v2699_v14 = vld [vmem:[%s4073_s1 + $0x200] ss:$16 sps:$4 sm:$0xff]  }
  0x18   :  { %1650 = vmatprep.subr.bf16.mxu0 %v2639_v24  ;;  %1814 = vmatprep.subr.bf16.mxu1 %v2641_v25  ;;  %v2702_v17 = vld [vmem:[%s4073_s1 + $0x208] ss:$16 sps:$4 sm:$0xff]   ;;  %v2707_v18 = vld [vmem:[%s4073_s1 + $0x224] ss:$16 sps:$4 sm:$0xff]   ;;  %v2710_v19 = vld [vmem:[%s4073_s1 + $0x22c] ss:$16 sps:$4 sm:$0xff]   ;;  %v3271_v20 = vrot.slane %v317_v16, %v3181_v49  ;;  %v348_v22 = vcombine.high %v338_v60, %v338_v60 }
  0x19   :  { %1670 = vmatprep.mubr.bf16.mxu0 %v338_v60  ;;  %1834 = vmatprep.mubr.bf16.mxu1 %v338_v60  ;;  %v2705_v23 = vld [vmem:[%s4073_s1 + $0x220] ss:$16 sps:$4 sm:$0xff]   ;;  %v2708_v24 = vld [vmem:[%s4073_s1 + $0x228] ss:$16 sps:$4 sm:$0xff]   ;;  %v2713_v25 = vld [vmem:[%s4073_s1 + $0x244] ss:$16 sps:$4 sm:$0xff]  }
  0x1a   :  { %v2726_v36 = vld [vmem:[%s4073_s1 + $0x288] ss:$16 sps:$4 sm:$0xff]   ;;  %v2731_v37 = vld [vmem:[%s4073_s1 + $0x2a4] ss:$16 sps:$4 sm:$0xff]   ;;  %v2734_v38 = vld [vmem:[%s4073_s1 + $0x2ac] ss:$16 sps:$4 sm:$0xff]  }
  0x1b   :  { %1651 = vmatpush1.bf16.msra.mxu0 %v2643_v26  ;;  %1815 = vmatpush1.bf16.msra.mxu1 %v2644_v27  ;;  %v2716_v26 = vld [vmem:[%s4073_s1 + $0x24c] ss:$16 sps:$4 sm:$0xff]   ;;  %v2711_v27 = vld [vmem:[%s4073_s1 + $0x240] ss:$16 sps:$4 sm:$0xff]   ;;  %v2744_v49 = vld [vmem:[%s4073_s1 + $0x2e8] ss:$16 sps:$4 sm:$0xff]  }
  0x1c   :  { %1652 = vmatprep.subr.bf16.mxu0 %v2645_v28  ;;  %1816 = vmatprep.subr.bf16.mxu1 %v2647_v29  ;;  %v2714_v28 = vld [vmem:[%s4073_s1 + $0x248] ss:$16 sps:$4 sm:$0xff]   ;;  %v2719_v29 = vld [vmem:[%s4073_s1 + $0x264] ss:$16 sps:$4 sm:$0xff]   ;;  %v2740_v43 = vld [vmem:[%s4073_s1 + $0x2cc] ss:$16 sps:$4 sm:$0xff]  }
  0x1d   :  { %v2747_v52 = vld [vmem:[%s4073_s1 + $0x300] ss:$16 sps:$4 sm:$0xff]   ;;  %v2755_v54 = vld [vmem:[%s4073_s1 + $0x324] ss:$16 sps:$4 sm:$0xff]   ;;  %v2780_v9 = vld [vmem:[%s4073_s1 + $0x3a8] ss:$16 sps:$4 sm:$0xff]  }
  0x1e   :  { %v2761_v58 = vld [vmem:[%s4073_s1 + $0x344] ss:$16 sps:$4 sm:$0xff]   ;;  %v2759_v60 = vld [vmem:[%s4073_s1 + $0x340] ss:$16 sps:$4 sm:$0xff]   ;;  %v2786_v13 = vld [vmem:[%s4073_s1 + $0x3c8] ss:$16 sps:$4 sm:$0xff]  }
  0x1f   :  { %1653 = vmatpush1.bf16.msra.mxu0 %v2649_v30  ;;  %1817 = vmatpush1.bf16.msra.mxu1 %v2650_v31  ;;  %v2722_v30 = vld [vmem:[%s4073_s1 + $0x26c] ss:$16 sps:$4 sm:$0xff]   ;;  %v2717_v31 = vld [vmem:[%s4073_s1 + $0x260] ss:$16 sps:$4 sm:$0xff]  }
  0x20   :  { %1654 = vmatprep.subr.bf16.mxu0 %v2651_v32  ;;  %1818 = vmatprep.subr.bf16.mxu1 %v2653_v33  ;;  %v2720_v32 = vld [vmem:[%s4073_s1 + $0x268] ss:$16 sps:$4 sm:$0xff]   ;;  %v2725_v33 = vld [vmem:[%s4073_s1 + $0x284] ss:$16 sps:$4 sm:$0xff]   ;;  %v2794_v16 = vld [vmem:[%s4073_s1 + $0x3ec] ss:$16 sps:$4 sm:$0xff]  }
  0x23   :  { %1655 = vmatpush1.bf16.msra.mxu0 %v2655_v34  ;;  %1819 = vmatpush1.bf16.msra.mxu1 %v2656_v35  ;;  %v2728_v34 = vld [vmem:[%s4073_s1 + $0x28c] ss:$16 sps:$4 sm:$0xff]   ;;  %v2723_v35 = vld [vmem:[%s4073_s1 + $0x280] ss:$16 sps:$4 sm:$0xff]  }
  0x24   :  { %1656 = vmatprep.subr.bf16.mxu0 %v2657_v39  ;;  %1820 = vmatprep.subr.bf16.mxu1 %v2659_v40  ;;  %v2729_v39 = vld [vmem:[%s4073_s1 + $0x2a0] ss:$16 sps:$4 sm:$0xff]   ;;  %v2732_v40 = vld [vmem:[%s4073_s1 + $0x2a8] ss:$16 sps:$4 sm:$0xff]  }
  0x27   :  { %1657 = vmatpush1.bf16.msra.mxu0 %v2661_v41  ;;  %1821 = vmatpush1.bf16.msra.mxu1 %v2662_v44  ;;  %v2737_v41 = vld [vmem:[%s4073_s1 + $0x2c4] ss:$16 sps:$4 sm:$0xff]   ;;  %v2735_v44 = vld [vmem:[%s4073_s1 + $0x2c0] ss:$16 sps:$4 sm:$0xff]  }
  0x28   :  { %1658 = vmatprep.subr.bf16.mxu0 %v2663_v45  ;;  %1822 = vmatprep.subr.bf16.mxu1 %v2665_v46  ;;  %v2738_v45 = vld [vmem:[%s4073_s1 + $0x2c8] ss:$16 sps:$4 sm:$0xff]   ;;  %v2743_v46 = vld [vmem:[%s4073_s1 + $0x2e4] ss:$16 sps:$4 sm:$0xff]  }
  0x2b   :  { %1659 = vmatpush1.bf16.msra.mxu0 %v2667_v47  ;;  %1823 = vmatpush1.bf16.msra.mxu1 %v2668_v48  ;;  %v2746_v47 = vld [vmem:[%s4073_s1 + $0x2ec] ss:$16 sps:$4 sm:$0xff]   ;;  %v2741_v48 = vld [vmem:[%s4073_s1 + $0x2e0] ss:$16 sps:$4 sm:$0xff]  }
  0x2c   :  { %1660 = vmatprep.subr.bf16.mxu0 %v2669_v50  ;;  %1824 = vmatprep.subr.bf16.mxu1 %v2671_v51  ;;  %v2749_v50 = vld [vmem:[%s4073_s1 + $0x304] ss:$16 sps:$4 sm:$0xff]   ;;  %v2752_v51 = vld [vmem:[%s4073_s1 + $0x30c] ss:$16 sps:$4 sm:$0xff]  }
  0x2f   :  { %1661 = vmatpush1.bf16.msra.mxu0 %v2673_v53  ;;  %1825 = vmatpush1.bf16.msra.mxu1 %v2674_v55  ;;  %v2750_v53 = vld [vmem:[%s4073_s1 + $0x308] ss:$16 sps:$4 sm:$0xff]   ;;  %v2758_v55 = vld [vmem:[%s4073_s1 + $0x32c] ss:$16 sps:$4 sm:$0xff]  }
  0x30   :  { %1662 = vmatprep.subr.bf16.mxu0 %v2675_v56  ;;  %1826 = vmatprep.subr.bf16.mxu1 %v2677_v57  ;;  %v2753_v56 = vld [vmem:[%s4073_s1 + $0x320] ss:$16 sps:$4 sm:$0xff]   ;;  %v2756_v57 = vld [vmem:[%s4073_s1 + $0x328] ss:$16 sps:$4 sm:$0xff]  }
  0x33   :  { %1663 = vmatpush1.bf16.msra.mxu0 %v2679_v59  ;;  %1827 = vmatpush1.bf16.msra.mxu1 %v2680_v61  ;;  %v2764_v59 = vld [vmem:[%s4073_s1 + $0x34c] ss:$16 sps:$4 sm:$0xff]   ;;  %v2762_v61 = vld [vmem:[%s4073_s1 + $0x348] ss:$16 sps:$4 sm:$0xff]  }
  0x34   :  { %1664 = vmatprep.subr.bf16.mxu0 %v2681_v62  ;;  %1828 = vmatprep.subr.bf16.mxu1 %v2683_v63  ;;  %v2767_v62 = vld [vmem:[%s4073_s1 + $0x364] ss:$16 sps:$4 sm:$0xff]   ;;  %v2770_v63 = vld [vmem:[%s4073_s1 + $0x36c] ss:$16 sps:$4 sm:$0xff]  }
  0x37   :  { %1665 = vmatpush1.bf16.msra.mxu0 %v2685_v0  ;;  %1829 = vmatpush1.bf16.msra.mxu1 %v2686_v1  ;;  %v2765_v0 = vld [vmem:[%s4073_s1 + $0x360] ss:$16 sps:$4 sm:$0xff]   ;;  %v2768_v1 = vld [vmem:[%s4073_s1 + $0x368] ss:$16 sps:$4 sm:$0xff]  }
  0x38   :  { %1666 = vmatprep.subr.bf16.mxu0 %v2687_v2  ;;  %1830 = vmatprep.subr.bf16.mxu1 %v2689_v3  ;;  %v2773_v2 = vld [vmem:[%s4073_s1 + $0x384] ss:$16 sps:$4 sm:$0xff]   ;;  %v2776_v3 = vld [vmem:[%s4073_s1 + $0x38c] ss:$16 sps:$4 sm:$0xff]  }
  0x3b   :  { %1667 = vmatpush1.bf16.msra.mxu0 %v2691_v4  ;;  %1831 = vmatpush1.bf16.msra.mxu1 %v2692_v5  ;;  %v2771_v4 = vld [vmem:[%s4073_s1 + $0x380] ss:$16 sps:$4 sm:$0xff]   ;;  %v2774_v5 = vld [vmem:[%s4073_s1 + $0x388] ss:$16 sps:$4 sm:$0xff]  }
  0x3c   :  { %1668 = vmatprep.subr.bf16.mxu0 %v2693_v6  ;;  %1832 = vmatprep.subr.bf16.mxu1 %v2695_v7  ;;  %v2779_v6 = vld [vmem:[%s4073_s1 + $0x3a4] ss:$16 sps:$4 sm:$0xff]   ;;  %v2782_v7 = vld [vmem:[%s4073_s1 + $0x3ac] ss:$16 sps:$4 sm:$0xff]  }
  0x3f   :  { %1669 = vmatpush1.bf16.msra.mxu0 %v2697_v8  ;;  %1833 = vmatpush1.bf16.msra.mxu1 %v2698_v10  ;;  %v2777_v8 = vld [vmem:[%s4073_s1 + $0x3a0] ss:$16 sps:$4 sm:$0xff]   ;;  %v2785_v10 = vld [vmem:[%s4073_s1 + $0x3c4] ss:$16 sps:$4 sm:$0xff]  }
  0x40   :  { %1679 = vmatprep.subr.bf16.mxu0 %v2701_v11  ;;  %1843 = vmatprep.subr.bf16.mxu1 %v2704_v12  ;;  %v2788_v11 = vld [vmem:[%s4073_s1 + $0x3cc] ss:$16 sps:$4 sm:$0xff]   ;;  %v2783_v12 = vld [vmem:[%s4073_s1 + $0x3c0] ss:$16 sps:$4 sm:$0xff]  }
  0x42   :  { %1671 = vmatmul.mubr.bf16.vlgmr.msra.gmra.mrb[0].mxu0 %v3259_v15  ;;  %1835 = vmatmul.mubr.bf16.vlgmr.msra.gmra.mrb[0].mxu1 %v3259_v15 }
  0x43   :  { %1680 = vmatpush1.bf16.msra.mxu0 %v2699_v14  ;;  %1844 = vmatpush1.bf16.msra.mxu1 %v2702_v17  ;;  %v2791_v14 = vld [vmem:[%s4073_s1 + $0x3e4] ss:$16 sps:$4 sm:$0xff]   ;;  %v2789_v17 = vld [vmem:[%s4073_s1 + $0x3e0] ss:$16 sps:$4 sm:$0xff]  }
  0x44   :  { %1681 = vmatprep.subr.bf16.mxu0 %v2707_v18  ;;  %1845 = vmatprep.subr.bf16.mxu1 %v2710_v19  ;;  %v2792_v18 = vld [vmem:[%s4073_s1 + $0x3e8] ss:$16 sps:$4 sm:$0xff]   ;;  %v2797_v19 = vld [vmem:[%s4073_s1 + $0x404] ss:$16 sps:$4 sm:$0xff]  }
  0x45   :  { %1711 = vmatprep.mubr.bf16.mxu0 %v348_v22  ;;  %1875 = vmatprep.mubr.bf16.mxu1 %v348_v22  ;;  %v2800_v22 = vld [vmem:[%s4073_s1 + $0x40c] ss:$16 sps:$4 sm:$0xff]  }
  0x47   :  { %1682 = vmatpush1.bf16.msra.mxu0 %v2705_v23  ;;  %1846 = vmatpush1.bf16.msra.mxu1 %v2708_v24  ;;  %v2795_v23 = vld [vmem:[%s4073_s1 + $0x400] ss:$16 sps:$4 sm:$0xff]   ;;  %v346_v24 = vcombine.high %v3259_v15, %v3259_v15 }
  0x48   :  { %1683 = vmatprep.subr.bf16.mxu0 %v2713_v25  ;;  %1847 = vmatprep.subr.bf16.mxu1 %v2716_v26  ;;  %v2798_v25 = vld [vmem:[%s4073_s1 + $0x408] ss:$16 sps:$4 sm:$0xff]   ;;  %v2803_v26 = vld [vmem:[%s4073_s1 + $0x424] ss:$16 sps:$4 sm:$0xff]   ;;  %v2801_v15 = vld [vmem:[%s4073_s1 + $0x420] ss:$16 sps:$4 sm:$0xff]  }
  0x4b   :  { %1684 = vmatpush1.bf16.msra.mxu0 %v2711_v27  ;;  %1848 = vmatpush1.bf16.msra.mxu1 %v2714_v28  ;;  %v2806_v27 = vld [vmem:[%s4073_s1 + $0x42c] ss:$16 sps:$4 sm:$0xff]   ;;  %v2804_v28 = vld [vmem:[%s4073_s1 + $0x428] ss:$16 sps:$4 sm:$0xff]  }
  0x4c   :  { %1685 = vmatprep.subr.bf16.mxu0 %v2719_v29  ;;  %1849 = vmatprep.subr.bf16.mxu1 %v2722_v30  ;;  %v2809_v29 = vld [vmem:[%s4073_s1 + $0x444] ss:$16 sps:$4 sm:$0xff]   ;;  %v2812_v30 = vld [vmem:[%s4073_s1 + $0x44c] ss:$16 sps:$4 sm:$0xff]  }
  0x4f   :  { %1686 = vmatpush1.bf16.msra.mxu0 %v2717_v31  ;;  %1850 = vmatpush1.bf16.msra.mxu1 %v2720_v32  ;;  %v2807_v31 = vld [vmem:[%s4073_s1 + $0x440] ss:$16 sps:$4 sm:$0xff]   ;;  %v2810_v32 = vld [vmem:[%s4073_s1 + $0x448] ss:$16 sps:$4 sm:$0xff]  }
  0x50   :  { %1687 = vmatprep.subr.bf16.mxu0 %v2725_v33  ;;  %1851 = vmatprep.subr.bf16.mxu1 %v2728_v34  ;;  %v2815_v33 = vld [vmem:[%s4073_s1 + $0x464] ss:$16 sps:$4 sm:$0xff]   ;;  %v2818_v34 = vld [vmem:[%s4073_s1 + $0x46c] ss:$16 sps:$4 sm:$0xff]  }
  0x53   :  { %1688 = vmatpush1.bf16.msra.mxu0 %v2723_v35  ;;  %1852 = vmatpush1.bf16.msra.mxu1 %v2726_v36  ;;  %v2813_v35 = vld [vmem:[%s4073_s1 + $0x460] ss:$16 sps:$4 sm:$0xff]   ;;  %v2816_v36 = vld [vmem:[%s4073_s1 + $0x468] ss:$16 sps:$4 sm:$0xff]  }
  0x54   :  { %1689 = vmatprep.subr.bf16.mxu0 %v2731_v37  ;;  %1853 = vmatprep.subr.bf16.mxu1 %v2734_v38  ;;  %v2821_v37 = vld [vmem:[%s4073_s1 + $0x484] ss:$16 sps:$4 sm:$0xff]   ;;  %v2824_v38 = vld [vmem:[%s4073_s1 + $0x48c] ss:$16 sps:$4 sm:$0xff]  }
  0x57   :  { %1690 = vmatpush1.bf16.msra.mxu0 %v2729_v39  ;;  %1854 = vmatpush1.bf16.msra.mxu1 %v2732_v40  ;;  %v2819_v39 = vld [vmem:[%s4073_s1 + $0x480] ss:$16 sps:$4 sm:$0xff]   ;;  %v2822_v40 = vld [vmem:[%s4073_s1 + $0x488] ss:$16 sps:$4 sm:$0xff]  }
  0x58   :  { %1691 = vmatprep.subr.bf16.mxu0 %v2737_v41  ;;  %1855 = vmatprep.subr.bf16.mxu1 %v2740_v43  ;;  %v2827_v41 = vld [vmem:[%s4073_s1 + $0x4a4] ss:$16 sps:$4 sm:$0xff]   ;;  %v2830_v43 = vld [vmem:[%s4073_s1 + $0x4ac] ss:$16 sps:$4 sm:$0xff]  }
  0x5b   :  { %1692 = vmatpush1.bf16.msra.mxu0 %v2735_v44  ;;  %1856 = vmatpush1.bf16.msra.mxu1 %v2738_v45  ;;  %v2825_v44 = vld [vmem:[%s4073_s1 + $0x4a0] ss:$16 sps:$4 sm:$0xff]   ;;  %v2828_v45 = vld [vmem:[%s4073_s1 + $0x4a8] ss:$16 sps:$4 sm:$0xff]  }
  0x5c   :  { %1693 = vmatprep.subr.bf16.mxu0 %v2743_v46  ;;  %1857 = vmatprep.subr.bf16.mxu1 %v2746_v47  ;;  %v2833_v46 = vld [vmem:[%s4073_s1 + $0x4c4] ss:$16 sps:$4 sm:$0xff]   ;;  %v2836_v47 = vld [vmem:[%s4073_s1 + $0x4cc] ss:$16 sps:$4 sm:$0xff]  }
  0x5f   :  { %1694 = vmatpush1.bf16.msra.mxu0 %v2741_v48  ;;  %1858 = vmatpush1.bf16.msra.mxu1 %v2744_v49  ;;  %v2831_v48 = vld [vmem:[%s4073_s1 + $0x4c0] ss:$16 sps:$4 sm:$0xff]   ;;  %v2834_v49 = vld [vmem:[%s4073_s1 + $0x4c8] ss:$16 sps:$4 sm:$0xff]  }
  0x60   :  { %1695 = vmatprep.subr.bf16.mxu0 %v2749_v50  ;;  %1859 = vmatprep.subr.bf16.mxu1 %v2752_v51  ;;  %v2839_v50 = vld [vmem:[%s4073_s1 + $0x4e4] ss:$16 sps:$4 sm:$0xff]   ;;  %v2842_v51 = vld [vmem:[%s4073_s1 + $0x4ec] ss:$16 sps:$4 sm:$0xff]  }
  0x63   :  { %1696 = vmatpush1.bf16.msra.mxu0 %v2747_v52  ;;  %1860 = vmatpush1.bf16.msra.mxu1 %v2750_v53  ;;  %v2837_v52 = vld [vmem:[%s4073_s1 + $0x4e0] ss:$16 sps:$4 sm:$0xff]   ;;  %v2840_v53 = vld [vmem:[%s4073_s1 + $0x4e8] ss:$16 sps:$4 sm:$0xff]  }
  0x64   :  { %1697 = vmatprep.subr.bf16.mxu0 %v2755_v54  ;;  %1861 = vmatprep.subr.bf16.mxu1 %v2758_v55  ;;  %v2845_v54 = vld [vmem:[%s4073_s1 + $0x504] ss:$16 sps:$4 sm:$0xff]   ;;  %v2848_v55 = vld [vmem:[%s4073_s1 + $0x50c] ss:$16 sps:$4 sm:$0xff]  }
  0x67   :  { %1698 = vmatpush1.bf16.msra.mxu0 %v2753_v56  ;;  %1862 = vmatpush1.bf16.msra.mxu1 %v2756_v57  ;;  %v2843_v56 = vld [vmem:[%s4073_s1 + $0x500] ss:$16 sps:$4 sm:$0xff]   ;;  %v2846_v57 = vld [vmem:[%s4073_s1 + $0x508] ss:$16 sps:$4 sm:$0xff]  }
  0x68   :  { %1699 = vmatprep.subr.bf16.mxu0 %v2761_v58  ;;  %1863 = vmatprep.subr.bf16.mxu1 %v2764_v59  ;;  %v2851_v58 = vld [vmem:[%s4073_s1 + $0x524] ss:$16 sps:$4 sm:$0xff]   ;;  %v2854_v59 = vld [vmem:[%s4073_s1 + $0x52c] ss:$16 sps:$4 sm:$0xff]  }
  0x6b   :  { %1700 = vmatpush1.bf16.msra.mxu0 %v2759_v60  ;;  %1864 = vmatpush1.bf16.msra.mxu1 %v2762_v61  ;;  %v2849_v60 = vld [vmem:[%s4073_s1 + $0x520] ss:$16 sps:$4 sm:$0xff]   ;;  %v2852_v61 = vld [vmem:[%s4073_s1 + $0x528] ss:$16 sps:$4 sm:$0xff]  }
  0x6c   :  { %1701 = vmatprep.subr.bf16.mxu0 %v2767_v62  ;;  %1865 = vmatprep.subr.bf16.mxu1 %v2770_v63  ;;  %v2857_v62 = vld [vmem:[%s4073_s1 + $0x544] ss:$16 sps:$4 sm:$0xff]   ;;  %v2860_v63 = vld [vmem:[%s4073_s1 + $0x54c] ss:$16 sps:$4 sm:$0xff]  }
  0x6f   :  { %1702 = vmatpush1.bf16.msra.mxu0 %v2765_v0  ;;  %1866 = vmatpush1.bf16.msra.mxu1 %v2768_v1  ;;  %v2855_v0 = vld [vmem:[%s4073_s1 + $0x540] ss:$16 sps:$4 sm:$0xff]   ;;  %v2858_v1 = vld [vmem:[%s4073_s1 + $0x548] ss:$16 sps:$4 sm:$0xff]  }
  0x70   :  { %1703 = vmatprep.subr.bf16.mxu0 %v2773_v2  ;;  %1867 = vmatprep.subr.bf16.mxu1 %v2776_v3  ;;  %v2863_v2 = vld [vmem:[%s4073_s1 + $0x564] ss:$16 sps:$4 sm:$0xff]   ;;  %v2866_v3 = vld [vmem:[%s4073_s1 + $0x56c] ss:$16 sps:$4 sm:$0xff]  }
  0x73   :  { %1704 = vmatpush1.bf16.msra.mxu0 %v2771_v4  ;;  %1868 = vmatpush1.bf16.msra.mxu1 %v2774_v5  ;;  %v2861_v4 = vld [vmem:[%s4073_s1 + $0x560] ss:$16 sps:$4 sm:$0xff]   ;;  %v2864_v5 = vld [vmem:[%s4073_s1 + $0x568] ss:$16 sps:$4 sm:$0xff]  }
  0x74   :  { %1705 = vmatprep.subr.bf16.mxu0 %v2779_v6  ;;  %1869 = vmatprep.subr.bf16.mxu1 %v2782_v7  ;;  %v2869_v6 = vld [vmem:[%s4073_s1 + $0x584] ss:$16 sps:$4 sm:$0xff]   ;;  %v2872_v7 = vld [vmem:[%s4073_s1 + $0x58c] ss:$16 sps:$4 sm:$0xff]  }
  0x77   :  { %1706 = vmatpush1.bf16.msra.mxu0 %v2777_v8  ;;  %1870 = vmatpush1.bf16.msra.mxu1 %v2780_v9  ;;  %v2867_v8 = vld [vmem:[%s4073_s1 + $0x580] ss:$16 sps:$4 sm:$0xff]   ;;  %v2870_v9 = vld [vmem:[%s4073_s1 + $0x588] ss:$16 sps:$4 sm:$0xff]  }
  0x78   :  { %1707 = vmatprep.subr.bf16.mxu0 %v2785_v10  ;;  %1871 = vmatprep.subr.bf16.mxu1 %v2788_v11  ;;  %v2875_v10 = vld [vmem:[%s4073_s1 + $0x5a4] ss:$16 sps:$4 sm:$0xff]   ;;  %v2878_v11 = vld [vmem:[%s4073_s1 + $0x5ac] ss:$16 sps:$4 sm:$0xff]  }
  0x7b   :  { %1708 = vmatpush1.bf16.msra.mxu0 %v2783_v12  ;;  %1872 = vmatpush1.bf16.msra.mxu1 %v2786_v13  ;;  %v2873_v12 = vld [vmem:[%s4073_s1 + $0x5a0] ss:$16 sps:$4 sm:$0xff]   ;;  %v2876_v13 = vld [vmem:[%s4073_s1 + $0x5a8] ss:$16 sps:$4 sm:$0xff]  }
  0x7c   :  { %1709 = vmatprep.subr.bf16.mxu0 %v2791_v14  ;;  %1873 = vmatprep.subr.bf16.mxu1 %v2794_v16  ;;  %v2881_v14 = vld [vmem:[%s4073_s1 + $0x5c4] ss:$16 sps:$4 sm:$0xff]   ;;  %v2884_v16 = vld [vmem:[%s4073_s1 + $0x5cc] ss:$16 sps:$4 sm:$0xff]  }
  0x7f   :  { %1710 = vmatpush1.bf16.msra.mxu0 %v2789_v17  ;;  %1874 = vmatpush1.bf16.msra.mxu1 %v2792_v18  ;;  %v2879_v17 = vld [vmem:[%s4073_s1 + $0x5c0] ss:$16 sps:$4 sm:$0xff]   ;;  %v2882_v18 = vld [vmem:[%s4073_s1 + $0x5c8] ss:$16 sps:$4 sm:$0xff]  }
  0x80   :  { %1720 = vmatprep.subr.bf16.mxu0 %v2797_v19  ;;  %1884 = vmatprep.subr.bf16.mxu1 %v2800_v22  ;;  %v2887_v19 = vld [vmem:[%s4073_s1 + $0x5e4] ss:$16 sps:$4 sm:$0xff]   ;;  %v2890_v22 = vld [vmem:[%s4073_s1 + $0x5ec] ss:$16 sps:$4 sm:$0xff]  }
  0x82   :  { %1712 = vmatmul.mubr.bf16.vlgmr.msra.gmra.mrb[0].mxu0 %v346_v24  ;;  %1876 = vmatmul.mubr.bf16.vlgmr.msra.gmra.mrb[0].mxu1 %v346_v24  ;;  %v2888_v24 = vld [vmem:[%s4073_s1 + $0x5e8] ss:$16 sps:$4 sm:$0xff]  }
  0x83   :  { %1721 = vmatpush1.bf16.msra.mxu0 %v2795_v23  ;;  %1885 = vmatpush1.bf16.msra.mxu1 %v2798_v25  ;;  %v2885_v23 = vld [vmem:[%s4073_s1 + $0x5e0] ss:$16 sps:$4 sm:$0xff]   ;;  %v2894_v25 = vld [vmem:[%s4073_s1 + $0x604] ss:$16 sps:$4 sm:$0xff]  }
  0x84   :  { %1722 = vmatprep.subr.bf16.mxu0 %v2803_v26  ;;  %1886 = vmatprep.subr.bf16.mxu1 %v2806_v27  ;;  %v2897_v26 = vld [vmem:[%s4073_s1 + $0x60c] ss:$16 sps:$4 sm:$0xff]  }
  0x85   :  { %1752 = vmatprep.mubr.bf16.mxu0 %v3271_v20  ;;  %1916 = vmatprep.mubr.bf16.mxu1 %v3271_v20 }
  0x87   :  { %1723 = vmatpush1.bf16.msra.mxu0 %v2801_v15  ;;  %1887 = vmatpush1.bf16.msra.mxu1 %v2804_v28 }
  0x88   :  { %1724 = vmatprep.subr.bf16.mxu0 %v2809_v29  ;;  %1888 = vmatprep.subr.bf16.mxu1 %v2812_v30 }
  0x8b   :  { %1725 = vmatpush1.bf16.msra.mxu0 %v2807_v31  ;;  %1889 = vmatpush1.bf16.msra.mxu1 %v2810_v32 }
  0x8c   :  { %1726 = vmatprep.subr.bf16.mxu0 %v2815_v33  ;;  %1890 = vmatprep.subr.bf16.mxu1 %v2818_v34 }
  0x8f   :  { %1727 = vmatpush1.bf16.msra.mxu0 %v2813_v35  ;;  %1891 = vmatpush1.bf16.msra.mxu1 %v2816_v36 }
  0x90   :  { %1728 = vmatprep.subr.bf16.mxu0 %v2821_v37  ;;  %1892 = vmatprep.subr.bf16.mxu1 %v2824_v38 }
  0x93   :  { %1729 = vmatpush1.bf16.msra.mxu0 %v2819_v39  ;;  %1893 = vmatpush1.bf16.msra.mxu1 %v2822_v40 }
  0x94   :  { %1730 = vmatprep.subr.bf16.mxu0 %v2827_v41  ;;  %1894 = vmatprep.subr.bf16.mxu1 %v2830_v43 }
  0x97   :  { %1731 = vmatpush1.bf16.msra.mxu0 %v2825_v44  ;;  %1895 = vmatpush1.bf16.msra.mxu1 %v2828_v45 }
  0x98   :  { %1732 = vmatprep.subr.bf16.mxu0 %v2833_v46  ;;  %1896 = vmatprep.subr.bf16.mxu1 %v2836_v47 }
  0x9b   :  { %1733 = vmatpush1.bf16.msra.mxu0 %v2831_v48  ;;  %1897 = vmatpush1.bf16.msra.mxu1 %v2834_v49 }
  0x9c   :  { %1734 = vmatprep.subr.bf16.mxu0 %v2839_v50  ;;  %1898 = vmatprep.subr.bf16.mxu1 %v2842_v51 }
  0x9f   :  { %1735 = vmatpush1.bf16.msra.mxu0 %v2837_v52  ;;  %1899 = vmatpush1.bf16.msra.mxu1 %v2840_v53 }
  0xa0   :  { %1736 = vmatprep.subr.bf16.mxu0 %v2845_v54  ;;  %1900 = vmatprep.subr.bf16.mxu1 %v2848_v55 }
  0xa3   :  { %1737 = vmatpush1.bf16.msra.mxu0 %v2843_v56  ;;  %1901 = vmatpush1.bf16.msra.mxu1 %v2846_v57 }
  0xa4   :  { %1738 = vmatprep.subr.bf16.mxu0 %v2851_v58  ;;  %1902 = vmatprep.subr.bf16.mxu1 %v2854_v59 }
  0xa7   :  { %1739 = vmatpush1.bf16.msra.mxu0 %v2849_v60  ;;  %1903 = vmatpush1.bf16.msra.mxu1 %v2852_v61 }
  0xa8   :  { %1740 = vmatprep.subr.bf16.mxu0 %v2857_v62  ;;  %1904 = vmatprep.subr.bf16.mxu1 %v2860_v63 }
  0xab   :  { %1741 = vmatpush1.bf16.msra.mxu0 %v2855_v0  ;;  %1905 = vmatpush1.bf16.msra.mxu1 %v2858_v1 }
  0xac   :  { %1742 = vmatprep.subr.bf16.mxu0 %v2863_v2  ;;  %1906 = vmatprep.subr.bf16.mxu1 %v2866_v3 }
  0xaf   :  { %1743 = vmatpush1.bf16.msra.mxu0 %v2861_v4  ;;  %1907 = vmatpush1.bf16.msra.mxu1 %v2864_v5 }
  0xb0   :  { %1744 = vmatprep.subr.bf16.mxu0 %v2869_v6  ;;  %1908 = vmatprep.subr.bf16.mxu1 %v2872_v7 }
  0xb3   :  { %1745 = vmatpush1.bf16.msra.mxu0 %v2867_v8  ;;  %1909 = vmatpush1.bf16.msra.mxu1 %v2870_v9 }
  0xb4   :  { %1746 = vmatprep.subr.bf16.mxu0 %v2875_v10  ;;  %1910 = vmatprep.subr.bf16.mxu1 %v2878_v11 }
  0xb7   :  { %1747 = vmatpush1.bf16.msra.mxu0 %v2873_v12  ;;  %1911 = vmatpush1.bf16.msra.mxu1 %v2876_v13 }
  0xb8   :  { %1748 = vmatprep.subr.bf16.mxu0 %v2881_v14  ;;  %1912 = vmatprep.subr.bf16.mxu1 %v2884_v16 }
  0xbb   :  { %1749 = vmatpush1.bf16.msra.mxu0 %v2879_v17  ;;  %1913 = vmatpush1.bf16.msra.mxu1 %v2882_v18 }
  0xbc   :  { %1750 = vmatprep.subr.bf16.mxu0 %v2887_v19  ;;  %1914 = vmatprep.subr.bf16.mxu1 %v2890_v22 }
  0xbd   :  { %10 = vsyncpa [#allocation3], 0  ;;  %v2892_v27 = vld [vmem:[%s4073_s1 + $0x600] ss:$16 sps:$4 sm:$0xff]   ;;  %v2895_v15 = vld [vmem:[%s4073_s1 + $0x608] ss:$16 sps:$4 sm:$0xff]   ;;  %v349_v30 = vcombine.high %v3271_v20, %v3271_v20 }
  0xbe   :  { %v2900_v28 = vld [vmem:[%s4073_s1 + $0x624] ss:$16 sps:$4 sm:$0xff]   ;;  %v2903_v29 = vld [vmem:[%s4073_s1 + $0x62c] ss:$16 sps:$4 sm:$0xff]   ;;  %v2898_v31 = vld [vmem:[%s4073_s1 + $0x620] ss:$16 sps:$4 sm:$0xff]  }
  0xbf   :  { %1751 = vmatpush1.bf16.msra.mxu0 %v2885_v23  ;;  %1915 = vmatpush1.bf16.msra.mxu1 %v2888_v24  ;;  %v2901_v32 = vld [vmem:[%s4073_s1 + $0x628] ss:$16 sps:$4 sm:$0xff]   ;;  %v2906_v20 = vld [vmem:[%s4073_s1 + $0x644] ss:$16 sps:$4 sm:$0xff]   ;;  %v2909_v33 = vld [vmem:[%s4073_s1 + $0x64c] ss:$16 sps:$4 sm:$0xff]  }
  0xc0   :  { %1761 = vmatprep.subr.bf16.mxu0 %v2894_v25  ;;  %1925 = vmatprep.subr.bf16.mxu1 %v2897_v26  ;;  %v2904_v34 = vld [vmem:[%s4073_s1 + $0x640] ss:$16 sps:$4 sm:$0xff]   ;;  %v2907_v35 = vld [vmem:[%s4073_s1 + $0x648] ss:$16 sps:$4 sm:$0xff]   ;;  %v2912_v36 = vld [vmem:[%s4073_s1 + $0x664] ss:$16 sps:$4 sm:$0xff]  }
  0xc1   :  { %v2915_v37 = vld [vmem:[%s4073_s1 + $0x66c] ss:$16 sps:$4 sm:$0xff]   ;;  %v2910_v38 = vld [vmem:[%s4073_s1 + $0x660] ss:$16 sps:$4 sm:$0xff]   ;;  %v2913_v39 = vld [vmem:[%s4073_s1 + $0x668] ss:$16 sps:$4 sm:$0xff]  }
  0xc2   :  { %1753 = vmatmul.mubr.bf16.vlgmr.msra.gmra.mrb[0].mxu0 %v3274_v21  ;;  %1917 = vmatmul.mubr.bf16.vlgmr.msra.gmra.mrb[0].mxu1 %v3274_v21  ;;  %v2918_v40 = vld [vmem:[%s4073_s1 + $0x684] ss:$16 sps:$4 sm:$0xff]   ;;  %v2921_v41 = vld [vmem:[%s4073_s1 + $0x68c] ss:$16 sps:$4 sm:$0xff]   ;;  %v2916_v43 = vld [vmem:[%s4073_s1 + $0x680] ss:$16 sps:$4 sm:$0xff]  }
  0xc3   :  { %1762 = vmatpush1.bf16.msra.mxu0 %v2892_v27  ;;  %1926 = vmatpush1.bf16.msra.mxu1 %v2895_v15  ;;  %v2919_v44 = vld [vmem:[%s4073_s1 + $0x688] ss:$16 sps:$4 sm:$0xff]   ;;  %v2924_v45 = vld [vmem:[%s4073_s1 + $0x6a4] ss:$16 sps:$4 sm:$0xff]   ;;  %v2927_v46 = vld [vmem:[%s4073_s1 + $0x6ac] ss:$16 sps:$4 sm:$0xff]  }
  0xc4   :  { %1763 = vmatprep.subr.bf16.mxu0 %v2900_v28  ;;  %1927 = vmatprep.subr.bf16.mxu1 %v2903_v29  ;;  %v2922_v47 = vld [vmem:[%s4073_s1 + $0x6a0] ss:$16 sps:$4 sm:$0xff]   ;;  %v2925_v48 = vld [vmem:[%s4073_s1 + $0x6a8] ss:$16 sps:$4 sm:$0xff]   ;;  %v2930_v49 = vld [vmem:[%s4073_s1 + $0x6c4] ss:$16 sps:$4 sm:$0xff]  }
  0xc5   :  { %1793 = vmatprep.mubr.bf16.mxu0 %v349_v30  ;;  %1957 = vmatprep.mubr.bf16.mxu1 %v349_v30  ;;  %v2933_v50 = vld [vmem:[%s4073_s1 + $0x6cc] ss:$16 sps:$4 sm:$0xff]   ;;  %v2928_v51 = vld [vmem:[%s4073_s1 + $0x6c0] ss:$16 sps:$4 sm:$0xff]   ;;  %v2931_v52 = vld [vmem:[%s4073_s1 + $0x6c8] ss:$16 sps:$4 sm:$0xff]  }
  0xc6   :  { %v2936_v53 = vld [vmem:[%s4073_s1 + $0x6e4] ss:$16 sps:$4 sm:$0xff]   ;;  %v2939_v54 = vld [vmem:[%s4073_s1 + $0x6ec] ss:$16 sps:$4 sm:$0xff]   ;;  %v2934_v55 = vld [vmem:[%s4073_s1 + $0x6e0] ss:$16 sps:$4 sm:$0xff]  }
  0xc7   :  { %1764 = vmatpush1.bf16.msra.mxu0 %v2898_v31  ;;  %1928 = vmatpush1.bf16.msra.mxu1 %v2901_v32  ;;  %v2937_v56 = vld [vmem:[%s4073_s1 + $0x6e8] ss:$16 sps:$4 sm:$0xff]   ;;  %v2942_v57 = vld [vmem:[%s4073_s1 + $0x704] ss:$16 sps:$4 sm:$0xff]   ;;  %v2945_v58 = vld [vmem:[%s4073_s1 + $0x70c] ss:$16 sps:$4 sm:$0xff]  }
  0xc8   :  { %1765 = vmatprep.subr.bf16.mxu0 %v2906_v20  ;;  %1929 = vmatprep.subr.bf16.mxu1 %v2909_v33  ;;  %v2940_v59 = vld [vmem:[%s4073_s1 + $0x700] ss:$16 sps:$4 sm:$0xff]   ;;  %v2943_v60 = vld [vmem:[%s4073_s1 + $0x708] ss:$16 sps:$4 sm:$0xff]   ;;  %v2948_v61 = vld [vmem:[%s4073_s1 + $0x724] ss:$16 sps:$4 sm:$0xff]  }
  0xc9   :  { %v2951_v62 = vld [vmem:[%s4073_s1 + $0x72c] ss:$16 sps:$4 sm:$0xff]   ;;  %v2946_v63 = vld [vmem:[%s4073_s1 + $0x720] ss:$16 sps:$4 sm:$0xff]   ;;  %v2949_v0 = vld [vmem:[%s4073_s1 + $0x728] ss:$16 sps:$4 sm:$0xff]  }
  0xca   :  { %v2954_v1 = vld [vmem:[%s4073_s1 + $0x744] ss:$16 sps:$4 sm:$0xff]   ;;  %v2957_v2 = vld [vmem:[%s4073_s1 + $0x74c] ss:$16 sps:$4 sm:$0xff]   ;;  %v2952_v3 = vld [vmem:[%s4073_s1 + $0x740] ss:$16 sps:$4 sm:$0xff]  }
  0xcb   :  { %1766 = vmatpush1.bf16.msra.mxu0 %v2904_v34  ;;  %1930 = vmatpush1.bf16.msra.mxu1 %v2907_v35  ;;  %v2955_v4 = vld [vmem:[%s4073_s1 + $0x748] ss:$16 sps:$4 sm:$0xff]   ;;  %v2960_v5 = vld [vmem:[%s4073_s1 + $0x764] ss:$16 sps:$4 sm:$0xff]   ;;  %v2963_v6 = vld [vmem:[%s4073_s1 + $0x76c] ss:$16 sps:$4 sm:$0xff]   ;;  %v347_v35 = vcombine.high %v3274_v21, %v3274_v21 }
  0xcc   :  { %1767 = vmatprep.subr.bf16.mxu0 %v2912_v36  ;;  %1931 = vmatprep.subr.bf16.mxu1 %v2915_v37  ;;  %v2958_v7 = vld [vmem:[%s4073_s1 + $0x760] ss:$16 sps:$4 sm:$0xff]   ;;  %v2961_v8 = vld [vmem:[%s4073_s1 + $0x768] ss:$16 sps:$4 sm:$0xff]   ;;  %v2966_v9 = vld [vmem:[%s4073_s1 + $0x784] ss:$16 sps:$4 sm:$0xff]  }
  0xcd   :  { %v2969_v10 = vld [vmem:[%s4073_s1 + $0x78c] ss:$16 sps:$4 sm:$0xff]   ;;  %v2964_v11 = vld [vmem:[%s4073_s1 + $0x780] ss:$16 sps:$4 sm:$0xff]   ;;  %v2967_v12 = vld [vmem:[%s4073_s1 + $0x788] ss:$16 sps:$4 sm:$0xff]  }
  0xce   :  { %v2972_v13 = vld [vmem:[%s4073_s1 + $0x7a4] ss:$16 sps:$4 sm:$0xff]   ;;  %v2975_v14 = vld [vmem:[%s4073_s1 + $0x7ac] ss:$16 sps:$4 sm:$0xff]   ;;  %v2970_v16 = vld [vmem:[%s4073_s1 + $0x7a0] ss:$16 sps:$4 sm:$0xff]  }
  0xcf   :  { %1768 = vmatpush1.bf16.msra.mxu0 %v2910_v38  ;;  %1932 = vmatpush1.bf16.msra.mxu1 %v2913_v39  ;;  %v2973_v17 = vld [vmem:[%s4073_s1 + $0x7a8] ss:$16 sps:$4 sm:$0xff]   ;;  %v2978_v18 = vld [vmem:[%s4073_s1 + $0x7c4] ss:$16 sps:$4 sm:$0xff]   ;;  %v2981_v19 = vld [vmem:[%s4073_s1 + $0x7cc] ss:$16 sps:$4 sm:$0xff]  }
  0xd0   :  { %1769 = vmatprep.subr.bf16.mxu0 %v2918_v40  ;;  %1933 = vmatprep.subr.bf16.mxu1 %v2921_v41  ;;  %v2976_v22 = vld [vmem:[%s4073_s1 + $0x7c0] ss:$16 sps:$4 sm:$0xff]   ;;  %v2979_v23 = vld [vmem:[%s4073_s1 + $0x7c8] ss:$16 sps:$4 sm:$0xff]   ;;  %v2984_v24 = vld [vmem:[%s4073_s1 + $0x7e4] ss:$16 sps:$4 sm:$0xff]  }
  0xd1   :  { %v2987_v25 = vld [vmem:[%s4073_s1 + $0x7ec] ss:$16 sps:$4 sm:$0xff]   ;;  %v1982_v26 = vld [vmem:[%s4075_s3 + $0x80] sm:$0xff]  ;;  %v2985_v28 = vld [vmem:[%s4073_s1 + $0x7e8] ss:$16 sps:$4 sm:$0xff]   ;;  %v3013_v39 = vmov 0.0|0.0  }
  0xd2   :  { %v1983_v27 = vld [vmem:[%s4075_s3 + $0x88] sm:$0xff]  ;;  %v2982_v15 = vld [vmem:[%s4073_s1 + $0x7e0] ss:$16 sps:$4 sm:$0xff]   ;;  %v1985_v34 = vld [vmem:[%s4075_s3 + $0x98] sm:$0xff]  ;;  %vm2040_vm0 = vcmask 1043456   ;;  %vm2036_vm1 = vcmask 949248  }
  0xd3   :  { %1770 = vmatpush1.bf16.msra.mxu0 %v2916_v43  ;;  %1934 = vmatpush1.bf16.msra.mxu1 %v2919_v44  ;;  %v1998_v29 = vld [vmem:[%s4075_s3 + $0x100] sm:$0xff]  ;;  %v1999_v30 = vld [vmem:[%s4075_s3 + $0x108] sm:$0xff]  ;;  %v2494_v31 = vpack.c.bf16 %v1983_v27, %v1982_v26  ;;  %v1984_v33 = vld [vmem:[%s4075_s3 + $0x90] sm:$0xff]  ;;  %s3015_s9 = smov [#allocation2]   ;;  %vm2184_vm2 = vcmask 74752  }
  0xd4   :  { %1771 = vmatprep.subr.bf16.mxu0 %v2924_v45  ;;  %1935 = vmatprep.subr.bf16.mxu1 %v2927_v46  ;;  %v1966_v32 = vld [vmem:[%s4075_s3] sm:$0xff]  ;;  %v1967_v20 = vld [vmem:[%s4075_s3 + $0x8] sm:$0xff]  ;;  %v2527_v36 = vpack.c.bf16 %v1999_v30, %v1998_v29  ;;  %v2000_v37 = vld [vmem:[%s4075_s3 + $0x110] sm:$0xff]  ;;  %v2498_v41 = vpack.c.bf16 %v1985_v34, %v1984_v33  ;;  %s2192_s10 = sshll.u32 %s3015_s9, 4  ;;  %s2193_s10 = int_to_ptr.vmem [resolvable:$true] %s2192_s10 }
  0xd5   :  { %v2496_v38 = vpack.c.bf16 %v1967_v20, %v1966_v32  ;;  %v2001_v40 = vld [vmem:[%s4075_s3 + $0x118] sm:$0xff]  ;;  %v1968_v21 = vld [vmem:[%s4075_s3 + $0x10] sm:$0xff]  ;;  %v1986_v44 = vld [vmem:[%s4075_s3 + $0xa0] sm:$0xff]  ;;  %s2988_s11 = scalar_lea.vmem %s2193_s10, 32  ;;  %p2993_p1 = scmp.lt.s32.totalorder %s2193_s10, %s2193_s10 }
  0xd6   :  { %v1969_v43 = vld [vmem:[%s4075_s3 + $0x18] sm:$0xff]  ;;  %v1987_v45 = vld [vmem:[%s4075_s3 + $0xa8] sm:$0xff]  ;;  %v2530_v46 = vpack.c.bf16 %v2001_v40, %v2000_v37  ;;  %v1978_v26 = vld [vmem:[%s4075_s3 + $0x60] sm:$0xff]  ;;  %p2989_p0 = scmp.ne.s32.totalorder %s2193_s10, %s2988_s11  ;;  %p2994_p2 = scmp.lt.s32.totalorder %s2988_s11, %s2988_s11 }
  0xd7   :  { %1772 = vmatpush1.bf16.msra.mxu0 %v2922_v47  ;;  %1936 = vmatpush1.bf16.msra.mxu1 %v2925_v48  ;;  %v2002_v47 = vld [vmem:[%s4075_s3 + $0x120] sm:$0xff]  ;;  %v2500_v48 = vpack.c.bf16 %v1969_v43, %v1968_v21  ;;  %v1979_v27 = vld [vmem:[%s4075_s3 + $0x68] sm:$0xff]  ;;  %v2012_v29 = vld [vmem:[%s4075_s3 + $0x170] sm:$0xff] }
  0xd8   :  { %1773 = vmatprep.subr.bf16.mxu0 %v2930_v49  ;;  %1937 = vmatprep.subr.bf16.mxu1 %v2933_v50  ;;  %v2003_v49 = vld [vmem:[%s4075_s3 + $0x128] sm:$0xff]  ;;  %v2502_v50 = vpack.c.bf16 %v1987_v45, %v1986_v44  ;;  %v2013_v30 = vld [vmem:[%s4075_s3 + $0x178] sm:$0xff]  ;;  %v2014_v32 = vld [vmem:[%s4075_s3 + $0x180] sm:$0xff]  ;;  %p2995_p3 = por %p2994_p2, %p2993_p1 }
  0xd9   :  { %v2015_v20 = vld [vmem:[%s4075_s3 + $0x188] sm:$0xff]  ;;  %v2016_v34 = vld [vmem:[%s4075_s3 + $0x190] sm:$0xff]  ;;  %v2018_v37 = vld [vmem:[%s4075_s3 + $0x1a0] sm:$0xff] }
  0xda   :  { %v2551_v33 = vpack.c.bf16 %v2015_v20, %v2014_v32  ;;  %v2021_v21 = vld [vmem:[%s4075_s3 + $0x1b8] sm:$0xff]  ;;  %v2022_v44 = vld [vmem:[%s4075_s3 + $0x1c0] sm:$0xff]  ;;  %v2023_v45 = vld [vmem:[%s4075_s3 + $0x1c8] sm:$0xff]  ;;  %p2996_p4 = pnand %p2995_p3, %p2989_p0 }
  0xdb   :  { %1774 = vmatpush1.bf16.msra.mxu0 %v2928_v51  ;;  %1938 = vmatpush1.bf16.msra.mxu1 %v2931_v52  ;;  %v1970_v51 = vld [vmem:[%s4075_s3 + $0x20] sm:$0xff]  ;;  %v1971_v52 = vld [vmem:[%s4075_s3 + $0x28] sm:$0xff] }
  0xdc   :  { %1775 = vmatprep.subr.bf16.mxu0 %v2936_v53  ;;  %1939 = vmatprep.subr.bf16.mxu1 %v2939_v54  ;;  %v1988_v53 = vld [vmem:[%s4075_s3 + $0xb0] sm:$0xff]  ;;  %v1989_v54 = vld [vmem:[%s4075_s3 + $0xb8] sm:$0xff] }
  0xdf   :  { %1776 = vmatpush1.bf16.msra.mxu0 %v2934_v55  ;;  %1940 = vmatpush1.bf16.msra.mxu1 %v2937_v56  ;;  %v2533_v55 = vpack.c.bf16 %v2003_v49, %v2002_v47  ;;  %v2004_v56 = vld [vmem:[%s4075_s3 + $0x130] sm:$0xff] }
  0xe0   :  { %1777 = vmatprep.subr.bf16.mxu0 %v2942_v57  ;;  %1941 = vmatprep.subr.bf16.mxu1 %v2945_v58  ;;  %v2504_v57 = vpack.c.bf16 %v1971_v52, %v1970_v51  ;;  %v2005_v58 = vld [vmem:[%s4075_s3 + $0x138] sm:$0xff]  ;;  %v2024_v47 = vld [vmem:[%s4075_s3 + $0x1d0] sm:$0xff]  ;;  %v2027_v51 = vld [vmem:[%s4075_s3 + $0x1e8] sm:$0xff] }
  0xe3   :  { %1778 = vmatpush1.bf16.msra.mxu0 %v2940_v59  ;;  %1942 = vmatpush1.bf16.msra.mxu1 %v2943_v60  ;;  %v2506_v59 = vpack.c.bf16 %v1989_v54, %v1988_v53  ;;  %v1972_v60 = vld [vmem:[%s4075_s3 + $0x30] sm:$0xff]  ;;  %v1997_v54 = vld [vmem:[%s4075_s3 + $0xf8] sm:$0xff] }
  0xe4   :  { %1779 = vmatprep.subr.bf16.mxu0 %v2948_v61  ;;  %1943 = vmatprep.subr.bf16.mxu1 %v2951_v62  ;;  %v1973_v61 = vld [vmem:[%s4075_s3 + $0x38] sm:$0xff]  ;;  %v1990_v62 = vld [vmem:[%s4075_s3 + $0xc0] sm:$0xff]  ;;  %v1996_v53 = vld [vmem:[%s4075_s3 + $0xf0] sm:$0xff] }
  0xe7   :  { %1780 = vmatpush1.bf16.msra.mxu0 %v2946_v63  ;;  %1944 = vmatpush1.bf16.msra.mxu1 %v2949_v0  ;;  %v1991_v63 = vld [vmem:[%s4075_s3 + $0xc8] sm:$0xff]  ;;  %v2536_v0 = vpack.c.bf16 %v2005_v58, %v2004_v56  ;;  %v1981_v56 = vld [vmem:[%s4075_s3 + $0x78] sm:$0xff]  ;;  %v3014_v58 = vmov 0.0  }
  0xe8   :  { %1781 = vmatprep.subr.bf16.mxu0 %v2954_v1  ;;  %1945 = vmatprep.subr.bf16.mxu1 %v2957_v2  ;;  %v2006_v1 = vld [vmem:[%s4075_s3 + $0x140] sm:$0xff]  ;;  %v2508_v2 = vpack.c.bf16 %v1973_v61, %v1972_v60  ;;  %v286_v60 = vsub.s32 1, %v3163_v42  ;;  %v294_v61 = vsub.s32 3, %v3163_v42 }
  0xeb   :  { %1782 = vmatpush1.bf16.msra.mxu0 %v2952_v3  ;;  %1946 = vmatpush1.bf16.msra.mxu1 %v2955_v4  ;;  %v2007_v3 = vld [vmem:[%s4075_s3 + $0x148] sm:$0xff]  ;;  %v2510_v4 = vpack.c.bf16 %v1991_v63, %v1990_v62  ;;  %v278_v62 = vld [vmem:[%s4074_s2] sm:$0xf]  ;;  %v282_v63 = vsub.s32 0, %v3163_v42 }
  0xec   :  { %1783 = vmatprep.subr.bf16.mxu0 %v2960_v5  ;;  %1947 = vmatprep.subr.bf16.mxu1 %v2963_v6  ;;  %v1974_v5 = vld [vmem:[%s4075_s3 + $0x40] sm:$0xff]  ;;  %v1975_v6 = vld [vmem:[%s4075_s3 + $0x48] sm:$0xff] }
  0xef   :  { %1784 = vmatpush1.bf16.msra.mxu0 %v2958_v7  ;;  %1948 = vmatpush1.bf16.msra.mxu1 %v2961_v8  ;;  %v1992_v7 = vld [vmem:[%s4075_s3 + $0xd0] sm:$0xff]  ;;  %v1993_v8 = vld [vmem:[%s4075_s3 + $0xd8] sm:$0xff] }
  0xf0   :  { %1785 = vmatprep.subr.bf16.mxu0 %v2966_v9  ;;  %1949 = vmatprep.subr.bf16.mxu1 %v2969_v10  ;;  %v2539_v9 = vpack.c.bf16 %v2007_v3, %v2006_v1  ;;  %v2008_v10 = vld [vmem:[%s4075_s3 + $0x150] sm:$0xff]  ;;  %v287_v1 = vrot.slane %v278_v62, %v286_v60  ;;  %v283_v3 = vrot.slane %v278_v62, %v282_v63 }
  0xf3   :  { %1786 = vmatpush1.bf16.msra.mxu0 %v2964_v11  ;;  %1950 = vmatpush1.bf16.msra.mxu1 %v2967_v12  ;;  %v2512_v11 = vpack.c.bf16 %v1975_v6, %v1974_v5  ;;  %v2009_v12 = vld [vmem:[%s4075_s3 + $0x158] sm:$0xff] }
  0xf4   :  { %1787 = vmatprep.subr.bf16.mxu0 %v2972_v13  ;;  %1951 = vmatprep.subr.bf16.mxu1 %v2975_v14  ;;  %v2514_v13 = vpack.c.bf16 %v1993_v8, %v1992_v7  ;;  %v1976_v14 = vld [vmem:[%s4075_s3 + $0x50] sm:$0xff] }
  0xf7   :  { %1788 = vmatpush1.bf16.msra.mxu0 %v2970_v16  ;;  %1952 = vmatpush1.bf16.msra.mxu1 %v2973_v17  ;;  %v1977_v16 = vld [vmem:[%s4075_s3 + $0x58] sm:$0xff]  ;;  %v1994_v17 = vld [vmem:[%s4075_s3 + $0xe0] sm:$0xff] }
  0xf8   :  { %1789 = vmatprep.subr.bf16.mxu0 %v2978_v18  ;;  %1953 = vmatprep.subr.bf16.mxu1 %v2981_v19  ;;  %v1995_v18 = vld [vmem:[%s4075_s3 + $0xe8] sm:$0xff]  ;;  %v2542_v19 = vpack.c.bf16 %v2009_v12, %v2008_v10 }
  0xfb   :  { %1790 = vmatpush1.bf16.msra.mxu0 %v2976_v22  ;;  %1954 = vmatpush1.bf16.msra.mxu1 %v2979_v23  ;;  %v2010_v22 = vld [vmem:[%s4075_s3 + $0x160] sm:$0xff]  ;;  %v2516_v23 = vpack.c.bf16 %v1977_v16, %v1976_v14 }
  0xfc   :  { %1791 = vmatprep.subr.bf16.mxu0 %v2984_v24  ;;  %1955 = vmatprep.subr.bf16.mxu1 %v2987_v25  ;;  %v2011_v24 = vld [vmem:[%s4075_s3 + $0x168] sm:$0xff]  ;;  %v2518_v25 = vpack.c.bf16 %v1995_v18, %v1994_v17 }
  0xff   :  { %1792 = vmatpush1.bf16.msra.mxu0 %v2982_v15  ;;  %1956 = vmatpush1.bf16.msra.mxu1 %v2985_v28  ;;  %v2545_v15 = vpack.c.bf16 %v2011_v24, %v2010_v22  ;;  %v2520_v28 = vpack.c.bf16 %v1979_v27, %v1978_v26 }
 0x100   :  { %2526 = vmatprep.subr.bf16.mxu1 %v3013_v39  ;;  %2495 = vmatprep.subr.bf16.mxu0 %v2494_v31  ;;  %v2548_v31 = vpack.c.bf16 %v2013_v30, %v2012_v29 }
 0x102   :  { %1794 = vmatmul.mubr.bf16.vlgmr.msra.gmra.mrb[0].mxu0 %v347_v35  ;;  %1958 = vmatmul.mubr.bf16.vlgmr.msra.gmra.mrb[0].mxu1 %v347_v35  ;;  %v2017_v35 = vld [vmem:[%s4075_s3 + $0x198] sm:$0xff] }
 0x103   :  { %2528 = vmatpush1.bf16.msra.mxu1 %v2527_v36  ;;  %2497 = vmatpush3.bf16.msra.mxu0 %v2496_v38  ;;  %v2554_v36 = vpack.c.bf16 %v2017_v35, %v2016_v34  ;;  %v2019_v38 = vld [vmem:[%s4075_s3 + $0x1a8] sm:$0xff] }
 0x104   :  { %2529 = vmatprep.subr.bf16.mxu1 %v3013_v39  ;;  %2499 = vmatprep.subr.bf16.mxu0 %v2498_v41  ;;  %v2557_v40 = vpack.c.bf16 %v2019_v38, %v2018_v37  ;;  %v2020_v41 = vld [vmem:[%s4075_s3 + $0x1b0] sm:$0xff] }
 0x105   :  { %v2560_v43 = vpack.c.bf16 %v2021_v21, %v2020_v41 }
 0x107   :  { %2531 = vmatpush1.bf16.msra.mxu1 %v2530_v46  ;;  %2501 = vmatpush3.bf16.msra.mxu0 %v2500_v48  ;;  %v2563_v46 = vpack.c.bf16 %v2023_v45, %v2022_v44  ;;  %v2025_v48 = vld [vmem:[%s4075_s3 + $0x1d8] sm:$0xff] }
 0x108   :  { %2532 = vmatprep.subr.bf16.mxu1 %v3013_v39  ;;  %2503 = vmatprep.subr.bf16.mxu0 %v2502_v50  ;;  %v2566_v49 = vpack.c.bf16 %v2025_v48, %v2024_v47  ;;  %v2026_v50 = vld [vmem:[%s4075_s3 + $0x1e0] sm:$0xff] }
 0x109   :  { %v2569_v52 = vpack.c.bf16 %v2027_v51, %v2026_v50 }
 0x10b   :  { %2534 = vmatpush1.bf16.msra.mxu1 %v2533_v55  ;;  %2505 = vmatpush3.bf16.msra.mxu0 %v2504_v57  ;;  %v2522_v55 = vpack.c.bf16 %v1997_v54, %v1996_v53 }
 0x10c   :  { %2535 = vmatprep.subr.bf16.mxu1 %v3013_v39  ;;  %2507 = vmatprep.subr.bf16.mxu0 %v2506_v59  ;;  %v2028_v59 = vld [vmem:[%s4075_s3 + $0x1f0] sm:$0xf] }
 0x10f   :  { %2537 = vmatpush1.bf16.msra.mxu1 %v2536_v0  ;;  %2509 = vmatpush3.bf16.msra.mxu0 %v2508_v2  ;;  %v290_v0 = vsub.s32 2, %v3163_v42  ;;  %v295_v2 = vrot.slane %v278_v62, %v294_v61 }
 0x110   :  { %2538 = vmatprep.subr.bf16.mxu1 %v3013_v39  ;;  %2511 = vmatprep.subr.bf16.mxu0 %v2510_v4 }
 0x111   :  { %v291_v4 = vrot.slane %v278_v62, %v290_v0 }
 0x113   :  { %2540 = vmatpush1.bf16.msra.mxu1 %v2539_v9  ;;  %2513 = vmatpush3.bf16.msra.mxu0 %v2512_v11 }
 0x114   :  { %2541 = vmatprep.subr.bf16.mxu1 %v3013_v39  ;;  %2515 = vmatprep.subr.bf16.mxu0 %v2514_v13 }
 0x117   :  { %2543 = vmatpush1.bf16.msra.mxu1 %v2542_v19  ;;  %2517 = vmatpush3.bf16.msra.mxu0 %v2516_v23  ;;  %v2456_v19 = vld [vmem:[%s4076_s4] ss:$0 sm:$0xff] }
 0x118   :  { %2544 = vmatprep.subr.bf16.mxu1 %v3013_v39  ;;  %2519 = vmatprep.subr.bf16.mxu0 %v2518_v25 }
 0x11b   :  { %2546 = vmatpush1.bf16.msra.mxu1 %v2545_v15  ;;  %2521 = vmatpush3.bf16.msra.mxu0 %v2520_v28 }
 0x11c   :  { %2547 = vmatprep.subr.bf16.mxu1 %v3013_v39  ;;  %2523 = vmatprep.subr.bf16.mxu0 %v2522_v55 }
 0x11f   :  { %2549 = vmatpush1.bf16.msra.mxu1 %v2548_v31 }
 0x120   :  { %2550 = vmatprep.subr.bf16.mxu1 %v3013_v39 }
 0x123   :  { %2552 = vmatpush1.bf16.msra.mxu1 %v2551_v33 }
 0x124   :  { %2553 = vmatprep.subr.bf16.mxu1 %v3013_v39 }
 0x127   :  { %2555 = vmatpush1.bf16.msra.mxu1 %v2554_v36 }
 0x128   :  { %2556 = vmatprep.subr.bf16.mxu1 %v3013_v39 }
 0x12b   :  { %2558 = vmatpush1.bf16.msra.mxu1 %v2557_v40 }
 0x12c   :  { %2559 = vmatprep.subr.bf16.mxu1 %v3013_v39 }
 0x12f   :  { %2561 = vmatpush1.bf16.msra.mxu1 %v2560_v43 }
 0x130   :  { %2562 = vmatprep.subr.bf16.mxu1 %v3013_v39 }
 0x133   :  { %2564 = vmatpush1.bf16.msra.mxu1 %v2563_v46 }
 0x134   :  { %2565 = vmatprep.subr.bf16.mxu1 %v3013_v39 }
 0x137   :  { %2567 = vmatpush1.bf16.msra.mxu1 %v2566_v49 }
 0x138   :  { %2568 = vmatprep.subr.bf16.mxu1 %v3013_v39  ;;  %v1980_v39 = vld [vmem:[%s4075_s3 + $0x70] sm:$0xff] }
 0x139   :  { %v2524_v57 = vpack.c.bf16 %v1981_v56, %v1980_v39 }
 0x13b   :  { %2570 = vmatpush1.bf16.msra.mxu1 %v2569_v52  ;;  %2525 = vmatpush3.bf16.msra.mxu0 %v2524_v57 }
 0x13c   :  { %2174 = vmatprep.subr.mxu1 %v3014_v58 }
 0x13f   :  { %2457 = vmatpush1.msk.msra.mxu1 %vm2040_vm0, %v2028_v59 }
 0x1d5   :  { %v1795_v5 = vpop.f32.mrb[0].mxu0  ;;  %v1959_v6 = vpop.f32.mrb[0].mxu1 }
 0x1d6   :  { %v1797_v7 = vpop.f32.mrb[1].mxu0  ;;  %v1961_v8 = vpop.f32.mrb[1].mxu1  ;;  %v2571_v13 = vadd.f32 %v1795_v5, %v283_v3  ;;  %v2573_v14 = vadd.f32 %v1959_v6, %v291_v4 }
 0x1d7   :  { %v2572_v9 = vadd.f32 %v1797_v7, %v287_v1  ;;  %v2574_v10 = vadd.f32 %v1961_v8, %v295_v2  ;;  %v1799_v11 = vpop.f32.mrb[2].mxu0  ;;  %v1963_v12 = vpop.f32.mrb[2].mxu1 }
 0x1d8   :  { %v1800_v16 = vpop.f32.mrb[3].mxu0  ;;  %v1964_v17 = vpop.f32.mrb[3].mxu1 }
 0x1d9   :  { %2108 = vmatprep.mubr.f32.mxu0 %v2572_v9  ;;  %2458 = vmatprep.mubr.msk.f32.mxu1 %vm2036_vm1, %v2574_v10 }
 0x1da   :  { %2109 = vmatmul.mubr.f32.vlgmr.msra.gmra.mrb[4].mxu0 %v2571_v13  ;;  %2179 = vmatmul.mubr.f32.vlgmr.msra.gmra.mrb[4].mxu1 %v2573_v14 }
 0x2ad   :  { %v2491_v42 = vpop.f32.mrb[4].mxu0  ;;  %v2180_v18 = vpop.f32.mrb[4].mxu1 }
 0x2ae   :  { %v2492_v22 = vpop.f32.mrb[5].mxu0  ;;  %v2182_v23 = vpop.f32.mrb[5].mxu1 }
 0x2af   :  { %v2493_v24 = vadd.f32 %v2492_v22, %v2491_v42 }
 0x2b1   :  { %v2111_v25 = vadd.f32 %v2493_v24, %v2456_v19 }
 0x2b3   :  { %v2181_v26 = vadd.f32 %v2180_v18, %v2111_v25 }
 0x2b5   :  { %2185 = vst.msk [vmem:[#allocation2] sm:$0x3] %vm2184_vm2, %v2181_v26 }
 0x2b6   :  { %2999 = shalt.err (!%p2996_p4)
}
 0x2b7   :  { %s3000_s4 = scalar_lea.hbm %s4077_s5, 32 }
 0x2b8   :  { %p3001_p5 = scmp.ne.s32.totalorder %s4077_s5, %s3000_s4  ;;  %p3004_p6 = scmp.lt.u32.totalorder %s3000_s4, %s4077_s5 }
 0x2ba   :  { %p3006_p7 = pnand %p3004_p6, %p3001_p5 }
 0x2bc   :  { %3009 = shalt.err (!%p3006_p7)
}
 0x2bd   :  { %2195 = dma.vmem_to_hbm [thread:$0]  %s2193_s10, 32, %s4077_s5, [#allocation3]  }
 0x2be   :  { %3010 = dma.done.wait [#allocation3], 32  }
 0x2bf   :  { %3011 = vsyncadd [#allocation3], 4294967264 }
 0x2c0   :  { %2199 = vsyncpa [#allocation3], 1 }

</bundles_post_ra>
